<compile_context>
chip_gen: v6e
topology: v6e:2x2x1
jax: 0.10.0
libtpu: 0.0.40
codegen_flags: <defaults>
</compile_context>

<pallas_src>
import math
from functools import partial

import jax
import jax.numpy as jnp
from jax import lax
from jax.experimental import pallas as pl
from jax.experimental.pallas import tpu as pltpu


# --------------------------------------------------------------------------
# Small helpers for tiling / padding
# --------------------------------------------------------------------------
def _round_up(x, m):
    return (x + m - 1) // m * m


def _choose_tile(dim, align, max_tile):
    """Return (padded_dim, tile). Full-dim block if small, else aligned tiles."""
    if dim <= max_tile:
        return dim, dim
    d = _round_up(dim, align)
    t = max_tile
    while d % t:
        t -= align
    return d, t


def _pad2d(a, rows, cols):
    pr, pc = rows - a.shape[0], cols - a.shape[1]
    if pr == 0 and pc == 0:
        return a
    return jnp.pad(a, ((0, pr), (0, pc)))


# --------------------------------------------------------------------------
# Pallas kernels
# --------------------------------------------------------------------------
def _matmul_kernel(x_ref, w_ref, b_ref, *rest, residual):
    # Tiled matmul with f32 accumulator; bias (+ residual) fused in epilogue.
    if residual:
        r_ref, o_ref, acc_ref = rest
    else:
        o_ref, acc_ref = rest

    @pl.when(pl.program_id(2) == 0)
    def _():
        acc_ref[...] = jnp.zeros_like(acc_ref)

    acc_ref[...] += jnp.dot(
        x_ref[...].astype(jnp.bfloat16), w_ref[...],
        preferred_element_type=jnp.float32,
    )

    @pl.when(pl.program_id(2) == pl.num_programs(2) - 1)
    def _():
        y = acc_ref[...] + b_ref[...]
        if residual:
            y = y + r_ref[...]
        o_ref[...] = y


def _ln_matmul_kernel(x_ref, g_ref, bln_ref, w_ref, b_ref, o_ref, *, gelu):
    # LayerNorm (f32) fused with matmul (+ bias, + optional QuickGELU).
    x = x_ref[...]
    mean = jnp.mean(x, axis=-1, keepdims=True)
    var = jnp.mean(jnp.square(x - mean), axis=-1, keepdims=True)
    xn = (x - mean) * lax.rsqrt(var + 1e-5) * g_ref[...] + bln_ref[...]
    y = jnp.dot(
        xn.astype(jnp.bfloat16), w_ref[...], preferred_element_type=jnp.float32
    ) + b_ref[...]
    if gelu:
        # QuickGELU (OpenAI CLIP): x * sigmoid(1.702 x)
        y = y * jax.nn.sigmoid(1.702 * y)
    o_ref[...] = y


def _layernorm_kernel(x_ref, g_ref, b_ref, o_ref):
    x = x_ref[...]
    mean = jnp.mean(x, axis=-1, keepdims=True)
    var = jnp.mean(jnp.square(x - mean), axis=-1, keepdims=True)
    o_ref[...] = (x - mean) * lax.rsqrt(var + 1e-5) * g_ref[...] + b_ref[...]


def _attn_kernel(qkv_ref, o_ref, *, n_heads, causal):
    # One batch element per grid step; all heads computed here from the fused
    # QKV buffer.  Mask is generated in-kernel (no mask input / DMA).
    qkv = qkv_ref[0]                      # (T, 3D)
    T, D3 = qkv.shape
    D = D3 // 3
    Dh = D // n_heads
    scale = 1.0 / math.sqrt(Dh)

    if causal:
        rows = lax.broadcasted_iota(jnp.int32, (T, T), 0)
        cols = lax.broadcasted_iota(jnp.int32, (T, T), 1)
        bias = jnp.where(cols <= rows, 0.0, -1e9).astype(jnp.float32)

    heads = []
    for h in range(n_heads):
        qh = qkv[:, h * Dh:(h + 1) * Dh]
        kh = qkv[:, D + h * Dh:D + (h + 1) * Dh]
        vh = qkv[:, 2 * D + h * Dh:2 * D + (h + 1) * Dh]
        # q @ k.T without an explicit transpose (contract on last dims).
        s = lax.dot_general(
            qh.astype(jnp.bfloat16), kh.astype(jnp.bfloat16),
            (((1,), (1,)), ((), ())),
            preferred_element_type=jnp.float32,
        ) * scale
        if causal:
            s = s + bias
        s = s - jnp.max(s, axis=-1, keepdims=True)
        p = jnp.exp(s)
        p = p * pl.reciprocal(jnp.sum(p, axis=-1, keepdims=True), approx=True)
        heads.append(
            jnp.dot(p.astype(jnp.bfloat16), vh.astype(jnp.bfloat16),
                    preferred_element_type=jnp.float32)
        )
    o_ref[...] = jnp.concatenate(heads, axis=-1)[None, :, :]


def _ln_proj_norm_kernel(x_ref, g_ref, b_ref, w_ref, o_ref):
    # Fused tail: LayerNorm + projection matmul + L2 normalize (with eps).
    x = x_ref[...]
    mean = jnp.mean(x, axis=-1, keepdims=True)
    var = jnp.mean(jnp.square(x - mean), axis=-1, keepdims=True)
    xn = (x - mean) * lax.rsqrt(var + 1e-5) * g_ref[...] + b_ref[...]
    y = jnp.dot(xn.astype(jnp.bfloat16), w_ref[...],
                preferred_element_type=jnp.float32)
    o_ref[...] = y * lax.rsqrt(jnp.sum(y * y, axis=-1, keepdims=True) + 1e-12)


def _logits_kernel(img_ref, txt_ref, scale_ref, o_ref):
    # Features arrive already L2-normalized.
    o_ref[...] = scale_ref[0, 0] * lax.dot_general(
        img_ref[...], txt_ref[...], (((1,), (1,)), ((), ())),
        preferred_element_type=jnp.float32,
    )


# --------------------------------------------------------------------------
# Pallas wrappers
# --------------------------------------------------------------------------
def linear(x, w, b, residual=None):
    """y = x @ w + b (+ residual).  w is bf16; x/b/residual f32."""
    lead = x.shape[:-1]
    K = x.shape[-1]
    N = w.shape[-1]
    x2 = x.reshape(-1, K)
    M = x2.shape[0]

    Mp, tm = _choose_tile(M, 8, 256)
    Kp, tk = _choose_tile(K, 128, 512)
    Np, tn = _choose_tile(N, 128, 512)

    x2 = _pad2d(x2, Mp, Kp)
    wp = _pad2d(w, Kp, Np)
    bp = _pad2d(b.reshape(1, N).astype(jnp.float32), 1, Np)

    gm, gn, gk = Mp // tm, Np // tn, Kp // tk

    in_specs = [
        pl.BlockSpec((tm, tk), lambda i, j, k: (i, k)),
        pl.BlockSpec((tk, tn), lambda i, j, k: (k, j)),
        pl.BlockSpec((1, tn), lambda i, j, k: (0, j)),
    ]
    args = [x2, wp, bp]
    if residual is not None:
        r2 = _pad2d(residual.reshape(-1, N), Mp, Np)
        in_specs.append(pl.BlockSpec((tm, tn), lambda i, j, k: (i, j)))
        args.append(r2)

    out = pl.pallas_call(
        partial(_matmul_kernel, residual=residual is not None),
        out_shape=jax.ShapeDtypeStruct((Mp, Np), jnp.float32),
        grid=(gm, gn, gk),
        in_specs=in_specs,
        out_specs=pl.BlockSpec((tm, tn), lambda i, j, k: (i, j)),
        scratch_shapes=[pltpu.VMEM((tm, tn), jnp.float32)],
        compiler_params=pltpu.CompilerParams(
            dimension_semantics=("parallel", "parallel", "arbitrary")),
    )(*args)
    return out[:M, :N].reshape(*lead, N)


def ln_linear(x, g, bln, w, b, gelu=False):
    """LayerNorm(x) @ w + b (+ QuickGELU).  K kept whole (LN needs full row)."""
    lead = x.shape[:-1]
    K = x.shape[-1]
    N = w.shape[-1]
    x2 = x.reshape(-1, K)
    M = x2.shape[0]

    Mp, tm = _choose_tile(M, 8, 256)
    Np, tn = _choose_tile(N, 128, 512)

    x2 = _pad2d(x2, Mp, K)
    wp = _pad2d(w, K, Np)
    bp = _pad2d(b.reshape(1, N).astype(jnp.float32), 1, Np)

    gm, gn = Mp // tm, Np // tn

    out = pl.pallas_call(
        partial(_ln_matmul_kernel, gelu=gelu),
        out_shape=jax.ShapeDtypeStruct((Mp, Np), jnp.float32),
        grid=(gm, gn),
        in_specs=[
            pl.BlockSpec((tm, K), lambda i, j: (i, 0)),
            pl.BlockSpec((1, K), lambda i, j: (0, 0)),
            pl.BlockSpec((1, K), lambda i, j: (0, 0)),
            pl.BlockSpec((K, tn), lambda i, j: (0, j)),
            pl.BlockSpec((1, tn), lambda i, j: (0, j)),
        ],
        out_specs=pl.BlockSpec((tm, tn), lambda i, j: (i, j)),
        compiler_params=pltpu.CompilerParams(
            dimension_semantics=("parallel", "parallel")),
    )(x2, g.reshape(1, K), bln.reshape(1, K), wp, bp)
    return out[:M, :N].reshape(*lead, N)


def layernorm(x, g, b):
    lead = x.shape[:-1]
    D = x.shape[-1]
    x2 = x.reshape(-1, D)
    M = x2.shape[0]
    Mp, tm = _choose_tile(M, 8, 512)
    x2 = _pad2d(x2, Mp, D)
    out = pl.pallas_call(
        _layernorm_kernel,
        out_shape=jax.ShapeDtypeStruct((Mp, D), jnp.float32),
        grid=(Mp // tm,),
        in_specs=[
            pl.BlockSpec((tm, D), lambda i: (i, 0)),
            pl.BlockSpec((1, D), lambda i: (0, 0)),
            pl.BlockSpec((1, D), lambda i: (0, 0)),
        ],
        out_specs=pl.BlockSpec((tm, D), lambda i: (i, 0)),
        compiler_params=pltpu.CompilerParams(dimension_semantics=("parallel",)),
    )(x2, g.reshape(1, D), b.reshape(1, D))
    return out[:M].reshape(*lead, D)


def attention(qkv, n_heads, causal):
    """qkv: (B, T, 3D) fused -> (B, T, D); all heads per grid step."""
    B, T, D3 = qkv.shape
    D = D3 // 3
    return pl.pallas_call(
        partial(_attn_kernel, n_heads=n_heads, causal=causal),
        out_shape=jax.ShapeDtypeStruct((B, T, D), jnp.float32),
        grid=(B,),
        in_specs=[pl.BlockSpec((1, T, D3), lambda b: (b, 0, 0))],
        out_specs=pl.BlockSpec((1, T, D), lambda b: (b, 0, 0)),
        compiler_params=pltpu.CompilerParams(dimension_semantics=("parallel",)),
    )(qkv)


def ln_proj_normalize(x, g, b, w):
    """Fused LN + projection + L2 normalize. x: (M, K) f32, w: (K, N) bf16."""
    M, K = x.shape
    N = w.shape[-1]
    return pl.pallas_call(
        _ln_proj_norm_kernel,
        out_shape=jax.ShapeDtypeStruct((M, N), jnp.float32),
        grid=(1,),
        in_specs=[
            pl.BlockSpec((M, K), lambda i: (0, 0)),
            pl.BlockSpec((1, K), lambda i: (0, 0)),
            pl.BlockSpec((1, K), lambda i: (0, 0)),
            pl.BlockSpec((K, N), lambda i: (0, 0)),
        ],
        out_specs=pl.BlockSpec((M, N), lambda i: (0, 0)),
    )(x, g.reshape(1, K), b.reshape(1, K), w)


def clip_logits(img_feat, txt_feat, logit_scale):
    B, D = img_feat.shape
    C = txt_feat.shape[0]
    scale = jnp.exp(logit_scale).reshape(1, 1).astype(jnp.float32)
    return pl.pallas_call(
        _logits_kernel,
        out_shape=jax.ShapeDtypeStruct((B, C), jnp.float32),
        grid=(1,),
        in_specs=[
            pl.BlockSpec((B, D), lambda i: (0, 0)),
            pl.BlockSpec((C, D), lambda i: (0, 0)),
            pl.BlockSpec(memory_space=pltpu.MemorySpace.SMEM),
        ],
        out_specs=pl.BlockSpec((B, C), lambda i: (0, 0)),
    )(img_feat, txt_feat, scale)


# --------------------------------------------------------------------------
# Model pieces (glue in JAX, compute in the fused Pallas kernels above)
# --------------------------------------------------------------------------
def transformer_block(x, p, n_heads, causal):
    # x: (B, T, D)
    qkv = ln_linear(x, p["ln1_g"], p["ln1_b"], p["qkv_w"], p["qkv_b"])   # LN+QKV
    attn = attention(qkv, n_heads, causal)                               # all heads
    x = linear(attn, p["out_w"], p["out_b"], residual=x)                 # +residual
    h = ln_linear(x, p["ln2_g"], p["ln2_b"], p["fc1_w"], p["fc1_b"], gelu=True)
    return linear(h, p["fc2_w"], p["fc2_b"], residual=x)                 # +residual


def image_encoder(image, vp, patch, n_heads):
    # image: (B, 3, H, W) NCHW; stride=patch conv == patch extract + matmul
    B, C, H, W = image.shape
    gh, gw = H // patch, W // patch
    x = image.reshape(B, C, gh, patch, gw, patch)
    x = x.transpose(0, 2, 4, 1, 3, 5).reshape(B, gh * gw, C * patch * patch)
    zero_b = jnp.zeros((vp["conv_w"].shape[-1],), jnp.float32)
    x = linear(x, vp["conv_w"], zero_b)                                  # (B, P, width)
    width = x.shape[-1]
    cls = jnp.broadcast_to(vp["cls"].reshape(1, 1, width), (B, 1, width))
    x = jnp.concatenate([cls, x], axis=1) + vp["pos"][None, :, :]
    x = layernorm(x, vp["ln_pre_g"], vp["ln_pre_b"])
    for blk in vp["blocks"]:
        x = transformer_block(x, blk, n_heads, causal=False)
    # fused tail: ln_post (CLS token) + visual projection + L2 normalize
    return ln_proj_normalize(x[:, 0, :], vp["ln_post_g"], vp["ln_post_b"], vp["proj"])


def prompt_learner_forward(pp, n_cls):
    # class_token_position == 'end': [prefix | ctx | suffix]
    ctx = jnp.broadcast_to(pp["ctx"][None, :, :], (n_cls,) + pp["ctx"].shape)
    return jnp.concatenate([pp["token_prefix"], ctx, pp["token_suffix"]], axis=1)


def text_encoder(prompts, tokenized_prompts, tp, n_heads):
    # prompts: (n_cls, L, d)
    x = prompts + tp["pos"][None, :, :]
    for blk in tp["blocks"]:
        x = transformer_block(x, blk, n_heads, causal=True)
    eot = jnp.argmax(tokenized_prompts, axis=-1)                         # EOT position
    x_eot = x[jnp.arange(x.shape[0]), eot]                               # (n_cls, d)
    # fused tail: ln_final + text_projection + L2 normalize
    return ln_proj_normalize(x_eot, tp["ln_final_g"], tp["ln_final_b"],
                             tp["text_projection"])


def custom_clip_forward(image, params, cfg):
    image_features = image_encoder(
        image.astype(jnp.float32), params["visual"], cfg["patch"], cfg["vis_heads"]
    )
    prompts = prompt_learner_forward(params["prompt"], cfg["n_cls"])
    text_features = text_encoder(
        prompts, params["tokenized_prompts"], params["text"], cfg["txt_heads"]
    )
    return clip_logits(image_features, text_features, params["logit_scale"])


# --------------------------------------------------------------------------
# Deterministic parameter construction (synthetic CLIP weights)
# --------------------------------------------------------------------------
def init_params(key, cfg):
    keys = list(jax.random.split(key, 256))
    kit = iter(keys)

    def nrm(shape, std=0.02):
        return (std * jax.random.normal(next(kit), shape)).astype(jnp.float32)

    def bf16(x):
        return x.astype(jnp.bfloat16)

    def init_block(d):
        return dict(
            ln1_g=jnp.ones((d,), jnp.float32), ln1_b=jnp.zeros((d,), jnp.float32),
            qkv_w=bf16(nrm((d, 3 * d))), qkv_b=jnp.zeros((3 * d,), jnp.float32),
            out_w=bf16(nrm((d, d))), out_b=jnp.zeros((d,), jnp.float32),
            ln2_g=jnp.ones((d,), jnp.float32), ln2_b=jnp.zeros((d,), jnp.float32),
            fc1_w=bf16(nrm((d, 4 * d))), fc1_b=jnp.zeros((4 * d,), jnp.float32),
            fc2_w=bf16(nrm((4 * d, d))), fc2_b=jnp.zeros((d,), jnp.float32),
        )

    wv, wt, e = cfg["vis_width"], cfg["txt_width"], cfg["embed_dim"]
    patch, n_ctx, n_cls, L = cfg["patch"], cfg["n_ctx"], cfg["n_cls"], cfg["ctx_len"]
    n_patches = (cfg["img_size"] // patch) ** 2

    visual = dict(
        conv_w=bf16(nrm((3 * patch * patch, wv))),
        cls=nrm((wv,)),
        pos=nrm((n_patches + 1, wv)),
        ln_pre_g=jnp.ones((wv,), jnp.float32), ln_pre_b=jnp.zeros((wv,), jnp.float32),
        blocks=[init_block(wv) for _ in range(cfg["vis_layers"])],
        ln_post_g=jnp.ones((wv,), jnp.float32), ln_post_b=jnp.zeros((wv,), jnp.float32),
        proj=bf16(nrm((wv, e))),
    )

    text = dict(
        pos=nrm((L, wt)),
        blocks=[init_block(wt) for _ in range(cfg["txt_layers"])],
        ln_final_g=jnp.ones((wt,), jnp.float32),
        ln_final_b=jnp.zeros((wt,), jnp.float32),
        text_projection=bf16(nrm((wt, e))),
    )

    # PromptLearner buffers (token embeddings synthesized; see TODO below)
    # TODO(synk): CLIP tokenizer + token_embedding lookup have no Pallas equivalent;
    # the prefix/suffix/ctx embeddings are synthesized deterministically instead.
    prompt = dict(
        ctx=nrm((n_ctx, wt)),                              # generic context
        token_prefix=nrm((n_cls, 1, wt)),                  # SOT embedding per class
        token_suffix=nrm((n_cls, L - 1 - n_ctx, wt)),      # class-name + EOT + pad
    )

    # tokenized prompts: SOT, n_ctx placeholders, name tokens, '.', EOT(max), pad
    name_lens = [1, 2, 1][:n_cls]
    tok = jnp.zeros((n_cls, L), jnp.int32)
    for i, nl in enumerate(name_lens):
        row = jnp.zeros((L,), jnp.int32)
        row = row.at[0].set(49406)
        row = row.at[1: 1 + n_ctx].set(343)
        row = row.at[1 + n_ctx: 1 + n_ctx + nl].set(100 + i)
        row = row.at[1 + n_ctx + nl].set(269)
        row = row.at[1 + n_ctx + nl + 1].set(49407)        # EOT = max token id
        tok = tok.at[i].set(row)

    return dict(
        visual=visual,
        text=text,
        prompt=prompt,
        tokenized_prompts=tok,
        logit_scale=jnp.asarray(math.log(1.0 / 0.07), jnp.float32),
    )


# --------------------------------------------------------------------------
# Main
# --------------------------------------------------------------------------
if __name__ == "__main__":
    cfg = dict(
        img_size=16, patch=8,
        vis_width=64, vis_layers=2, vis_heads=4,
        txt_width=64, txt_layers=2, txt_heads=4,
        embed_dim=64,
        n_cls=3, n_ctx=4, ctx_len=16,
    )

    key = jax.random.PRNGKey(0)
    k_img, k_par = jax.random.split(key)
    image = jax.random.normal(
        k_img, (2, 3, cfg["img_size"], cfg["img_size"]), jnp.float32)
    params = init_params(k_par, cfg)

    fwd = jax.jit(partial(custom_clip_forward, cfg=cfg))
    logits = fwd(image, params)
    logits = jax.block_until_ready(logits)

    assert logits.shape == (2, cfg["n_cls"]), logits.shape
    assert bool(jnp.all(jnp.isfinite(logits)))
    print("KERNEL_OK")
</pallas_src>

<mosaic_0001>
module attributes {stable_mosaic.version = 11 : i64} {
  func.func @_matmul_kernel(%arg0: i32, %arg1: i32, %arg2: i32, %arg3: memref<8x192xf32, #tpu.memory_space<vmem>>, %arg4: memref<192x64xbf16, #tpu.memory_space<vmem>>, %arg5: memref<1x64xf32, #tpu.memory_space<vmem>>, %arg6: memref<8x64xf32, #tpu.memory_space<vmem>>, %arg7: memref<8x64xf32, #tpu.memory_space<vmem>>) attributes {dimension_semantics = [#tpu.dimension_semantics<parallel>, #tpu.dimension_semantics<parallel>, #tpu.dimension_semantics<arbitrary>], iteration_bounds = array<i64: 1, 1, 1>, scalar_prefetch = 0 : i64, scratch_operands = 1 : i64, tpu.core_type = #tpu.core_type<tc>, window_params = [{transform_indices = @transform_0, window_bounds = array<i64: 8, 192>}, {transform_indices = @transform_1, window_bounds = array<i64: 192, 64>}, {transform_indices = @transform_2, window_bounds = array<i64: 1, 64>}, {transform_indices = @transform_3, window_bounds = array<i64: 8, 64>}]} {
    %c0_i32 = arith.constant 0 : i32
    %0 = arith.cmpi eq, %arg2, %c0_i32 : i32
    %1 = arith.extui %0 : i1 to i32
    %c0_i32_0 = arith.constant 0 : i32
    %2 = arith.cmpi ne, %1, %c0_i32_0 : i32
    scf.if %2 {
      %cst_10 = arith.constant 0.000000e+00 : f32
      %13 = vector.broadcast %cst_10 : f32 to vector<8x64xf32>
      %c0_11 = arith.constant 0 : index
      %c0_12 = arith.constant 0 : index
      %14 = vector.load %arg7[%c0_11, %c0_12] : memref<8x64xf32, #tpu.memory_space<vmem>>, vector<8x64xf32>
      tpu.vector_store %arg7[%c0_11, %c0_12], %13 {strides = array<i32>} : memref<8x64xf32, #tpu.memory_space<vmem>>, vector<8x64xf32>,
    } else {
    }
    %c0 = arith.constant 0 : index
    %c0_1 = arith.constant 0 : index
    %3 = vector.load %arg7[%c0, %c0_1] : memref<8x64xf32, #tpu.memory_space<vmem>>, vector<8x64xf32>
    %c0_2 = arith.constant 0 : index
    %c0_3 = arith.constant 0 : index
    %4 = vector.load %arg3[%c0_2, %c0_3] : memref<8x192xf32, #tpu.memory_space<vmem>>, vector<8x192xf32>
    %5 = arith.truncf %4 : vector<8x192xf32> to vector<8x192xbf16>
    %c0_4 = arith.constant 0 : index
    %c0_5 = arith.constant 0 : index
    %6 = vector.load %arg4[%c0_4, %c0_5] : memref<192x64xbf16, #tpu.memory_space<vmem>>, vector<192x64xbf16>
    %cst = arith.constant dense<0.000000e+00> : vector<8x64xf32>
    %7 = tpu.matmul %5, %6, %cst {dimension_numbers = #tpu.dot_dimension_numbers<[1], [0], [0], [1], [0, 0, 1, 1], [], []>} : vector<8x192xbf16>, vector<192x64xbf16>, vector<8x64xf32> -> vector<8x64xf32>
    %8 = arith.addf %3, %7 : vector<8x64xf32>
    %c0_6 = arith.constant 0 : index
    %c0_7 = arith.constant 0 : index
    %9 = vector.load %arg7[%c0_6, %c0_7] : memref<8x64xf32, #tpu.memory_space<vmem>>, vector<8x64xf32>
    tpu.vector_store %arg7[%c0_6, %c0_7], %8 {strides = array<i32>} : memref<8x64xf32, #tpu.memory_space<vmem>>, vector<8x64xf32>,
    %c0_i32_8 = arith.constant 0 : i32
    %10 = arith.cmpi eq, %arg2, %c0_i32_8 : i32
    %11 = arith.extui %10 : i1 to i32
    %c0_i32_9 = arith.constant 0 : i32
    %12 = arith.cmpi ne, %11, %c0_i32_9 : i32
    scf.if %12 {
      %c0_10 = arith.constant 0 : index
      %c0_11 = arith.constant 0 : index
      %13 = vector.load %arg7[%c0_10, %c0_11] : memref<8x64xf32, #tpu.memory_space<vmem>>, vector<8x64xf32>
      %c0_12 = arith.constant 0 : index
      %c0_13 = arith.constant 0 : index
      %14 = vector.load %arg5[%c0_12, %c0_13] : memref<1x64xf32, #tpu.memory_space<vmem>>, vector<1x64xf32>
      %15 = vector.broadcast %14 : vector<1x64xf32> to vector<8x64xf32>
      %16 = arith.addf %13, %15 : vector<8x64xf32>
      %c0_14 = arith.constant 0 : index
      %c0_15 = arith.constant 0 : index
      %17 = vector.load %arg6[%c0_14, %c0_15] : memref<8x64xf32, #tpu.memory_space<vmem>>, vector<8x64xf32>
      tpu.vector_store %arg6[%c0_14, %c0_15], %16 {strides = array<i32>} : memref<8x64xf32, #tpu.memory_space<vmem>>, vector<8x64xf32>,
    } else {
    }
    return
  }
  func.func @transform_0(%arg0: i32, %arg1: i32, %arg2: i32) -> (i32, i32) {
    %c0_i32 = arith.constant 0 : i32
    return %arg0, %arg2 : i32, i32
  }
  func.func @transform_1(%arg0: i32, %arg1: i32, %arg2: i32) -> (i32, i32) {
    %c0_i32 = arith.constant 0 : i32
    return %arg2, %arg1 : i32, i32
  }
  func.func @transform_2(%arg0: i32, %arg1: i32, %arg2: i32) -> (i32, i32) {
    %c0_i32 = arith.constant 0 : i32
    %c0_i32_0 = arith.constant 0 : i32
    return %c0_i32, %arg1 : i32, i32
  }
  func.func @transform_3(%arg0: i32, %arg1: i32, %arg2: i32) -> (i32, i32) {
    %c0_i32 = arith.constant 0 : i32
    return %arg0, %arg1 : i32, i32
  }
}

module attributes {stable_mosaic.version = 11 : i64} {
  func.func @_layernorm_kernel(%arg0: i32, %arg1: memref<10x64xf32, #tpu.memory_space<vmem>>, %arg2: memref<1x64xf32, #tpu.memory_space<vmem>>, %arg3: memref<1x64xf32, #tpu.memory_space<vmem>>, %arg4: memref<10x64xf32, #tpu.memory_space<vmem>>) attributes {dimension_semantics = [#tpu.dimension_semantics<parallel>], iteration_bounds = array<i64: 1>, scalar_prefetch = 0 : i64, scratch_operands = 0 : i64, tpu.core_type = #tpu.core_type<tc>, window_params = [{transform_indices = @transform_0, window_bounds = array<i64: 10, 64>}, {pipeline_mode = #tpu.pipeline_mode<synchronous>, transform_indices = @transform_1, window_bounds = array<i64: 1, 64>}, {pipeline_mode = #tpu.pipeline_mode<synchronous>, transform_indices = @transform_2, window_bounds = array<i64: 1, 64>}, {transform_indices = @transform_3, window_bounds = array<i64: 10, 64>}]} {
    %c0 = arith.constant 0 : index
    %c0_0 = arith.constant 0 : index
    %0 = vector.load %arg1[%c0, %c0_0] : memref<10x64xf32, #tpu.memory_space<vmem>>, vector<10x64xf32>
    %cst = arith.constant dense<0.000000e+00> : vector<10xf32>
    %1 = vector.multi_reduction <add>, %0, %cst [1] : vector<10x64xf32> to vector<10xf32>
    %2 = vector.shape_cast %1 : vector<10xf32> to vector<10x1xf32>
    %cst_1 = arith.constant 6.400000e+01 : f32
    %3 = vector.broadcast %cst_1 : f32 to vector<10x1xf32>
    %4 = arith.divf %2, %3 : vector<10x1xf32>
    %5 = vector.broadcast %4 : vector<10x1xf32> to vector<10x64xf32>
    %6 = arith.subf %0, %5 : vector<10x64xf32>
    %7 = arith.mulf %6, %6 : vector<10x64xf32>
    %cst_2 = arith.constant dense<0.000000e+00> : vector<10xf32>
    %8 = vector.multi_reduction <add>, %7, %cst_2 [1] : vector<10x64xf32> to vector<10xf32>
    %9 = vector.shape_cast %8 : vector<10xf32> to vector<10x1xf32>
    %cst_3 = arith.constant 6.400000e+01 : f32
    %10 = vector.broadcast %cst_3 : f32 to vector<10x1xf32>
    %11 = arith.divf %9, %10 : vector<10x1xf32>
    %12 = vector.broadcast %4 : vector<10x1xf32> to vector<10x64xf32>
    %13 = arith.subf %0, %12 : vector<10x64xf32>
    %cst_4 = arith.constant 9.99999974E-6 : f32
    %14 = vector.broadcast %cst_4 : f32 to vector<10x1xf32>
    %15 = arith.addf %11, %14 : vector<10x1xf32>
    %16 = math.rsqrt %15 : vector<10x1xf32>
    %17 = vector.broadcast %16 : vector<10x1xf32> to vector<10x64xf32>
    %18 = arith.mulf %13, %17 : vector<10x64xf32>
    %c0_5 = arith.constant 0 : index
    %c0_6 = arith.constant 0 : index
    %19 = vector.load %arg2[%c0_5, %c0_6] : memref<1x64xf32, #tpu.memory_space<vmem>>, vector<1x64xf32>
    %20 = vector.broadcast %19 : vector<1x64xf32> to vector<10x64xf32>
    %21 = arith.mulf %18, %20 : vector<10x64xf32>
    %c0_7 = arith.constant 0 : index
    %c0_8 = arith.constant 0 : index
    %22 = vector.load %arg3[%c0_7, %c0_8] : memref<1x64xf32, #tpu.memory_space<vmem>>, vector<1x64xf32>
    %23 = vector.broadcast %22 : vector<1x64xf32> to vector<10x64xf32>
    %24 = arith.addf %21, %23 : vector<10x64xf32>
    %c0_9 = arith.constant 0 : index
    %c0_10 = arith.constant 0 : index
    %25 = vector.load %arg4[%c0_9, %c0_10] : memref<10x64xf32, #tpu.memory_space<vmem>>, vector<10x64xf32>
    tpu.vector_store %arg4[%c0_9, %c0_10], %24 {strides = array<i32>} : memref<10x64xf32, #tpu.memory_space<vmem>>, vector<10x64xf32>,
    return
  }
  func.func @transform_0(%arg0: i32) -> (i32, i32) {
    %c0_i32 = arith.constant 0 : i32
    %c0_i32_0 = arith.constant 0 : i32
    return %arg0, %c0_i32 : i32, i32
  }
  func.func @transform_1(%arg0: i32) -> (i32, i32) {
    %c0_i32 = arith.constant 0 : i32
    %c0_i32_0 = arith.constant 0 : i32
    %c0_i32_1 = arith.constant 0 : i32
    return %c0_i32, %c0_i32_0 : i32, i32
  }
  func.func @transform_2(%arg0: i32) -> (i32, i32) {
    %c0_i32 = arith.constant 0 : i32
    %c0_i32_0 = arith.constant 0 : i32
    %c0_i32_1 = arith.constant 0 : i32
    return %c0_i32, %c0_i32_0 : i32, i32
  }
  func.func @transform_3(%arg0: i32) -> (i32, i32) {
    %c0_i32 = arith.constant 0 : i32
    %c0_i32_0 = arith.constant 0 : i32
    return %arg0, %c0_i32 : i32, i32
  }
}

module attributes {stable_mosaic.version = 11 : i64} {
  func.func @_ln_matmul_kernel(%arg0: i32, %arg1: i32, %arg2: memref<10x64xf32, #tpu.memory_space<vmem>>, %arg3: memref<1x64xf32, #tpu.memory_space<vmem>>, %arg4: memref<1x64xf32, #tpu.memory_space<vmem>>, %arg5: memref<64x192xbf16, #tpu.memory_space<vmem>>, %arg6: memref<1x192xf32, #tpu.memory_space<vmem>>, %arg7: memref<10x192xf32, #tpu.memory_space<vmem>>) attributes {dimension_semantics = [#tpu.dimension_semantics<parallel>, #tpu.dimension_semantics<parallel>], iteration_bounds = array<i64: 1, 1>, scalar_prefetch = 0 : i64, scratch_operands = 0 : i64, tpu.core_type = #tpu.core_type<tc>, window_params = [{transform_indices = @transform_0, window_bounds = array<i64: 10, 64>}, {pipeline_mode = #tpu.pipeline_mode<synchronous>, transform_indices = @transform_1, window_bounds = array<i64: 1, 64>}, {pipeline_mode = #tpu.pipeline_mode<synchronous>, transform_indices = @transform_2, window_bounds = array<i64: 1, 64>}, {transform_indices = @transform_3, window_bounds = array<i64: 64, 192>}, {transform_indices = @transform_4, window_bounds = array<i64: 1, 192>}, {transform_indices = @transform_5, window_bounds = array<i64: 10, 192>}]} {
    %c0 = arith.constant 0 : index
    %c0_0 = arith.constant 0 : index
    %0 = vector.load %arg2[%c0, %c0_0] : memref<10x64xf32, #tpu.memory_space<vmem>>, vector<10x64xf32>
    %cst = arith.constant dense<0.000000e+00> : vector<10xf32>
    %1 = vector.multi_reduction <add>, %0, %cst [1] : vector<10x64xf32> to vector<10xf32>
    %2 = vector.shape_cast %1 : vector<10xf32> to vector<10x1xf32>
    %cst_1 = arith.constant 6.400000e+01 : f32
    %3 = vector.broadcast %cst_1 : f32 to vector<10x1xf32>
    %4 = arith.divf %2, %3 : vector<10x1xf32>
    %5 = vector.broadcast %4 : vector<10x1xf32> to vector<10x64xf32>
    %6 = arith.subf %0, %5 : vector<10x64xf32>
    %7 = arith.mulf %6, %6 : vector<10x64xf32>
    %cst_2 = arith.constant dense<0.000000e+00> : vector<10xf32>
    %8 = vector.multi_reduction <add>, %7, %cst_2 [1] : vector<10x64xf32> to vector<10xf32>
    %9 = vector.shape_cast %8 : vector<10xf32> to vector<10x1xf32>
    %cst_3 = arith.constant 6.400000e+01 : f32
    %10 = vector.broadcast %cst_3 : f32 to vector<10x1xf32>
    %11 = arith.divf %9, %10 : vector<10x1xf32>
    %12 = vector.broadcast %4 : vector<10x1xf32> to vector<10x64xf32>
    %13 = arith.subf %0, %12 : vector<10x64xf32>
    %cst_4 = arith.constant 9.99999974E-6 : f32
    %14 = vector.broadcast %cst_4 : f32 to vector<10x1xf32>
    %15 = arith.addf %11, %14 : vector<10x1xf32>
    %16 = math.rsqrt %15 : vector<10x1xf32>
    %17 = vector.broadcast %16 : vector<10x1xf32> to vector<10x64xf32>
    %18 = arith.mulf %13, %17 : vector<10x64xf32>
    %c0_5 = arith.constant 0 : index
    %c0_6 = arith.constant 0 : index
    %19 = vector.load %arg3[%c0_5, %c0_6] : memref<1x64xf32, #tpu.memory_space<vmem>>, vector<1x64xf32>
    %20 = vector.broadcast %19 : vector<1x64xf32> to vector<10x64xf32>
    %21 = arith.mulf %18, %20 : vector<10x64xf32>
    %c0_7 = arith.constant 0 : index
    %c0_8 = arith.constant 0 : index
    %22 = vector.load %arg4[%c0_7, %c0_8] : memref<1x64xf32, #tpu.memory_space<vmem>>, vector<1x64xf32>
    %23 = vector.broadcast %22 : vector<1x64xf32> to vector<10x64xf32>
    %24 = arith.addf %21, %23 : vector<10x64xf32>
    %25 = arith.truncf %24 : vector<10x64xf32> to vector<10x64xbf16>
    %c0_9 = arith.constant 0 : index
    %c0_10 = arith.constant 0 : index
    %26 = vector.load %arg5[%c0_9, %c0_10] : memref<64x192xbf16, #tpu.memory_space<vmem>>, vector<64x192xbf16>
    %cst_11 = arith.constant dense<0.000000e+00> : vector<10x192xf32>
    %27 = tpu.matmul %25, %26, %cst_11 {dimension_numbers = #tpu.dot_dimension_numbers<[1], [0], [0], [1], [0, 0, 1, 1], [], []>} : vector<10x64xbf16>, vector<64x192xbf16>, vector<10x192xf32> -> vector<10x192xf32>
    %c0_12 = arith.constant 0 : index
    %c0_13 = arith.constant 0 : index
    %28 = vector.load %arg6[%c0_12, %c0_13] : memref<1x192xf32, #tpu.memory_space<vmem>>, vector<1x192xf32>
    %29 = vector.broadcast %28 : vector<1x192xf32> to vector<10x192xf32>
    %30 = arith.addf %27, %29 : vector<10x192xf32>
    %c0_14 = arith.constant 0 : index
    %c0_15 = arith.constant 0 : index
    %31 = vector.load %arg7[%c0_14, %c0_15] : memref<10x192xf32, #tpu.memory_space<vmem>>, vector<10x192xf32>
    tpu.vector_store %arg7[%c0_14, %c0_15], %30 {strides = array<i32>} : memref<10x192xf32, #tpu.memory_space<vmem>>, vector<10x192xf32>,
    return
  }
  func.func @transform_0(%arg0: i32, %arg1: i32) -> (i32, i32) {
    %c0_i32 = arith.constant 0 : i32
    %c0_i32_0 = arith.constant 0 : i32
    return %arg0, %c0_i32 : i32, i32
  }
  func.func @transform_1(%arg0: i32, %arg1: i32) -> (i32, i32) {
    %c0_i32 = arith.constant 0 : i32
    %c0_i32_0 = arith.constant 0 : i32
    %c0_i32_1 = arith.constant 0 : i32
    return %c0_i32, %c0_i32_0 : i32, i32
  }
  func.func @transform_2(%arg0: i32, %arg1: i32) -> (i32, i32) {
    %c0_i32 = arith.constant 0 : i32
    %c0_i32_0 = arith.constant 0 : i32
    %c0_i32_1 = arith.constant 0 : i32
    return %c0_i32, %c0_i32_0 : i32, i32
  }
  func.func @transform_3(%arg0: i32, %arg1: i32) -> (i32, i32) {
    %c0_i32 = arith.constant 0 : i32
    %c0_i32_0 = arith.constant 0 : i32
    return %c0_i32, %arg1 : i32, i32
  }
  func.func @transform_4(%arg0: i32, %arg1: i32) -> (i32, i32) {
    %c0_i32 = arith.constant 0 : i32
    %c0_i32_0 = arith.constant 0 : i32
    return %c0_i32, %arg1 : i32, i32
  }
  func.func @transform_5(%arg0: i32, %arg1: i32) -> (i32, i32) {
    %c0_i32 = arith.constant 0 : i32
    return %arg0, %arg1 : i32, i32
  }
}

module attributes {stable_mosaic.version = 11 : i64} {
  func.func @_attn_kernel(%arg0: i32, %arg1: memref<1x5x192xf32, #tpu.memory_space<vmem>>, %arg2: memref<1x5x64xf32, #tpu.memory_space<vmem>>) attributes {dimension_semantics = [#tpu.dimension_semantics<parallel>], iteration_bounds = array<i64: 2>, scalar_prefetch = 0 : i64, scratch_operands = 0 : i64, tpu.core_type = #tpu.core_type<tc>, window_params = [{transform_indices = @transform_0, window_bounds = array<i64: 1, 5, 192>}, {transform_indices = @transform_1, window_bounds = array<i64: 1, 5, 64>}]} {
    %c0 = arith.constant 0 : index
    %c0_0 = arith.constant 0 : index
    %c0_1 = arith.constant 0 : index
    %0 = vector.load %arg1[%c0, %c0_0, %c0_1] : memref<1x5x192xf32, #tpu.memory_space<vmem>>, vector<1x5x192xf32>
    %1 = vector.shape_cast %0 : vector<1x5x192xf32> to vector<5x192xf32>
    %2 = vector.extract_strided_slice %1 {offsets = [0, 0], sizes = [5, 16], strides = [1, 1]} : vector<5x192xf32> to vector<5x16xf32>
    %3 = vector.extract_strided_slice %1 {offsets = [0, 64], sizes = [5, 16], strides = [1, 1]} : vector<5x192xf32> to vector<5x16xf32>
    %4 = vector.extract_strided_slice %1 {offsets = [0, 128], sizes = [5, 16], strides = [1, 1]} : vector<5x192xf32> to vector<5x16xf32>
    %5 = arith.truncf %2 : vector<5x16xf32> to vector<5x16xbf16>
    %6 = arith.truncf %3 : vector<5x16xf32> to vector<5x16xbf16>
    %cst = arith.constant dense<0.000000e+00> : vector<5x5xf32>
    %7 = tpu.matmul %5, %6, %cst {dimension_numbers = #tpu.dot_dimension_numbers<[1], [1], [0], [0], [0, 0, 1, 0], [], []>} : vector<5x16xbf16>, vector<5x16xbf16>, vector<5x5xf32> -> vector<5x5xf32>
    %cst_2 = arith.constant 2.500000e-01 : f32
    %8 = vector.broadcast %cst_2 : f32 to vector<5x5xf32>
    %9 = arith.mulf %7, %8 : vector<5x5xf32>
    %cst_3 = arith.constant dense<0xFF800000> : vector<5xf32>
    %10 = vector.multi_reduction <maximumf>, %9, %cst_3 [1] : vector<5x5xf32> to vector<5xf32>
    %11 = vector.shape_cast %10 : vector<5xf32> to vector<5x1xf32>
    %12 = vector.broadcast %11 : vector<5x1xf32> to vector<5x5xf32>
    %13 = arith.subf %9, %12 : vector<5x5xf32>
    %14 = math.exp %13 : vector<5x5xf32>
    %cst_4 = arith.constant dense<0.000000e+00> : vector<5xf32>
    %15 = vector.multi_reduction <add>, %14, %cst_4 [1] : vector<5x5xf32> to vector<5xf32>
    %16 = vector.shape_cast %15 : vector<5xf32> to vector<5x1xf32>
    %17 = tpu.reciprocal %16 {approx = true} : vector<5x1xf32> -> vector<5x1xf32>
    %18 = vector.broadcast %17 : vector<5x1xf32> to vector<5x5xf32>
    %19 = arith.mulf %14, %18 : vector<5x5xf32>
    %20 = arith.truncf %19 : vector<5x5xf32> to vector<5x5xbf16>
    %21 = arith.truncf %4 : vector<5x16xf32> to vector<5x16xbf16>
    %cst_5 = arith.constant dense<0.000000e+00> : vector<5x16xf32>
    %22 = tpu.matmul %20, %21, %cst_5 {dimension_numbers = #tpu.dot_dimension_numbers<[1], [0], [0], [1], [0, 0, 1, 1], [], []>} : vector<5x5xbf16>, vector<5x16xbf16>, vector<5x16xf32> -> vector<5x16xf32>
    %23 = vector.extract_strided_slice %1 {offsets = [0, 16], sizes = [5, 16], strides = [1, 1]} : vector<5x192xf32> to vector<5x16xf32>
    %24 = vector.extract_strided_slice %1 {offsets = [0, 80], sizes = [5, 16], strides = [1, 1]} : vector<5x192xf32> to vector<5x16xf32>
    %25 = vector.extract_strided_slice %1 {offsets = [0, 144], sizes = [5, 16], strides = [1, 1]} : vector<5x192xf32> to vector<5x16xf32>
    %26 = arith.truncf %23 : vector<5x16xf32> to vector<5x16xbf16>
    %27 = arith.truncf %24 : vector<5x16xf32> to vector<5x16xbf16>
    %cst_6 = arith.constant dense<0.000000e+00> : vector<5x5xf32>
    %28 = tpu.matmul %26, %27, %cst_6 {dimension_numbers = #tpu.dot_dimension_numbers<[1], [1], [0], [0], [0, 0, 1, 0], [], []>} : vector<5x16xbf16>, vector<5x16xbf16>, vector<5x5xf32> -> vector<5x5xf32>
    %cst_7 = arith.constant 2.500000e-01 : f32
    %29 = vector.broadcast %cst_7 : f32 to vector<5x5xf32>
    %30 = arith.mulf %28, %29 : vector<5x5xf32>
    %cst_8 = arith.constant dense<0xFF800000> : vector<5xf32>
    %31 = vector.multi_reduction <maximumf>, %30, %cst_8 [1] : vector<5x5xf32> to vector<5xf32>
    %32 = vector.shape_cast %31 : vector<5xf32> to vector<5x1xf32>
    %33 = vector.broadcast %32 : vector<5x1xf32> to vector<5x5xf32>
    %34 = arith.subf %30, %33 : vector<5x5xf32>
    %35 = math.exp %34 : vector<5x5xf32>
    %cst_9 = arith.constant dense<0.000000e+00> : vector<5xf32>
    %36 = vector.multi_reduction <add>, %35, %cst_9 [1] : vector<5x5xf32> to vector<5xf32>
    %37 = vector.shape_cast %36 : vector<5xf32> to vector<5x1xf32>
    %38 = tpu.reciprocal %37 {approx = true} : vector<5x1xf32> -> vector<5x1xf32>
    %39 = vector.broadcast %38 : vector<5x1xf32> to vector<5x5xf32>
    %40 = arith.mulf %35, %39 : vector<5x5xf32>
    %41 = arith.truncf %40 : vector<5x5xf32> to vector<5x5xbf16>
    %42 = arith.truncf %25 : vector<5x16xf32> to vector<5x16xbf16>
    %cst_10 = arith.constant dense<0.000000e+00> : vector<5x16xf32>
    %43 = tpu.matmul %41, %42, %cst_10 {dimension_numbers = #tpu.dot_dimension_numbers<[1], [0], [0], [1], [0, 0, 1, 1], [], []>} : vector<5x5xbf16>, vector<5x16xbf16>, vector<5x16xf32> -> vector<5x16xf32>
    %44 = vector.extract_strided_slice %1 {offsets = [0, 32], sizes = [5, 16], strides = [1, 1]} : vector<5x192xf32> to vector<5x16xf32>
    %45 = vector.extract_strided_slice %1 {offsets = [0, 96], sizes = [5, 16], strides = [1, 1]} : vector<5x192xf32> to vector<5x16xf32>
    %46 = vector.extract_strided_slice %1 {offsets = [0, 160], sizes = [5, 16], strides = [1, 1]} : vector<5x192xf32> to vector<5x16xf32>
    %47 = arith.truncf %44 : vector<5x16xf32> to vector<5x16xbf16>
    %48 = arith.truncf %45 : vector<5x16xf32> to vector<5x16xbf16>
    %cst_11 = arith.constant dense<0.000000e+00> : vector<5x5xf32>
    %49 = tpu.matmul %47, %48, %cst_11 {dimension_numbers = #tpu.dot_dimension_numbers<[1], [1], [0], [0], [0, 0, 1, 0], [], []>} : vector<5x16xbf16>, vector<5x16xbf16>, vector<5x5xf32> -> vector<5x5xf32>
    %cst_12 = arith.constant 2.500000e-01 : f32
    %50 = vector.broadcast %cst_12 : f32 to vector<5x5xf32>
    %51 = arith.mulf %49, %50 : vector<5x5xf32>
    %cst_13 = arith.constant dense<0xFF800000> : vector<5xf32>
    %52 = vector.multi_reduction <maximumf>, %51, %cst_13 [1] : vector<5x5xf32> to vector<5xf32>
    %53 = vector.shape_cast %52 : vector<5xf32> to vector<5x1xf32>
    %54 = vector.broadcast %53 : vector<5x1xf32> to vector<5x5xf32>
    %55 = arith.subf %51, %54 : vector<5x5xf32>
    %56 = math.exp %55 : vector<5x5xf32>
    %cst_14 = arith.constant dense<0.000000e+00> : vector<5xf32>
    %57 = vector.multi_reduction <add>, %56, %cst_14 [1] : vector<5x5xf32> to vector<5xf32>
    %58 = vector.shape_cast %57 : vector<5xf32> to vector<5x1xf32>
    %59 = tpu.reciprocal %58 {approx = true} : vector<5x1xf32> -> vector<5x1xf32>
    %60 = vector.broadcast %59 : vector<5x1xf32> to vector<5x5xf32>
    %61 = arith.mulf %56, %60 : vector<5x5xf32>
    %62 = arith.truncf %61 : vector<5x5xf32> to vector<5x5xbf16>
    %63 = arith.truncf %46 : vector<5x16xf32> to vector<5x16xbf16>
    %cst_15 = arith.constant dense<0.000000e+00> : vector<5x16xf32>
    %64 = tpu.matmul %62, %63, %cst_15 {dimension_numbers = #tpu.dot_dimension_numbers<[1], [0], [0], [1], [0, 0, 1, 1], [], []>} : vector<5x5xbf16>, vector<5x16xbf16>, vector<5x16xf32> -> vector<5x16xf32>
    %65 = vector.extract_strided_slice %1 {offsets = [0, 48], sizes = [5, 16], strides = [1, 1]} : vector<5x192xf32> to vector<5x16xf32>
    %66 = vector.extract_strided_slice %1 {offsets = [0, 112], sizes = [5, 16], strides = [1, 1]} : vector<5x192xf32> to vector<5x16xf32>
    %67 = vector.extract_strided_slice %1 {offsets = [0, 176], sizes = [5, 16], strides = [1, 1]} : vector<5x192xf32> to vector<5x16xf32>
    %68 = arith.truncf %65 : vector<5x16xf32> to vector<5x16xbf16>
    %69 = arith.truncf %66 : vector<5x16xf32> to vector<5x16xbf16>
    %cst_16 = arith.constant dense<0.000000e+00> : vector<5x5xf32>
    %70 = tpu.matmul %68, %69, %cst_16 {dimension_numbers = #tpu.dot_dimension_numbers<[1], [1], [0], [0], [0, 0, 1, 0], [], []>} : vector<5x16xbf16>, vector<5x16xbf16>, vector<5x5xf32> -> vector<5x5xf32>
    %cst_17 = arith.constant 2.500000e-01 : f32
    %71 = vector.broadcast %cst_17 : f32 to vector<5x5xf32>
    %72 = arith.mulf %70, %71 : vector<5x5xf32>
    %cst_18 = arith.constant dense<0xFF800000> : vector<5xf32>
    %73 = vector.multi_reduction <maximumf>, %72, %cst_18 [1] : vector<5x5xf32> to vector<5xf32>
    %74 = vector.shape_cast %73 : vector<5xf32> to vector<5x1xf32>
    %75 = vector.broadcast %74 : vector<5x1xf32> to vector<5x5xf32>
    %76 = arith.subf %72, %75 : vector<5x5xf32>
    %77 = math.exp %76 : vector<5x5xf32>
    %cst_19 = arith.constant dense<0.000000e+00> : vector<5xf32>
    %78 = vector.multi_reduction <add>, %77, %cst_19 [1] : vector<5x5xf32> to vector<5xf32>
    %79 = vector.shape_cast %78 : vector<5xf32> to vector<5x1xf32>
    %80 = tpu.reciprocal %79 {approx = true} : vector<5x1xf32> -> vector<5x1xf32>
    %81 = vector.broadcast %80 : vector<5x1xf32> to vector<5x5xf32>
    %82 = arith.mulf %77, %81 : vector<5x5xf32>
    %83 = arith.truncf %82 : vector<5x5xf32> to vector<5x5xbf16>
    %84 = arith.truncf %67 : vector<5x16xf32> to vector<5x16xbf16>
    %cst_20 = arith.constant dense<0.000000e+00> : vector<5x16xf32>
    %85 = tpu.matmul %83, %84, %cst_20 {dimension_numbers = #tpu.dot_dimension_numbers<[1], [0], [0], [1], [0, 0, 1, 1], [], []>} : vector<5x5xbf16>, vector<5x16xbf16>, vector<5x16xf32> -> vector<5x16xf32>
    %86 = tpu.concatenate %22, %43, %64, %85 in 1 : vector<5x16xf32>, vector<5x16xf32>, vector<5x16xf32>, vector<5x16xf32> -> vector<5x64xf32>
    %87 = vector.shape_cast %86 : vector<5x64xf32> to vector<1x5x64xf32>
    %c0_21 = arith.constant 0 : index
    %c0_22 = arith.constant 0 : index
    %c0_23 = arith.constant 0 : index
    %88 = vector.load %arg2[%c0_21, %c0_22, %c0_23] : memref<1x5x64xf32, #tpu.memory_space<vmem>>, vector<1x5x64xf32>
    tpu.vector_store %arg2[%c0_21, %c0_22, %c0_23], %87 {strides = array<i32>} : memref<1x5x64xf32, #tpu.memory_space<vmem>>, vector<1x5x64xf32>,
    return
  }
  func.func @transform_0(%arg0: i32) -> (i32, i32, i32) {
    %c0_i32 = arith.constant 0 : i32
    %c0_i32_0 = arith.constant 0 : i32
    %c0_i32_1 = arith.constant 0 : i32
    return %arg0, %c0_i32, %c0_i32_0 : i32, i32, i32
  }
  func.func @transform_1(%arg0: i32) -> (i32, i32, i32) {
    %c0_i32 = arith.constant 0 : i32
    %c0_i32_0 = arith.constant 0 : i32
    %c0_i32_1 = arith.constant 0 : i32
    return %arg0, %c0_i32, %c0_i32_0 : i32, i32, i32
  }
}

module attributes {stable_mosaic.version = 11 : i64} {
  func.func @_matmul_kernel(%arg0: i32, %arg1: i32, %arg2: i32, %arg3: memref<10x64xf32, #tpu.memory_space<vmem>>, %arg4: memref<64x64xbf16, #tpu.memory_space<vmem>>, %arg5: memref<1x64xf32, #tpu.memory_space<vmem>>, %arg6: memref<10x64xf32, #tpu.memory_space<vmem>>, %arg7: memref<10x64xf32, #tpu.memory_space<vmem>>, %arg8: memref<10x64xf32, #tpu.memory_space<vmem>>) attributes {dimension_semantics = [#tpu.dimension_semantics<parallel>, #tpu.dimension_semantics<parallel>, #tpu.dimension_semantics<arbitrary>], iteration_bounds = array<i64: 1, 1, 1>, scalar_prefetch = 0 : i64, scratch_operands = 1 : i64, tpu.core_type = #tpu.core_type<tc>, window_params = [{transform_indices = @transform_0, window_bounds = array<i64: 10, 64>}, {transform_indices = @transform_1, window_bounds = array<i64: 64, 64>}, {transform_indices = @transform_2, window_bounds = array<i64: 1, 64>}, {transform_indices = @transform_3, window_bounds = array<i64: 10, 64>}, {transform_indices = @transform_4, window_bounds = array<i64: 10, 64>}]} {
    %c0_i32 = arith.constant 0 : i32
    %0 = arith.cmpi eq, %arg2, %c0_i32 : i32
    %1 = arith.extui %0 : i1 to i32
    %c0_i32_0 = arith.constant 0 : i32
    %2 = arith.cmpi ne, %1, %c0_i32_0 : i32
    scf.if %2 {
      %cst_10 = arith.constant 0.000000e+00 : f32
      %13 = vector.broadcast %cst_10 : f32 to vector<10x64xf32>
      %c0_11 = arith.constant 0 : index
      %c0_12 = arith.constant 0 : index
      %14 = vector.load %arg8[%c0_11, %c0_12] : memref<10x64xf32, #tpu.memory_space<vmem>>, vector<10x64xf32>
      tpu.vector_store %arg8[%c0_11, %c0_12], %13 {strides = array<i32>} : memref<10x64xf32, #tpu.memory_space<vmem>>, vector<10x64xf32>,
    } else {
    }
    %c0 = arith.constant 0 : index
    %c0_1 = arith.constant 0 : index
    %3 = vector.load %arg8[%c0, %c0_1] : memref<10x64xf32, #tpu.memory_space<vmem>>, vector<10x64xf32>
    %c0_2 = arith.constant 0 : index
    %c0_3 = arith.constant 0 : index
    %4 = vector.load %arg3[%c0_2, %c0_3] : memref<10x64xf32, #tpu.memory_space<vmem>>, vector<10x64xf32>
    %5 = arith.truncf %4 : vector<10x64xf32> to vector<10x64xbf16>
    %c0_4 = arith.constant 0 : index
    %c0_5 = arith.constant 0 : index
    %6 = vector.load %arg4[%c0_4, %c0_5] : memref<64x64xbf16, #tpu.memory_space<vmem>>, vector<64x64xbf16>
    %cst = arith.constant dense<0.000000e+00> : vector<10x64xf32>
    %7 = tpu.matmul %5, %6, %cst {dimension_numbers = #tpu.dot_dimension_numbers<[1], [0], [0], [1], [0, 0, 1, 1], [], []>} : vector<10x64xbf16>, vector<64x64xbf16>, vector<10x64xf32> -> vector<10x64xf32>
    %8 = arith.addf %3, %7 : vector<10x64xf32>
    %c0_6 = arith.constant 0 : index
    %c0_7 = arith.constant 0 : index
    %9 = vector.load %arg8[%c0_6, %c0_7] : memref<10x64xf32, #tpu.memory_space<vmem>>, vector<10x64xf32>
    tpu.vector_store %arg8[%c0_6, %c0_7], %8 {strides = array<i32>} : memref<10x64xf32, #tpu.memory_space<vmem>>, vector<10x64xf32>,
    %c0_i32_8 = arith.constant 0 : i32
    %10 = arith.cmpi eq, %arg2, %c0_i32_8 : i32
    %11 = arith.extui %10 : i1 to i32
    %c0_i32_9 = arith.constant 0 : i32
    %12 = arith.cmpi ne, %11, %c0_i32_9 : i32
    scf.if %12 {
      %c0_10 = arith.constant 0 : index
      %c0_11 = arith.constant 0 : index
      %13 = vector.load %arg8[%c0_10, %c0_11] : memref<10x64xf32, #tpu.memory_space<vmem>>, vector<10x64xf32>
      %c0_12 = arith.constant 0 : index
      %c0_13 = arith.constant 0 : index
      %14 = vector.load %arg5[%c0_12, %c0_13] : memref<1x64xf32, #tpu.memory_space<vmem>>, vector<1x64xf32>
      %15 = vector.broadcast %14 : vector<1x64xf32> to vector<10x64xf32>
      %16 = arith.addf %13, %15 : vector<10x64xf32>
      %c0_14 = arith.constant 0 : index
      %c0_15 = arith.constant 0 : index
      %17 = vector.load %arg6[%c0_14, %c0_15] : memref<10x64xf32, #tpu.memory_space<vmem>>, vector<10x64xf32>
      %18 = arith.addf %16, %17 : vector<10x64xf32>
      %c0_16 = arith.constant 0 : index
      %c0_17 = arith.constant 0 : index
      %19 = vector.load %arg7[%c0_16, %c0_17] : memref<10x64xf32, #tpu.memory_space<vmem>>, vector<10x64xf32>
      tpu.vector_store %arg7[%c0_16, %c0_17], %18 {strides = array<i32>} : memref<10x64xf32, #tpu.memory_space<vmem>>, vector<10x64xf32>,
    } else {
    }
    return
  }
  func.func @transform_0(%arg0: i32, %arg1: i32, %arg2: i32) -> (i32, i32) {
    %c0_i32 = arith.constant 0 : i32
    return %arg0, %arg2 : i32, i32
  }
  func.func @transform_1(%arg0: i32, %arg1: i32, %arg2: i32) -> (i32, i32) {
    %c0_i32 = arith.constant 0 : i32
    return %arg2, %arg1 : i32, i32
  }
  func.func @transform_2(%arg0: i32, %arg1: i32, %arg2: i32) -> (i32, i32) {
    %c0_i32 = arith.constant 0 : i32
    %c0_i32_0 = arith.constant 0 : i32
    return %c0_i32, %arg1 : i32, i32
  }
  func.func @transform_3(%arg0: i32, %arg1: i32, %arg2: i32) -> (i32, i32) {
    %c0_i32 = arith.constant 0 : i32
    return %arg0, %arg1 : i32, i32
  }
  func.func @transform_4(%arg0: i32, %arg1: i32, %arg2: i32) -> (i32, i32) {
    %c0_i32 = arith.constant 0 : i32
    return %arg0, %arg1 : i32, i32
  }
}

module attributes {stable_mosaic.version = 11 : i64} {
  func.func @_ln_matmul_kernel(%arg0: i32, %arg1: i32, %arg2: memref<10x64xf32, #tpu.memory_space<vmem>>, %arg3: memref<1x64xf32, #tpu.memory_space<vmem>>, %arg4: memref<1x64xf32, #tpu.memory_space<vmem>>, %arg5: memref<64x256xbf16, #tpu.memory_space<vmem>>, %arg6: memref<1x256xf32, #tpu.memory_space<vmem>>, %arg7: memref<10x256xf32, #tpu.memory_space<vmem>>) attributes {dimension_semantics = [#tpu.dimension_semantics<parallel>, #tpu.dimension_semantics<parallel>], iteration_bounds = array<i64: 1, 1>, scalar_prefetch = 0 : i64, scratch_operands = 0 : i64, tpu.core_type = #tpu.core_type<tc>, window_params = [{transform_indices = @transform_0, window_bounds = array<i64: 10, 64>}, {pipeline_mode = #tpu.pipeline_mode<synchronous>, transform_indices = @transform_1, window_bounds = array<i64: 1, 64>}, {pipeline_mode = #tpu.pipeline_mode<synchronous>, transform_indices = @transform_2, window_bounds = array<i64: 1, 64>}, {transform_indices = @transform_3, window_bounds = array<i64: 64, 256>}, {transform_indices = @transform_4, window_bounds = array<i64: 1, 256>}, {transform_indices = @transform_5, window_bounds = array<i64: 10, 256>}]} {
    %c0 = arith.constant 0 : index
    %c0_0 = arith.constant 0 : index
    %0 = vector.load %arg2[%c0, %c0_0] : memref<10x64xf32, #tpu.memory_space<vmem>>, vector<10x64xf32>
    %cst = arith.constant dense<0.000000e+00> : vector<10xf32>
    %1 = vector.multi_reduction <add>, %0, %cst [1] : vector<10x64xf32> to vector<10xf32>
    %2 = vector.shape_cast %1 : vector<10xf32> to vector<10x1xf32>
    %cst_1 = arith.constant 6.400000e+01 : f32
    %3 = vector.broadcast %cst_1 : f32 to vector<10x1xf32>
    %4 = arith.divf %2, %3 : vector<10x1xf32>
    %5 = vector.broadcast %4 : vector<10x1xf32> to vector<10x64xf32>
    %6 = arith.subf %0, %5 : vector<10x64xf32>
    %7 = arith.mulf %6, %6 : vector<10x64xf32>
    %cst_2 = arith.constant dense<0.000000e+00> : vector<10xf32>
    %8 = vector.multi_reduction <add>, %7, %cst_2 [1] : vector<10x64xf32> to vector<10xf32>
    %9 = vector.shape_cast %8 : vector<10xf32> to vector<10x1xf32>
    %cst_3 = arith.constant 6.400000e+01 : f32
    %10 = vector.broadcast %cst_3 : f32 to vector<10x1xf32>
    %11 = arith.divf %9, %10 : vector<10x1xf32>
    %12 = vector.broadcast %4 : vector<10x1xf32> to vector<10x64xf32>
    %13 = arith.subf %0, %12 : vector<10x64xf32>
    %cst_4 = arith.constant 9.99999974E-6 : f32
    %14 = vector.broadcast %cst_4 : f32 to vector<10x1xf32>
    %15 = arith.addf %11, %14 : vector<10x1xf32>
    %16 = math.rsqrt %15 : vector<10x1xf32>
    %17 = vector.broadcast %16 : vector<10x1xf32> to vector<10x64xf32>
    %18 = arith.mulf %13, %17 : vector<10x64xf32>
    %c0_5 = arith.constant 0 : index
    %c0_6 = arith.constant 0 : index
    %19 = vector.load %arg3[%c0_5, %c0_6] : memref<1x64xf32, #tpu.memory_space<vmem>>, vector<1x64xf32>
    %20 = vector.broadcast %19 : vector<1x64xf32> to vector<10x64xf32>
    %21 = arith.mulf %18, %20 : vector<10x64xf32>
    %c0_7 = arith.constant 0 : index
    %c0_8 = arith.constant 0 : index
    %22 = vector.load %arg4[%c0_7, %c0_8] : memref<1x64xf32, #tpu.memory_space<vmem>>, vector<1x64xf32>
    %23 = vector.broadcast %22 : vector<1x64xf32> to vector<10x64xf32>
    %24 = arith.addf %21, %23 : vector<10x64xf32>
    %25 = arith.truncf %24 : vector<10x64xf32> to vector<10x64xbf16>
    %c0_9 = arith.constant 0 : index
    %c0_10 = arith.constant 0 : index
    %26 = vector.load %arg5[%c0_9, %c0_10] : memref<64x256xbf16, #tpu.memory_space<vmem>>, vector<64x256xbf16>
    %cst_11 = arith.constant dense<0.000000e+00> : vector<10x256xf32>
    %27 = tpu.matmul %25, %26, %cst_11 {dimension_numbers = #tpu.dot_dimension_numbers<[1], [0], [0], [1], [0, 0, 1, 1], [], []>} : vector<10x64xbf16>, vector<64x256xbf16>, vector<10x256xf32> -> vector<10x256xf32>
    %c0_12 = arith.constant 0 : index
    %c0_13 = arith.constant 0 : index
    %28 = vector.load %arg6[%c0_12, %c0_13] : memref<1x256xf32, #tpu.memory_space<vmem>>, vector<1x256xf32>
    %29 = vector.broadcast %28 : vector<1x256xf32> to vector<10x256xf32>
    %30 = arith.addf %27, %29 : vector<10x256xf32>
    %cst_14 = arith.constant 1.702000e+00 : f32
    %31 = vector.broadcast %cst_14 : f32 to vector<10x256xf32>
    %32 = arith.mulf %31, %30 : vector<10x256xf32>
    %33 = arith.negf %32 : vector<10x256xf32>
    %34 = math.exp %33 : vector<10x256xf32>
    %cst_15 = arith.constant 1.000000e+00 : f32
    %35 = vector.broadcast %cst_15 : f32 to vector<10x256xf32>
    %36 = arith.addf %35, %34 : vector<10x256xf32>
    %37 = arith.divf %35, %36 : vector<10x256xf32>
    %38 = arith.mulf %30, %37 : vector<10x256xf32>
    %c0_16 = arith.constant 0 : index
    %c0_17 = arith.constant 0 : index
    %39 = vector.load %arg7[%c0_16, %c0_17] : memref<10x256xf32, #tpu.memory_space<vmem>>, vector<10x256xf32>
    tpu.vector_store %arg7[%c0_16, %c0_17], %38 {strides = array<i32>} : memref<10x256xf32, #tpu.memory_space<vmem>>, vector<10x256xf32>,
    return
  }
  func.func @transform_0(%arg0: i32, %arg1: i32) -> (i32, i32) {
    %c0_i32 = arith.constant 0 : i32
    %c0_i32_0 = arith.constant 0 : i32
    return %arg0, %c0_i32 : i32, i32
  }
  func.func @transform_1(%arg0: i32, %arg1: i32) -> (i32, i32) {
    %c0_i32 = arith.constant 0 : i32
    %c0_i32_0 = arith.constant 0 : i32
    %c0_i32_1 = arith.constant 0 : i32
    return %c0_i32, %c0_i32_0 : i32, i32
  }
  func.func @transform_2(%arg0: i32, %arg1: i32) -> (i32, i32) {
    %c0_i32 = arith.constant 0 : i32
    %c0_i32_0 = arith.constant 0 : i32
    %c0_i32_1 = arith.constant 0 : i32
    return %c0_i32, %c0_i32_0 : i32, i32
  }
  func.func @transform_3(%arg0: i32, %arg1: i32) -> (i32, i32) {
    %c0_i32 = arith.constant 0 : i32
    %c0_i32_0 = arith.constant 0 : i32
    return %c0_i32, %arg1 : i32, i32
  }
  func.func @transform_4(%arg0: i32, %arg1: i32) -> (i32, i32) {
    %c0_i32 = arith.constant 0 : i32
    %c0_i32_0 = arith.constant 0 : i32
    return %c0_i32, %arg1 : i32, i32
  }
  func.func @transform_5(%arg0: i32, %arg1: i32) -> (i32, i32) {
    %c0_i32 = arith.constant 0 : i32
    return %arg0, %arg1 : i32, i32
  }
}

module attributes {stable_mosaic.version = 11 : i64} {
  func.func @_matmul_kernel(%arg0: i32, %arg1: i32, %arg2: i32, %arg3: memref<10x256xf32, #tpu.memory_space<vmem>>, %arg4: memref<256x64xbf16, #tpu.memory_space<vmem>>, %arg5: memref<1x64xf32, #tpu.memory_space<vmem>>, %arg6: memref<10x64xf32, #tpu.memory_space<vmem>>, %arg7: memref<10x64xf32, #tpu.memory_space<vmem>>, %arg8: memref<10x64xf32, #tpu.memory_space<vmem>>) attributes {dimension_semantics = [#tpu.dimension_semantics<parallel>, #tpu.dimension_semantics<parallel>, #tpu.dimension_semantics<arbitrary>], iteration_bounds = array<i64: 1, 1, 1>, scalar_prefetch = 0 : i64, scratch_operands = 1 : i64, tpu.core_type = #tpu.core_type<tc>, window_params = [{transform_indices = @transform_0, window_bounds = array<i64: 10, 256>}, {transform_indices = @transform_1, window_bounds = array<i64: 256, 64>}, {transform_indices = @transform_2, window_bounds = array<i64: 1, 64>}, {transform_indices = @transform_3, window_bounds = array<i64: 10, 64>}, {transform_indices = @transform_4, window_bounds = array<i64: 10, 64>}]} {
    %c0_i32 = arith.constant 0 : i32
    %0 = arith.cmpi eq, %arg2, %c0_i32 : i32
    %1 = arith.extui %0 : i1 to i32
    %c0_i32_0 = arith.constant 0 : i32
    %2 = arith.cmpi ne, %1, %c0_i32_0 : i32
    scf.if %2 {
      %cst_10 = arith.constant 0.000000e+00 : f32
      %13 = vector.broadcast %cst_10 : f32 to vector<10x64xf32>
      %c0_11 = arith.constant 0 : index
      %c0_12 = arith.constant 0 : index
      %14 = vector.load %arg8[%c0_11, %c0_12] : memref<10x64xf32, #tpu.memory_space<vmem>>, vector<10x64xf32>
      tpu.vector_store %arg8[%c0_11, %c0_12], %13 {strides = array<i32>} : memref<10x64xf32, #tpu.memory_space<vmem>>, vector<10x64xf32>,
    } else {
    }
    %c0 = arith.constant 0 : index
    %c0_1 = arith.constant 0 : index
    %3 = vector.load %arg8[%c0, %c0_1] : memref<10x64xf32, #tpu.memory_space<vmem>>, vector<10x64xf32>
    %c0_2 = arith.constant 0 : index
    %c0_3 = arith.constant 0 : index
    %4 = vector.load %arg3[%c0_2, %c0_3] : memref<10x256xf32, #tpu.memory_space<vmem>>, vector<10x256xf32>
    %5 = arith.truncf %4 : vector<10x256xf32> to vector<10x256xbf16>
    %c0_4 = arith.constant 0 : index
    %c0_5 = arith.constant 0 : index
    %6 = vector.load %arg4[%c0_4, %c0_5] : memref<256x64xbf16, #tpu.memory_space<vmem>>, vector<256x64xbf16>
    %cst = arith.constant dense<0.000000e+00> : vector<10x64xf32>
    %7 = tpu.matmul %5, %6, %cst {dimension_numbers = #tpu.dot_dimension_numbers<[1], [0], [0], [1], [0, 0, 1, 1], [], []>} : vector<10x256xbf16>, vector<256x64xbf16>, vector<10x64xf32> -> vector<10x64xf32>
    %8 = arith.addf %3, %7 : vector<10x64xf32>
    %c0_6 = arith.constant 0 : index
    %c0_7 = arith.constant 0 : index
    %9 = vector.load %arg8[%c0_6, %c0_7] : memref<10x64xf32, #tpu.memory_space<vmem>>, vector<10x64xf32>
    tpu.vector_store %arg8[%c0_6, %c0_7], %8 {strides = array<i32>} : memref<10x64xf32, #tpu.memory_space<vmem>>, vector<10x64xf32>,
    %c0_i32_8 = arith.constant 0 : i32
    %10 = arith.cmpi eq, %arg2, %c0_i32_8 : i32
    %11 = arith.extui %10 : i1 to i32
    %c0_i32_9 = arith.constant 0 : i32
    %12 = arith.cmpi ne, %11, %c0_i32_9 : i32
    scf.if %12 {
      %c0_10 = arith.constant 0 : index
      %c0_11 = arith.constant 0 : index
      %13 = vector.load %arg8[%c0_10, %c0_11] : memref<10x64xf32, #tpu.memory_space<vmem>>, vector<10x64xf32>
      %c0_12 = arith.constant 0 : index
      %c0_13 = arith.constant 0 : index
      %14 = vector.load %arg5[%c0_12, %c0_13] : memref<1x64xf32, #tpu.memory_space<vmem>>, vector<1x64xf32>
      %15 = vector.broadcast %14 : vector<1x64xf32> to vector<10x64xf32>
      %16 = arith.addf %13, %15 : vector<10x64xf32>
      %c0_14 = arith.constant 0 : index
      %c0_15 = arith.constant 0 : index
      %17 = vector.load %arg6[%c0_14, %c0_15] : memref<10x64xf32, #tpu.memory_space<vmem>>, vector<10x64xf32>
      %18 = arith.addf %16, %17 : vector<10x64xf32>
      %c0_16 = arith.constant 0 : index
      %c0_17 = arith.constant 0 : index
      %19 = vector.load %arg7[%c0_16, %c0_17] : memref<10x64xf32, #tpu.memory_space<vmem>>, vector<10x64xf32>
      tpu.vector_store %arg7[%c0_16, %c0_17], %18 {strides = array<i32>} : memref<10x64xf32, #tpu.memory_space<vmem>>, vector<10x64xf32>,
    } else {
    }
    return
  }
  func.func @transform_0(%arg0: i32, %arg1: i32, %arg2: i32) -> (i32, i32) {
    %c0_i32 = arith.constant 0 : i32
    return %arg0, %arg2 : i32, i32
  }
  func.func @transform_1(%arg0: i32, %arg1: i32, %arg2: i32) -> (i32, i32) {
    %c0_i32 = arith.constant 0 : i32
    return %arg2, %arg1 : i32, i32
  }
  func.func @transform_2(%arg0: i32, %arg1: i32, %arg2: i32) -> (i32, i32) {
    %c0_i32 = arith.constant 0 : i32
    %c0_i32_0 = arith.constant 0 : i32
    return %c0_i32, %arg1 : i32, i32
  }
  func.func @transform_3(%arg0: i32, %arg1: i32, %arg2: i32) -> (i32, i32) {
    %c0_i32 = arith.constant 0 : i32
    return %arg0, %arg1 : i32, i32
  }
  func.func @transform_4(%arg0: i32, %arg1: i32, %arg2: i32) -> (i32, i32) {
    %c0_i32 = arith.constant 0 : i32
    return %arg0, %arg1 : i32, i32
  }
}

module attributes {stable_mosaic.version = 11 : i64} {
  func.func @_ln_proj_norm_kernel(%arg0: i32, %arg1: memref<2x64xf32, #tpu.memory_space<vmem>>, %arg2: memref<1x64xf32, #tpu.memory_space<vmem>>, %arg3: memref<1x64xf32, #tpu.memory_space<vmem>>, %arg4: memref<64x64xbf16, #tpu.memory_space<vmem>>, %arg5: memref<2x64xf32, #tpu.memory_space<vmem>>) attributes {dimension_semantics = [#tpu.dimension_semantics<arbitrary>], iteration_bounds = array<i64: 1>, scalar_prefetch = 0 : i64, scratch_operands = 0 : i64, tpu.core_type = #tpu.core_type<tc>, window_params = [{pipeline_mode = #tpu.pipeline_mode<synchronous>, transform_indices = @transform_0, window_bounds = array<i64: 2, 64>}, {pipeline_mode = #tpu.pipeline_mode<synchronous>, transform_indices = @transform_1, window_bounds = array<i64: 1, 64>}, {pipeline_mode = #tpu.pipeline_mode<synchronous>, transform_indices = @transform_2, window_bounds = array<i64: 1, 64>}, {pipeline_mode = #tpu.pipeline_mode<synchronous>, transform_indices = @transform_3, window_bounds = array<i64: 64, 64>}, {pipeline_mode = #tpu.pipeline_mode<synchronous>, transform_indices = @transform_4, window_bounds = array<i64: 2, 64>}]} {
    %c0 = arith.constant 0 : index
    %c0_0 = arith.constant 0 : index
    %0 = vector.load %arg1[%c0, %c0_0] : memref<2x64xf32, #tpu.memory_space<vmem>>, vector<2x64xf32>
    %cst = arith.constant dense<0.000000e+00> : vector<2xf32>
    %1 = vector.multi_reduction <add>, %0, %cst [1] : vector<2x64xf32> to vector<2xf32>
    %2 = vector.shape_cast %1 : vector<2xf32> to vector<2x1xf32>
    %cst_1 = arith.constant 6.400000e+01 : f32
    %3 = vector.broadcast %cst_1 : f32 to vector<2x1xf32>
    %4 = arith.divf %2, %3 : vector<2x1xf32>
    %5 = vector.broadcast %4 : vector<2x1xf32> to vector<2x64xf32>
    %6 = arith.subf %0, %5 : vector<2x64xf32>
    %7 = arith.mulf %6, %6 : vector<2x64xf32>
    %cst_2 = arith.constant dense<0.000000e+00> : vector<2xf32>
    %8 = vector.multi_reduction <add>, %7, %cst_2 [1] : vector<2x64xf32> to vector<2xf32>
    %9 = vector.shape_cast %8 : vector<2xf32> to vector<2x1xf32>
    %cst_3 = arith.constant 6.400000e+01 : f32
    %10 = vector.broadcast %cst_3 : f32 to vector<2x1xf32>
    %11 = arith.divf %9, %10 : vector<2x1xf32>
    %12 = vector.broadcast %4 : vector<2x1xf32> to vector<2x64xf32>
    %13 = arith.subf %0, %12 : vector<2x64xf32>
    %cst_4 = arith.constant 9.99999974E-6 : f32
    %14 = vector.broadcast %cst_4 : f32 to vector<2x1xf32>
    %15 = arith.addf %11, %14 : vector<2x1xf32>
    %16 = math.rsqrt %15 : vector<2x1xf32>
    %17 = vector.broadcast %16 : vector<2x1xf32> to vector<2x64xf32>
    %18 = arith.mulf %13, %17 : vector<2x64xf32>
    %c0_5 = arith.constant 0 : index
    %c0_6 = arith.constant 0 : index
    %19 = vector.load %arg2[%c0_5, %c0_6] : memref<1x64xf32, #tpu.memory_space<vmem>>, vector<1x64xf32>
    %20 = vector.broadcast %19 : vector<1x64xf32> to vector<2x64xf32>
    %21 = arith.mulf %18, %20 : vector<2x64xf32>
    %c0_7 = arith.constant 0 : index
    %c0_8 = arith.constant 0 : index
    %22 = vector.load %arg3[%c0_7, %c0_8] : memref<1x64xf32, #tpu.memory_space<vmem>>, vector<1x64xf32>
    %23 = vector.broadcast %22 : vector<1x64xf32> to vector<2x64xf32>
    %24 = arith.addf %21, %23 : vector<2x64xf32>
    %25 = arith.truncf %24 : vector<2x64xf32> to vector<2x64xbf16>
    %c0_9 = arith.constant 0 : index
    %c0_10 = arith.constant 0 : index
    %26 = vector.load %arg4[%c0_9, %c0_10] : memref<64x64xbf16, #tpu.memory_space<vmem>>, vector<64x64xbf16>
    %cst_11 = arith.constant dense<0.000000e+00> : vector<2x64xf32>
    %27 = tpu.matmul %25, %26, %cst_11 {dimension_numbers = #tpu.dot_dimension_numbers<[1], [0], [0], [1], [0, 0, 1, 1], [], []>} : vector<2x64xbf16>, vector<64x64xbf16>, vector<2x64xf32> -> vector<2x64xf32>
    %28 = arith.mulf %27, %27 : vector<2x64xf32>
    %cst_12 = arith.constant dense<0.000000e+00> : vector<2xf32>
    %29 = vector.multi_reduction <add>, %28, %cst_12 [1] : vector<2x64xf32> to vector<2xf32>
    %30 = vector.shape_cast %29 : vector<2xf32> to vector<2x1xf32>
    %cst_13 = arith.constant 9.99999996E-13 : f32
    %31 = vector.broadcast %cst_13 : f32 to vector<2x1xf32>
    %32 = arith.addf %30, %31 : vector<2x1xf32>
    %33 = math.rsqrt %32 : vector<2x1xf32>
    %34 = vector.broadcast %33 : vector<2x1xf32> to vector<2x64xf32>
    %35 = arith.mulf %27, %34 : vector<2x64xf32>
    %c0_14 = arith.constant 0 : index
    %c0_15 = arith.constant 0 : index
    %36 = vector.load %arg5[%c0_14, %c0_15] : memref<2x64xf32, #tpu.memory_space<vmem>>, vector<2x64xf32>
    tpu.vector_store %arg5[%c0_14, %c0_15], %35 {strides = array<i32>} : memref<2x64xf32, #tpu.memory_space<vmem>>, vector<2x64xf32>,
    return
  }
  func.func @transform_0(%arg0: i32) -> (i32, i32) {
    %c0_i32 = arith.constant 0 : i32
    %c0_i32_0 = arith.constant 0 : i32
    %c0_i32_1 = arith.constant 0 : i32
    return %c0_i32, %c0_i32_0 : i32, i32
  }
  func.func @transform_1(%arg0: i32) -> (i32, i32) {
    %c0_i32 = arith.constant 0 : i32
    %c0_i32_0 = arith.constant 0 : i32
    %c0_i32_1 = arith.constant 0 : i32
    return %c0_i32, %c0_i32_0 : i32, i32
  }
  func.func @transform_2(%arg0: i32) -> (i32, i32) {
    %c0_i32 = arith.constant 0 : i32
    %c0_i32_0 = arith.constant 0 : i32
    %c0_i32_1 = arith.constant 0 : i32
    return %c0_i32, %c0_i32_0 : i32, i32
  }
  func.func @transform_3(%arg0: i32) -> (i32, i32) {
    %c0_i32 = arith.constant 0 : i32
    %c0_i32_0 = arith.constant 0 : i32
    %c0_i32_1 = arith.constant 0 : i32
    return %c0_i32, %c0_i32_0 : i32, i32
  }
  func.func @transform_4(%arg0: i32) -> (i32, i32) {
    %c0_i32 = arith.constant 0 : i32
    %c0_i32_0 = arith.constant 0 : i32
    %c0_i32_1 = arith.constant 0 : i32
    return %c0_i32, %c0_i32_0 : i32, i32
  }
}

module attributes {stable_mosaic.version = 11 : i64} {
  func.func @_matmul_kernel(%arg0: i32, %arg1: i32, %arg2: i32, %arg3: memref<48x64xf32, #tpu.memory_space<vmem>>, %arg4: memref<64x64xbf16, #tpu.memory_space<vmem>>, %arg5: memref<1x64xf32, #tpu.memory_space<vmem>>, %arg6: memref<48x64xf32, #tpu.memory_space<vmem>>, %arg7: memref<48x64xf32, #tpu.memory_space<vmem>>, %arg8: memref<48x64xf32, #tpu.memory_space<vmem>>) attributes {dimension_semantics = [#tpu.dimension_semantics<parallel>, #tpu.dimension_semantics<parallel>, #tpu.dimension_semantics<arbitrary>], iteration_bounds = array<i64: 1, 1, 1>, scalar_prefetch = 0 : i64, scratch_operands = 1 : i64, tpu.core_type = #tpu.core_type<tc>, window_params = [{transform_indices = @transform_0, window_bounds = array<i64: 48, 64>}, {transform_indices = @transform_1, window_bounds = array<i64: 64, 64>}, {transform_indices = @transform_2, window_bounds = array<i64: 1, 64>}, {transform_indices = @transform_3, window_bounds = array<i64: 48, 64>}, {transform_indices = @transform_4, window_bounds = array<i64: 48, 64>}]} {
    %c0_i32 = arith.constant 0 : i32
    %0 = arith.cmpi eq, %arg2, %c0_i32 : i32
    %1 = arith.extui %0 : i1 to i32
    %c0_i32_0 = arith.constant 0 : i32
    %2 = arith.cmpi ne, %1, %c0_i32_0 : i32
    scf.if %2 {
      %cst_10 = arith.constant 0.000000e+00 : f32
      %13 = vector.broadcast %cst_10 : f32 to vector<48x64xf32>
      %c0_11 = arith.constant 0 : index
      %c0_12 = arith.constant 0 : index
      %14 = vector.load %arg8[%c0_11, %c0_12] : memref<48x64xf32, #tpu.memory_space<vmem>>, vector<48x64xf32>
      tpu.vector_store %arg8[%c0_11, %c0_12], %13 {strides = array<i32>} : memref<48x64xf32, #tpu.memory_space<vmem>>, vector<48x64xf32>,
    } else {
    }
    %c0 = arith.constant 0 : index
    %c0_1 = arith.constant 0 : index
    %3 = vector.load %arg8[%c0, %c0_1] : memref<48x64xf32, #tpu.memory_space<vmem>>, vector<48x64xf32>
    %c0_2 = arith.constant 0 : index
    %c0_3 = arith.constant 0 : index
    %4 = vector.load %arg3[%c0_2, %c0_3] : memref<48x64xf32, #tpu.memory_space<vmem>>, vector<48x64xf32>
    %5 = arith.truncf %4 : vector<48x64xf32> to vector<48x64xbf16>
    %c0_4 = arith.constant 0 : index
    %c0_5 = arith.constant 0 : index
    %6 = vector.load %arg4[%c0_4, %c0_5] : memref<64x64xbf16, #tpu.memory_space<vmem>>, vector<64x64xbf16>
    %cst = arith.constant dense<0.000000e+00> : vector<48x64xf32>
    %7 = tpu.matmul %5, %6, %cst {dimension_numbers = #tpu.dot_dimension_numbers<[1], [0], [0], [1], [0, 0, 1, 1], [], []>} : vector<48x64xbf16>, vector<64x64xbf16>, vector<48x64xf32> -> vector<48x64xf32>
    %8 = arith.addf %3, %7 : vector<48x64xf32>
    %c0_6 = arith.constant 0 : index
    %c0_7 = arith.constant 0 : index
    %9 = vector.load %arg8[%c0_6, %c0_7] : memref<48x64xf32, #tpu.memory_space<vmem>>, vector<48x64xf32>
    tpu.vector_store %arg8[%c0_6, %c0_7], %8 {strides = array<i32>} : memref<48x64xf32, #tpu.memory_space<vmem>>, vector<48x64xf32>,
    %c0_i32_8 = arith.constant 0 : i32
    %10 = arith.cmpi eq, %arg2, %c0_i32_8 : i32
    %11 = arith.extui %10 : i1 to i32
    %c0_i32_9 = arith.constant 0 : i32
    %12 = arith.cmpi ne, %11, %c0_i32_9 : i32
    scf.if %12 {
      %c0_10 = arith.constant 0 : index
      %c0_11 = arith.constant 0 : index
      %13 = vector.load %arg8[%c0_10, %c0_11] : memref<48x64xf32, #tpu.memory_space<vmem>>, vector<48x64xf32>
      %c0_12 = arith.constant 0 : index
      %c0_13 = arith.constant 0 : index
      %14 = vector.load %arg5[%c0_12, %c0_13] : memref<1x64xf32, #tpu.memory_space<vmem>>, vector<1x64xf32>
      %15 = vector.broadcast %14 : vector<1x64xf32> to vector<48x64xf32>
      %16 = arith.addf %13, %15 : vector<48x64xf32>
      %c0_14 = arith.constant 0 : index
      %c0_15 = arith.constant 0 : index
      %17 = vector.load %arg6[%c0_14, %c0_15] : memref<48x64xf32, #tpu.memory_space<vmem>>, vector<48x64xf32>
      %18 = arith.addf %16, %17 : vector<48x64xf32>
      %c0_16 = arith.constant 0 : index
      %c0_17 = arith.constant 0 : index
      %19 = vector.load %arg7[%c0_16, %c0_17] : memref<48x64xf32, #tpu.memory_space<vmem>>, vector<48x64xf32>
      tpu.vector_store %arg7[%c0_16, %c0_17], %18 {strides = array<i32>} : memref<48x64xf32, #tpu.memory_space<vmem>>, vector<48x64xf32>,
    } else {
    }
    return
  }
  func.func @transform_0(%arg0: i32, %arg1: i32, %arg2: i32) -> (i32, i32) {
    %c0_i32 = arith.constant 0 : i32
    return %arg0, %arg2 : i32, i32
  }
  func.func @transform_1(%arg0: i32, %arg1: i32, %arg2: i32) -> (i32, i32) {
    %c0_i32 = arith.constant 0 : i32
    return %arg2, %arg1 : i32, i32
  }
  func.func @transform_2(%arg0: i32, %arg1: i32, %arg2: i32) -> (i32, i32) {
    %c0_i32 = arith.constant 0 : i32
    %c0_i32_0 = arith.constant 0 : i32
    return %c0_i32, %arg1 : i32, i32
  }
  func.func @transform_3(%arg0: i32, %arg1: i32, %arg2: i32) -> (i32, i32) {
    %c0_i32 = arith.constant 0 : i32
    return %arg0, %arg1 : i32, i32
  }
  func.func @transform_4(%arg0: i32, %arg1: i32, %arg2: i32) -> (i32, i32) {
    %c0_i32 = arith.constant 0 : i32
    return %arg0, %arg1 : i32, i32
  }
}

module attributes {stable_mosaic.version = 11 : i64} {
  func.func @_attn_kernel(%arg0: i32, %arg1: memref<1x16x192xf32, #tpu.memory_space<vmem>>, %arg2: memref<1x16x64xf32, #tpu.memory_space<vmem>>) attributes {dimension_semantics = [#tpu.dimension_semantics<parallel>], iteration_bounds = array<i64: 3>, scalar_prefetch = 0 : i64, scratch_operands = 0 : i64, tpu.core_type = #tpu.core_type<tc>, window_params = [{transform_indices = @transform_0, window_bounds = array<i64: 1, 16, 192>}, {transform_indices = @transform_1, window_bounds = array<i64: 1, 16, 64>}]} {
    %c0 = arith.constant 0 : index
    %c0_0 = arith.constant 0 : index
    %c0_1 = arith.constant 0 : index
    %0 = vector.load %arg1[%c0, %c0_0, %c0_1] : memref<1x16x192xf32, #tpu.memory_space<vmem>>, vector<1x16x192xf32>
    %1 = vector.shape_cast %0 : vector<1x16x192xf32> to vector<16x192xf32>
    %2 = tpu.iota {dimensions = array<i32: 0>} : vector<16x16xi32>
    %3 = tpu.iota {dimensions = array<i32: 1>} : vector<16x16xi32>
    %4 = arith.cmpi sle, %3, %2 : vector<16x16xi32>
    %cst = arith.constant 0.000000e+00 : f32
    %cst_2 = arith.constant -1.000000e+09 : f32
    %5 = vector.broadcast %cst : f32 to vector<16x16xf32>
    %6 = vector.broadcast %cst_2 : f32 to vector<16x16xf32>
    %7 = arith.select %4, %5, %6 : vector<16x16xi1>, vector<16x16xf32>
    %8 = vector.extract_strided_slice %1 {offsets = [0, 0], sizes = [16, 16], strides = [1, 1]} : vector<16x192xf32> to vector<16x16xf32>
    %9 = vector.extract_strided_slice %1 {offsets = [0, 64], sizes = [16, 16], strides = [1, 1]} : vector<16x192xf32> to vector<16x16xf32>
    %10 = vector.extract_strided_slice %1 {offsets = [0, 128], sizes = [16, 16], strides = [1, 1]} : vector<16x192xf32> to vector<16x16xf32>
    %11 = arith.truncf %8 : vector<16x16xf32> to vector<16x16xbf16>
    %12 = arith.truncf %9 : vector<16x16xf32> to vector<16x16xbf16>
    %cst_3 = arith.constant dense<0.000000e+00> : vector<16x16xf32>
    %13 = tpu.matmul %11, %12, %cst_3 {dimension_numbers = #tpu.dot_dimension_numbers<[1], [1], [0], [0], [0, 0, 1, 0], [], []>} : vector<16x16xbf16>, vector<16x16xbf16>, vector<16x16xf32> -> vector<16x16xf32>
    %cst_4 = arith.constant 2.500000e-01 : f32
    %14 = vector.broadcast %cst_4 : f32 to vector<16x16xf32>
    %15 = arith.mulf %13, %14 : vector<16x16xf32>
    %16 = arith.addf %15, %7 : vector<16x16xf32>
    %cst_5 = arith.constant dense<0xFF800000> : vector<16xf32>
    %17 = vector.multi_reduction <maximumf>, %16, %cst_5 [1] : vector<16x16xf32> to vector<16xf32>
    %18 = vector.shape_cast %17 : vector<16xf32> to vector<16x1xf32>
    %19 = vector.broadcast %18 : vector<16x1xf32> to vector<16x16xf32>
    %20 = arith.subf %16, %19 : vector<16x16xf32>
    %21 = math.exp %20 : vector<16x16xf32>
    %cst_6 = arith.constant dense<0.000000e+00> : vector<16xf32>
    %22 = vector.multi_reduction <add>, %21, %cst_6 [1] : vector<16x16xf32> to vector<16xf32>
    %23 = vector.shape_cast %22 : vector<16xf32> to vector<16x1xf32>
    %24 = tpu.reciprocal %23 {approx = true} : vector<16x1xf32> -> vector<16x1xf32>
    %25 = vector.broadcast %24 : vector<16x1xf32> to vector<16x16xf32>
    %26 = arith.mulf %21, %25 : vector<16x16xf32>
    %27 = arith.truncf %26 : vector<16x16xf32> to vector<16x16xbf16>
    %28 = arith.truncf %10 : vector<16x16xf32> to vector<16x16xbf16>
    %cst_7 = arith.constant dense<0.000000e+00> : vector<16x16xf32>
    %29 = tpu.matmul %27, %28, %cst_7 {dimension_numbers = #tpu.dot_dimension_numbers<[1], [0], [0], [1], [0, 0, 1, 1], [], []>} : vector<16x16xbf16>, vector<16x16xbf16>, vector<16x16xf32> -> vector<16x16xf32>
    %30 = vector.extract_strided_slice %1 {offsets = [0, 16], sizes = [16, 16], strides = [1, 1]} : vector<16x192xf32> to vector<16x16xf32>
    %31 = vector.extract_strided_slice %1 {offsets = [0, 80], sizes = [16, 16], strides = [1, 1]} : vector<16x192xf32> to vector<16x16xf32>
    %32 = vector.extract_strided_slice %1 {offsets = [0, 144], sizes = [16, 16], strides = [1, 1]} : vector<16x192xf32> to vector<16x16xf32>
    %33 = arith.truncf %30 : vector<16x16xf32> to vector<16x16xbf16>
    %34 = arith.truncf %31 : vector<16x16xf32> to vector<16x16xbf16>
    %cst_8 = arith.constant dense<0.000000e+00> : vector<16x16xf32>
    %35 = tpu.matmul %33, %34, %cst_8 {dimension_numbers = #tpu.dot_dimension_numbers<[1], [1], [0], [0], [0, 0, 1, 0], [], []>} : vector<16x16xbf16>, vector<16x16xbf16>, vector<16x16xf32> -> vector<16x16xf32>
    %cst_9 = arith.constant 2.500000e-01 : f32
    %36 = vector.broadcast %cst_9 : f32 to vector<16x16xf32>
    %37 = arith.mulf %35, %36 : vector<16x16xf32>
    %38 = arith.addf %37, %7 : vector<16x16xf32>
    %cst_10 = arith.constant dense<0xFF800000> : vector<16xf32>
    %39 = vector.multi_reduction <maximumf>, %38, %cst_10 [1] : vector<16x16xf32> to vector<16xf32>
    %40 = vector.shape_cast %39 : vector<16xf32> to vector<16x1xf32>
    %41 = vector.broadcast %40 : vector<16x1xf32> to vector<16x16xf32>
    %42 = arith.subf %38, %41 : vector<16x16xf32>
    %43 = math.exp %42 : vector<16x16xf32>
    %cst_11 = arith.constant dense<0.000000e+00> : vector<16xf32>
    %44 = vector.multi_reduction <add>, %43, %cst_11 [1] : vector<16x16xf32> to vector<16xf32>
    %45 = vector.shape_cast %44 : vector<16xf32> to vector<16x1xf32>
    %46 = tpu.reciprocal %45 {approx = true} : vector<16x1xf32> -> vector<16x1xf32>
    %47 = vector.broadcast %46 : vector<16x1xf32> to vector<16x16xf32>
    %48 = arith.mulf %43, %47 : vector<16x16xf32>
    %49 = arith.truncf %48 : vector<16x16xf32> to vector<16x16xbf16>
    %50 = arith.truncf %32 : vector<16x16xf32> to vector<16x16xbf16>
    %cst_12 = arith.constant dense<0.000000e+00> : vector<16x16xf32>
    %51 = tpu.matmul %49, %50, %cst_12 {dimension_numbers = #tpu.dot_dimension_numbers<[1], [0], [0], [1], [0, 0, 1, 1], [], []>} : vector<16x16xbf16>, vector<16x16xbf16>, vector<16x16xf32> -> vector<16x16xf32>
    %52 = vector.extract_strided_slice %1 {offsets = [0, 32], sizes = [16, 16], strides = [1, 1]} : vector<16x192xf32> to vector<16x16xf32>
    %53 = vector.extract_strided_slice %1 {offsets = [0, 96], sizes = [16, 16], strides = [1, 1]} : vector<16x192xf32> to vector<16x16xf32>
    %54 = vector.extract_strided_slice %1 {offsets = [0, 160], sizes = [16, 16], strides = [1, 1]} : vector<16x192xf32> to vector<16x16xf32>
    %55 = arith.truncf %52 : vector<16x16xf32> to vector<16x16xbf16>
    %56 = arith.truncf %53 : vector<16x16xf32> to vector<16x16xbf16>
    %cst_13 = arith.constant dense<0.000000e+00> : vector<16x16xf32>
    %57 = tpu.matmul %55, %56, %cst_13 {dimension_numbers = #tpu.dot_dimension_numbers<[1], [1], [0], [0], [0, 0, 1, 0], [], []>} : vector<16x16xbf16>, vector<16x16xbf16>, vector<16x16xf32> -> vector<16x16xf32>
    %cst_14 = arith.constant 2.500000e-01 : f32
    %58 = vector.broadcast %cst_14 : f32 to vector<16x16xf32>
    %59 = arith.mulf %57, %58 : vector<16x16xf32>
    %60 = arith.addf %59, %7 : vector<16x16xf32>
    %cst_15 = arith.constant dense<0xFF800000> : vector<16xf32>
    %61 = vector.multi_reduction <maximumf>, %60, %cst_15 [1] : vector<16x16xf32> to vector<16xf32>
    %62 = vector.shape_cast %61 : vector<16xf32> to vector<16x1xf32>
    %63 = vector.broadcast %62 : vector<16x1xf32> to vector<16x16xf32>
    %64 = arith.subf %60, %63 : vector<16x16xf32>
    %65 = math.exp %64 : vector<16x16xf32>
    %cst_16 = arith.constant dense<0.000000e+00> : vector<16xf32>
    %66 = vector.multi_reduction <add>, %65, %cst_16 [1] : vector<16x16xf32> to vector<16xf32>
    %67 = vector.shape_cast %66 : vector<16xf32> to vector<16x1xf32>
    %68 = tpu.reciprocal %67 {approx = true} : vector<16x1xf32> -> vector<16x1xf32>
    %69 = vector.broadcast %68 : vector<16x1xf32> to vector<16x16xf32>
    %70 = arith.mulf %65, %69 : vector<16x16xf32>
    %71 = arith.truncf %70 : vector<16x16xf32> to vector<16x16xbf16>
    %72 = arith.truncf %54 : vector<16x16xf32> to vector<16x16xbf16>
    %cst_17 = arith.constant dense<0.000000e+00> : vector<16x16xf32>
    %73 = tpu.matmul %71, %72, %cst_17 {dimension_numbers = #tpu.dot_dimension_numbers<[1], [0], [0], [1], [0, 0, 1, 1], [], []>} : vector<16x16xbf16>, vector<16x16xbf16>, vector<16x16xf32> -> vector<16x16xf32>
    %74 = vector.extract_strided_slice %1 {offsets = [0, 48], sizes = [16, 16], strides = [1, 1]} : vector<16x192xf32> to vector<16x16xf32>
    %75 = vector.extract_strided_slice %1 {offsets = [0, 112], sizes = [16, 16], strides = [1, 1]} : vector<16x192xf32> to vector<16x16xf32>
    %76 = vector.extract_strided_slice %1 {offsets = [0, 176], sizes = [16, 16], strides = [1, 1]} : vector<16x192xf32> to vector<16x16xf32>
    %77 = arith.truncf %74 : vector<16x16xf32> to vector<16x16xbf16>
    %78 = arith.truncf %75 : vector<16x16xf32> to vector<16x16xbf16>
    %cst_18 = arith.constant dense<0.000000e+00> : vector<16x16xf32>
    %79 = tpu.matmul %77, %78, %cst_18 {dimension_numbers = #tpu.dot_dimension_numbers<[1], [1], [0], [0], [0, 0, 1, 0], [], []>} : vector<16x16xbf16>, vector<16x16xbf16>, vector<16x16xf32> -> vector<16x16xf32>
    %cst_19 = arith.constant 2.500000e-01 : f32
    %80 = vector.broadcast %cst_19 : f32 to vector<16x16xf32>
    %81 = arith.mulf %79, %80 : vector<16x16xf32>
    %82 = arith.addf %81, %7 : vector<16x16xf32>
    %cst_20 = arith.constant dense<0xFF800000> : vector<16xf32>
    %83 = vector.multi_reduction <maximumf>, %82, %cst_20 [1] : vector<16x16xf32> to vector<16xf32>
    %84 = vector.shape_cast %83 : vector<16xf32> to vector<16x1xf32>
    %85 = vector.broadcast %84 : vector<16x1xf32> to vector<16x16xf32>
    %86 = arith.subf %82, %85 : vector<16x16xf32>
    %87 = math.exp %86 : vector<16x16xf32>
    %cst_21 = arith.constant dense<0.000000e+00> : vector<16xf32>
    %88 = vector.multi_reduction <add>, %87, %cst_21 [1] : vector<16x16xf32> to vector<16xf32>
    %89 = vector.shape_cast %88 : vector<16xf32> to vector<16x1xf32>
    %90 = tpu.reciprocal %89 {approx = true} : vector<16x1xf32> -> vector<16x1xf32>
    %91 = vector.broadcast %90 : vector<16x1xf32> to vector<16x16xf32>
    %92 = arith.mulf %87, %91 : vector<16x16xf32>
    %93 = arith.truncf %92 : vector<16x16xf32> to vector<16x16xbf16>
    %94 = arith.truncf %76 : vector<16x16xf32> to vector<16x16xbf16>
    %cst_22 = arith.constant dense<0.000000e+00> : vector<16x16xf32>
    %95 = tpu.matmul %93, %94, %cst_22 {dimension_numbers = #tpu.dot_dimension_numbers<[1], [0], [0], [1], [0, 0, 1, 1], [], []>} : vector<16x16xbf16>, vector<16x16xbf16>, vector<16x16xf32> -> vector<16x16xf32>
    %96 = tpu.concatenate %29, %51, %73, %95 in 1 : vector<16x16xf32>, vector<16x16xf32>, vector<16x16xf32>, vector<16x16xf32> -> vector<16x64xf32>
    %97 = vector.shape_cast %96 : vector<16x64xf32> to vector<1x16x64xf32>
    %c0_23 = arith.constant 0 : index
    %c0_24 = arith.constant 0 : index
    %c0_25 = arith.constant 0 : index
    %98 = vector.load %arg2[%c0_23, %c0_24, %c0_25] : memref<1x16x64xf32, #tpu.memory_space<vmem>>, vector<1x16x64xf32>
    tpu.vector_store %arg2[%c0_23, %c0_24, %c0_25], %97 {strides = array<i32>} : memref<1x16x64xf32, #tpu.memory_space<vmem>>, vector<1x16x64xf32>,
    return
  }
  func.func @transform_0(%arg0: i32) -> (i32, i32, i32) {
    %c0_i32 = arith.constant 0 : i32
    %c0_i32_0 = arith.constant 0 : i32
    %c0_i32_1 = arith.constant 0 : i32
    return %arg0, %c0_i32, %c0_i32_0 : i32, i32, i32
  }
  func.func @transform_1(%arg0: i32) -> (i32, i32, i32) {
    %c0_i32 = arith.constant 0 : i32
    %c0_i32_0 = arith.constant 0 : i32
    %c0_i32_1 = arith.constant 0 : i32
    return %arg0, %c0_i32, %c0_i32_0 : i32, i32, i32
  }
}

module attributes {stable_mosaic.version = 11 : i64} {
  func.func @_ln_matmul_kernel(%arg0: i32, %arg1: i32, %arg2: memref<48x64xf32, #tpu.memory_space<vmem>>, %arg3: memref<1x64xf32, #tpu.memory_space<vmem>>, %arg4: memref<1x64xf32, #tpu.memory_space<vmem>>, %arg5: memref<64x192xbf16, #tpu.memory_space<vmem>>, %arg6: memref<1x192xf32, #tpu.memory_space<vmem>>, %arg7: memref<48x192xf32, #tpu.memory_space<vmem>>) attributes {dimension_semantics = [#tpu.dimension_semantics<parallel>, #tpu.dimension_semantics<parallel>], iteration_bounds = array<i64: 1, 1>, scalar_prefetch = 0 : i64, scratch_operands = 0 : i64, tpu.core_type = #tpu.core_type<tc>, window_params = [{transform_indices = @transform_0, window_bounds = array<i64: 48, 64>}, {pipeline_mode = #tpu.pipeline_mode<synchronous>, transform_indices = @transform_1, window_bounds = array<i64: 1, 64>}, {pipeline_mode = #tpu.pipeline_mode<synchronous>, transform_indices = @transform_2, window_bounds = array<i64: 1, 64>}, {transform_indices = @transform_3, window_bounds = array<i64: 64, 192>}, {transform_indices = @transform_4, window_bounds = array<i64: 1, 192>}, {transform_indices = @transform_5, window_bounds = array<i64: 48, 192>}]} {
    %c0 = arith.constant 0 : index
    %c0_0 = arith.constant 0 : index
    %0 = vector.load %arg2[%c0, %c0_0] : memref<48x64xf32, #tpu.memory_space<vmem>>, vector<48x64xf32>
    %cst = arith.constant dense<0.000000e+00> : vector<48xf32>
    %1 = vector.multi_reduction <add>, %0, %cst [1] : vector<48x64xf32> to vector<48xf32>
    %2 = vector.shape_cast %1 : vector<48xf32> to vector<48x1xf32>
    %cst_1 = arith.constant 6.400000e+01 : f32
    %3 = vector.broadcast %cst_1 : f32 to vector<48x1xf32>
    %4 = arith.divf %2, %3 : vector<48x1xf32>
    %5 = vector.broadcast %4 : vector<48x1xf32> to vector<48x64xf32>
    %6 = arith.subf %0, %5 : vector<48x64xf32>
    %7 = arith.mulf %6, %6 : vector<48x64xf32>
    %cst_2 = arith.constant dense<0.000000e+00> : vector<48xf32>
    %8 = vector.multi_reduction <add>, %7, %cst_2 [1] : vector<48x64xf32> to vector<48xf32>
    %9 = vector.shape_cast %8 : vector<48xf32> to vector<48x1xf32>
    %cst_3 = arith.constant 6.400000e+01 : f32
    %10 = vector.broadcast %cst_3 : f32 to vector<48x1xf32>
    %11 = arith.divf %9, %10 : vector<48x1xf32>
    %12 = vector.broadcast %4 : vector<48x1xf32> to vector<48x64xf32>
    %13 = arith.subf %0, %12 : vector<48x64xf32>
    %cst_4 = arith.constant 9.99999974E-6 : f32
    %14 = vector.broadcast %cst_4 : f32 to vector<48x1xf32>
    %15 = arith.addf %11, %14 : vector<48x1xf32>
    %16 = math.rsqrt %15 : vector<48x1xf32>
    %17 = vector.broadcast %16 : vector<48x1xf32> to vector<48x64xf32>
    %18 = arith.mulf %13, %17 : vector<48x64xf32>
    %c0_5 = arith.constant 0 : index
    %c0_6 = arith.constant 0 : index
    %19 = vector.load %arg3[%c0_5, %c0_6] : memref<1x64xf32, #tpu.memory_space<vmem>>, vector<1x64xf32>
    %20 = vector.broadcast %19 : vector<1x64xf32> to vector<48x64xf32>
    %21 = arith.mulf %18, %20 : vector<48x64xf32>
    %c0_7 = arith.constant 0 : index
    %c0_8 = arith.constant 0 : index
    %22 = vector.load %arg4[%c0_7, %c0_8] : memref<1x64xf32, #tpu.memory_space<vmem>>, vector<1x64xf32>
    %23 = vector.broadcast %22 : vector<1x64xf32> to vector<48x64xf32>
    %24 = arith.addf %21, %23 : vector<48x64xf32>
    %25 = arith.truncf %24 : vector<48x64xf32> to vector<48x64xbf16>
    %c0_9 = arith.constant 0 : index
    %c0_10 = arith.constant 0 : index
    %26 = vector.load %arg5[%c0_9, %c0_10] : memref<64x192xbf16, #tpu.memory_space<vmem>>, vector<64x192xbf16>
    %cst_11 = arith.constant dense<0.000000e+00> : vector<48x192xf32>
    %27 = tpu.matmul %25, %26, %cst_11 {dimension_numbers = #tpu.dot_dimension_numbers<[1], [0], [0], [1], [0, 0, 1, 1], [], []>} : vector<48x64xbf16>, vector<64x192xbf16>, vector<48x192xf32> -> vector<48x192xf32>
    %c0_12 = arith.constant 0 : index
    %c0_13 = arith.constant 0 : index
    %28 = vector.load %arg6[%c0_12, %c0_13] : memref<1x192xf32, #tpu.memory_space<vmem>>, vector<1x192xf32>
    %29 = vector.broadcast %28 : vector<1x192xf32> to vector<48x192xf32>
    %30 = arith.addf %27, %29 : vector<48x192xf32>
    %c0_14 = arith.constant 0 : index
    %c0_15 = arith.constant 0 : index
    %31 = vector.load %arg7[%c0_14, %c0_15] : memref<48x192xf32, #tpu.memory_space<vmem>>, vector<48x192xf32>
    tpu.vector_store %arg7[%c0_14, %c0_15], %30 {strides = array<i32>} : memref<48x192xf32, #tpu.memory_space<vmem>>, vector<48x192xf32>,
    return
  }
  func.func @transform_0(%arg0: i32, %arg1: i32) -> (i32, i32) {
    %c0_i32 = arith.constant 0 : i32
    %c0_i32_0 = arith.constant 0 : i32
    return %arg0, %c0_i32 : i32, i32
  }
  func.func @transform_1(%arg0: i32, %arg1: i32) -> (i32, i32) {
    %c0_i32 = arith.constant 0 : i32
    %c0_i32_0 = arith.constant 0 : i32
    %c0_i32_1 = arith.constant 0 : i32
    return %c0_i32, %c0_i32_0 : i32, i32
  }
  func.func @transform_2(%arg0: i32, %arg1: i32) -> (i32, i32) {
    %c0_i32 = arith.constant 0 : i32
    %c0_i32_0 = arith.constant 0 : i32
    %c0_i32_1 = arith.constant 0 : i32
    return %c0_i32, %c0_i32_0 : i32, i32
  }
  func.func @transform_3(%arg0: i32, %arg1: i32) -> (i32, i32) {
    %c0_i32 = arith.constant 0 : i32
    %c0_i32_0 = arith.constant 0 : i32
    return %c0_i32, %arg1 : i32, i32
  }
  func.func @transform_4(%arg0: i32, %arg1: i32) -> (i32, i32) {
    %c0_i32 = arith.constant 0 : i32
    %c0_i32_0 = arith.constant 0 : i32
    return %c0_i32, %arg1 : i32, i32
  }
  func.func @transform_5(%arg0: i32, %arg1: i32) -> (i32, i32) {
    %c0_i32 = arith.constant 0 : i32
    return %arg0, %arg1 : i32, i32
  }
}

module attributes {stable_mosaic.version = 11 : i64} {
  func.func @_ln_matmul_kernel(%arg0: i32, %arg1: i32, %arg2: memref<48x64xf32, #tpu.memory_space<vmem>>, %arg3: memref<1x64xf32, #tpu.memory_space<vmem>>, %arg4: memref<1x64xf32, #tpu.memory_space<vmem>>, %arg5: memref<64x256xbf16, #tpu.memory_space<vmem>>, %arg6: memref<1x256xf32, #tpu.memory_space<vmem>>, %arg7: memref<48x256xf32, #tpu.memory_space<vmem>>) attributes {dimension_semantics = [#tpu.dimension_semantics<parallel>, #tpu.dimension_semantics<parallel>], iteration_bounds = array<i64: 1, 1>, scalar_prefetch = 0 : i64, scratch_operands = 0 : i64, tpu.core_type = #tpu.core_type<tc>, window_params = [{transform_indices = @transform_0, window_bounds = array<i64: 48, 64>}, {pipeline_mode = #tpu.pipeline_mode<synchronous>, transform_indices = @transform_1, window_bounds = array<i64: 1, 64>}, {pipeline_mode = #tpu.pipeline_mode<synchronous>, transform_indices = @transform_2, window_bounds = array<i64: 1, 64>}, {transform_indices = @transform_3, window_bounds = array<i64: 64, 256>}, {transform_indices = @transform_4, window_bounds = array<i64: 1, 256>}, {transform_indices = @transform_5, window_bounds = array<i64: 48, 256>}]} {
    %c0 = arith.constant 0 : index
    %c0_0 = arith.constant 0 : index
    %0 = vector.load %arg2[%c0, %c0_0] : memref<48x64xf32, #tpu.memory_space<vmem>>, vector<48x64xf32>
    %cst = arith.constant dense<0.000000e+00> : vector<48xf32>
    %1 = vector.multi_reduction <add>, %0, %cst [1] : vector<48x64xf32> to vector<48xf32>
    %2 = vector.shape_cast %1 : vector<48xf32> to vector<48x1xf32>
    %cst_1 = arith.constant 6.400000e+01 : f32
    %3 = vector.broadcast %cst_1 : f32 to vector<48x1xf32>
    %4 = arith.divf %2, %3 : vector<48x1xf32>
    %5 = vector.broadcast %4 : vector<48x1xf32> to vector<48x64xf32>
    %6 = arith.subf %0, %5 : vector<48x64xf32>
    %7 = arith.mulf %6, %6 : vector<48x64xf32>
    %cst_2 = arith.constant dense<0.000000e+00> : vector<48xf32>
    %8 = vector.multi_reduction <add>, %7, %cst_2 [1] : vector<48x64xf32> to vector<48xf32>
    %9 = vector.shape_cast %8 : vector<48xf32> to vector<48x1xf32>
    %cst_3 = arith.constant 6.400000e+01 : f32
    %10 = vector.broadcast %cst_3 : f32 to vector<48x1xf32>
    %11 = arith.divf %9, %10 : vector<48x1xf32>
    %12 = vector.broadcast %4 : vector<48x1xf32> to vector<48x64xf32>
    %13 = arith.subf %0, %12 : vector<48x64xf32>
    %cst_4 = arith.constant 9.99999974E-6 : f32
    %14 = vector.broadcast %cst_4 : f32 to vector<48x1xf32>
    %15 = arith.addf %11, %14 : vector<48x1xf32>
    %16 = math.rsqrt %15 : vector<48x1xf32>
    %17 = vector.broadcast %16 : vector<48x1xf32> to vector<48x64xf32>
    %18 = arith.mulf %13, %17 : vector<48x64xf32>
    %c0_5 = arith.constant 0 : index
    %c0_6 = arith.constant 0 : index
    %19 = vector.load %arg3[%c0_5, %c0_6] : memref<1x64xf32, #tpu.memory_space<vmem>>, vector<1x64xf32>
    %20 = vector.broadcast %19 : vector<1x64xf32> to vector<48x64xf32>
    %21 = arith.mulf %18, %20 : vector<48x64xf32>
    %c0_7 = arith.constant 0 : index
    %c0_8 = arith.constant 0 : index
    %22 = vector.load %arg4[%c0_7, %c0_8] : memref<1x64xf32, #tpu.memory_space<vmem>>, vector<1x64xf32>
    %23 = vector.broadcast %22 : vector<1x64xf32> to vector<48x64xf32>
    %24 = arith.addf %21, %23 : vector<48x64xf32>
    %25 = arith.truncf %24 : vector<48x64xf32> to vector<48x64xbf16>
    %c0_9 = arith.constant 0 : index
    %c0_10 = arith.constant 0 : index
    %26 = vector.load %arg5[%c0_9, %c0_10] : memref<64x256xbf16, #tpu.memory_space<vmem>>, vector<64x256xbf16>
    %cst_11 = arith.constant dense<0.000000e+00> : vector<48x256xf32>
    %27 = tpu.matmul %25, %26, %cst_11 {dimension_numbers = #tpu.dot_dimension_numbers<[1], [0], [0], [1], [0, 0, 1, 1], [], []>} : vector<48x64xbf16>, vector<64x256xbf16>, vector<48x256xf32> -> vector<48x256xf32>
    %c0_12 = arith.constant 0 : index
    %c0_13 = arith.constant 0 : index
    %28 = vector.load %arg6[%c0_12, %c0_13] : memref<1x256xf32, #tpu.memory_space<vmem>>, vector<1x256xf32>
    %29 = vector.broadcast %28 : vector<1x256xf32> to vector<48x256xf32>
    %30 = arith.addf %27, %29 : vector<48x256xf32>
    %cst_14 = arith.constant 1.702000e+00 : f32
    %31 = vector.broadcast %cst_14 : f32 to vector<48x256xf32>
    %32 = arith.mulf %31, %30 : vector<48x256xf32>
    %33 = arith.negf %32 : vector<48x256xf32>
    %34 = math.exp %33 : vector<48x256xf32>
    %cst_15 = arith.constant 1.000000e+00 : f32
    %35 = vector.broadcast %cst_15 : f32 to vector<48x256xf32>
    %36 = arith.addf %35, %34 : vector<48x256xf32>
    %37 = arith.divf %35, %36 : vector<48x256xf32>
    %38 = arith.mulf %30, %37 : vector<48x256xf32>
    %c0_16 = arith.constant 0 : index
    %c0_17 = arith.constant 0 : index
    %39 = vector.load %arg7[%c0_16, %c0_17] : memref<48x256xf32, #tpu.memory_space<vmem>>, vector<48x256xf32>
    tpu.vector_store %arg7[%c0_16, %c0_17], %38 {strides = array<i32>} : memref<48x256xf32, #tpu.memory_space<vmem>>, vector<48x256xf32>,
    return
  }
  func.func @transform_0(%arg0: i32, %arg1: i32) -> (i32, i32) {
    %c0_i32 = arith.constant 0 : i32
    %c0_i32_0 = arith.constant 0 : i32
    return %arg0, %c0_i32 : i32, i32
  }
  func.func @transform_1(%arg0: i32, %arg1: i32) -> (i32, i32) {
    %c0_i32 = arith.constant 0 : i32
    %c0_i32_0 = arith.constant 0 : i32
    %c0_i32_1 = arith.constant 0 : i32
    return %c0_i32, %c0_i32_0 : i32, i32
  }
  func.func @transform_2(%arg0: i32, %arg1: i32) -> (i32, i32) {
    %c0_i32 = arith.constant 0 : i32
    %c0_i32_0 = arith.constant 0 : i32
    %c0_i32_1 = arith.constant 0 : i32
    return %c0_i32, %c0_i32_0 : i32, i32
  }
  func.func @transform_3(%arg0: i32, %arg1: i32) -> (i32, i32) {
    %c0_i32 = arith.constant 0 : i32
    %c0_i32_0 = arith.constant 0 : i32
    return %c0_i32, %arg1 : i32, i32
  }
  func.func @transform_4(%arg0: i32, %arg1: i32) -> (i32, i32) {
    %c0_i32 = arith.constant 0 : i32
    %c0_i32_0 = arith.constant 0 : i32
    return %c0_i32, %arg1 : i32, i32
  }
  func.func @transform_5(%arg0: i32, %arg1: i32) -> (i32, i32) {
    %c0_i32 = arith.constant 0 : i32
    return %arg0, %arg1 : i32, i32
  }
}

module attributes {stable_mosaic.version = 11 : i64} {
  func.func @_matmul_kernel(%arg0: i32, %arg1: i32, %arg2: i32, %arg3: memref<48x256xf32, #tpu.memory_space<vmem>>, %arg4: memref<256x64xbf16, #tpu.memory_space<vmem>>, %arg5: memref<1x64xf32, #tpu.memory_space<vmem>>, %arg6: memref<48x64xf32, #tpu.memory_space<vmem>>, %arg7: memref<48x64xf32, #tpu.memory_space<vmem>>, %arg8: memref<48x64xf32, #tpu.memory_space<vmem>>) attributes {dimension_semantics = [#tpu.dimension_semantics<parallel>, #tpu.dimension_semantics<parallel>, #tpu.dimension_semantics<arbitrary>], iteration_bounds = array<i64: 1, 1, 1>, scalar_prefetch = 0 : i64, scratch_operands = 1 : i64, tpu.core_type = #tpu.core_type<tc>, window_params = [{transform_indices = @transform_0, window_bounds = array<i64: 48, 256>}, {transform_indices = @transform_1, window_bounds = array<i64: 256, 64>}, {transform_indices = @transform_2, window_bounds = array<i64: 1, 64>}, {transform_indices = @transform_3, window_bounds = array<i64: 48, 64>}, {transform_indices = @transform_4, window_bounds = array<i64: 48, 64>}]} {
    %c0_i32 = arith.constant 0 : i32
    %0 = arith.cmpi eq, %arg2, %c0_i32 : i32
    %1 = arith.extui %0 : i1 to i32
    %c0_i32_0 = arith.constant 0 : i32
    %2 = arith.cmpi ne, %1, %c0_i32_0 : i32
    scf.if %2 {
      %cst_10 = arith.constant 0.000000e+00 : f32
      %13 = vector.broadcast %cst_10 : f32 to vector<48x64xf32>
      %c0_11 = arith.constant 0 : index
      %c0_12 = arith.constant 0 : index
      %14 = vector.load %arg8[%c0_11, %c0_12] : memref<48x64xf32, #tpu.memory_space<vmem>>, vector<48x64xf32>
      tpu.vector_store %arg8[%c0_11, %c0_12], %13 {strides = array<i32>} : memref<48x64xf32, #tpu.memory_space<vmem>>, vector<48x64xf32>,
    } else {
    }
    %c0 = arith.constant 0 : index
    %c0_1 = arith.constant 0 : index
    %3 = vector.load %arg8[%c0, %c0_1] : memref<48x64xf32, #tpu.memory_space<vmem>>, vector<48x64xf32>
    %c0_2 = arith.constant 0 : index
    %c0_3 = arith.constant 0 : index
    %4 = vector.load %arg3[%c0_2, %c0_3] : memref<48x256xf32, #tpu.memory_space<vmem>>, vector<48x256xf32>
    %5 = arith.truncf %4 : vector<48x256xf32> to vector<48x256xbf16>
    %c0_4 = arith.constant 0 : index
    %c0_5 = arith.constant 0 : index
    %6 = vector.load %arg4[%c0_4, %c0_5] : memref<256x64xbf16, #tpu.memory_space<vmem>>, vector<256x64xbf16>
    %cst = arith.constant dense<0.000000e+00> : vector<48x64xf32>
    %7 = tpu.matmul %5, %6, %cst {dimension_numbers = #tpu.dot_dimension_numbers<[1], [0], [0], [1], [0, 0, 1, 1], [], []>} : vector<48x256xbf16>, vector<256x64xbf16>, vector<48x64xf32> -> vector<48x64xf32>
    %8 = arith.addf %3, %7 : vector<48x64xf32>
    %c0_6 = arith.constant 0 : index
    %c0_7 = arith.constant 0 : index
    %9 = vector.load %arg8[%c0_6, %c0_7] : memref<48x64xf32, #tpu.memory_space<vmem>>, vector<48x64xf32>
    tpu.vector_store %arg8[%c0_6, %c0_7], %8 {strides = array<i32>} : memref<48x64xf32, #tpu.memory_space<vmem>>, vector<48x64xf32>,
    %c0_i32_8 = arith.constant 0 : i32
    %10 = arith.cmpi eq, %arg2, %c0_i32_8 : i32
    %11 = arith.extui %10 : i1 to i32
    %c0_i32_9 = arith.constant 0 : i32
    %12 = arith.cmpi ne, %11, %c0_i32_9 : i32
    scf.if %12 {
      %c0_10 = arith.constant 0 : index
      %c0_11 = arith.constant 0 : index
      %13 = vector.load %arg8[%c0_10, %c0_11] : memref<48x64xf32, #tpu.memory_space<vmem>>, vector<48x64xf32>
      %c0_12 = arith.constant 0 : index
      %c0_13 = arith.constant 0 : index
      %14 = vector.load %arg5[%c0_12, %c0_13] : memref<1x64xf32, #tpu.memory_space<vmem>>, vector<1x64xf32>
      %15 = vector.broadcast %14 : vector<1x64xf32> to vector<48x64xf32>
      %16 = arith.addf %13, %15 : vector<48x64xf32>
      %c0_14 = arith.constant 0 : index
      %c0_15 = arith.constant 0 : index
      %17 = vector.load %arg6[%c0_14, %c0_15] : memref<48x64xf32, #tpu.memory_space<vmem>>, vector<48x64xf32>
      %18 = arith.addf %16, %17 : vector<48x64xf32>
      %c0_16 = arith.constant 0 : index
      %c0_17 = arith.constant 0 : index
      %19 = vector.load %arg7[%c0_16, %c0_17] : memref<48x64xf32, #tpu.memory_space<vmem>>, vector<48x64xf32>
      tpu.vector_store %arg7[%c0_16, %c0_17], %18 {strides = array<i32>} : memref<48x64xf32, #tpu.memory_space<vmem>>, vector<48x64xf32>,
    } else {
    }
    return
  }
  func.func @transform_0(%arg0: i32, %arg1: i32, %arg2: i32) -> (i32, i32) {
    %c0_i32 = arith.constant 0 : i32
    return %arg0, %arg2 : i32, i32
  }
  func.func @transform_1(%arg0: i32, %arg1: i32, %arg2: i32) -> (i32, i32) {
    %c0_i32 = arith.constant 0 : i32
    return %arg2, %arg1 : i32, i32
  }
  func.func @transform_2(%arg0: i32, %arg1: i32, %arg2: i32) -> (i32, i32) {
    %c0_i32 = arith.constant 0 : i32
    %c0_i32_0 = arith.constant 0 : i32
    return %c0_i32, %arg1 : i32, i32
  }
  func.func @transform_3(%arg0: i32, %arg1: i32, %arg2: i32) -> (i32, i32) {
    %c0_i32 = arith.constant 0 : i32
    return %arg0, %arg1 : i32, i32
  }
  func.func @transform_4(%arg0: i32, %arg1: i32, %arg2: i32) -> (i32, i32) {
    %c0_i32 = arith.constant 0 : i32
    return %arg0, %arg1 : i32, i32
  }
}

module attributes {stable_mosaic.version = 11 : i64} {
  func.func @_ln_proj_norm_kernel(%arg0: i32, %arg1: memref<3x64xf32, #tpu.memory_space<vmem>>, %arg2: memref<1x64xf32, #tpu.memory_space<vmem>>, %arg3: memref<1x64xf32, #tpu.memory_space<vmem>>, %arg4: memref<64x64xbf16, #tpu.memory_space<vmem>>, %arg5: memref<3x64xf32, #tpu.memory_space<vmem>>) attributes {dimension_semantics = [#tpu.dimension_semantics<arbitrary>], iteration_bounds = array<i64: 1>, scalar_prefetch = 0 : i64, scratch_operands = 0 : i64, tpu.core_type = #tpu.core_type<tc>, window_params = [{pipeline_mode = #tpu.pipeline_mode<synchronous>, transform_indices = @transform_0, window_bounds = array<i64: 3, 64>}, {pipeline_mode = #tpu.pipeline_mode<synchronous>, transform_indices = @transform_1, window_bounds = array<i64: 1, 64>}, {pipeline_mode = #tpu.pipeline_mode<synchronous>, transform_indices = @transform_2, window_bounds = array<i64: 1, 64>}, {pipeline_mode = #tpu.pipeline_mode<synchronous>, transform_indices = @transform_3, window_bounds = array<i64: 64, 64>}, {pipeline_mode = #tpu.pipeline_mode<synchronous>, transform_indices = @transform_4, window_bounds = array<i64: 3, 64>}]} {
    %c0 = arith.constant 0 : index
    %c0_0 = arith.constant 0 : index
    %0 = vector.load %arg1[%c0, %c0_0] : memref<3x64xf32, #tpu.memory_space<vmem>>, vector<3x64xf32>
    %cst = arith.constant dense<0.000000e+00> : vector<3xf32>
    %1 = vector.multi_reduction <add>, %0, %cst [1] : vector<3x64xf32> to vector<3xf32>
    %2 = vector.shape_cast %1 : vector<3xf32> to vector<3x1xf32>
    %cst_1 = arith.constant 6.400000e+01 : f32
    %3 = vector.broadcast %cst_1 : f32 to vector<3x1xf32>
    %4 = arith.divf %2, %3 : vector<3x1xf32>
    %5 = vector.broadcast %4 : vector<3x1xf32> to vector<3x64xf32>
    %6 = arith.subf %0, %5 : vector<3x64xf32>
    %7 = arith.mulf %6, %6 : vector<3x64xf32>
    %cst_2 = arith.constant dense<0.000000e+00> : vector<3xf32>
    %8 = vector.multi_reduction <add>, %7, %cst_2 [1] : vector<3x64xf32> to vector<3xf32>
    %9 = vector.shape_cast %8 : vector<3xf32> to vector<3x1xf32>
    %cst_3 = arith.constant 6.400000e+01 : f32
    %10 = vector.broadcast %cst_3 : f32 to vector<3x1xf32>
    %11 = arith.divf %9, %10 : vector<3x1xf32>
    %12 = vector.broadcast %4 : vector<3x1xf32> to vector<3x64xf32>
    %13 = arith.subf %0, %12 : vector<3x64xf32>
    %cst_4 = arith.constant 9.99999974E-6 : f32
    %14 = vector.broadcast %cst_4 : f32 to vector<3x1xf32>
    %15 = arith.addf %11, %14 : vector<3x1xf32>
    %16 = math.rsqrt %15 : vector<3x1xf32>
    %17 = vector.broadcast %16 : vector<3x1xf32> to vector<3x64xf32>
    %18 = arith.mulf %13, %17 : vector<3x64xf32>
    %c0_5 = arith.constant 0 : index
    %c0_6 = arith.constant 0 : index
    %19 = vector.load %arg2[%c0_5, %c0_6] : memref<1x64xf32, #tpu.memory_space<vmem>>, vector<1x64xf32>
    %20 = vector.broadcast %19 : vector<1x64xf32> to vector<3x64xf32>
    %21 = arith.mulf %18, %20 : vector<3x64xf32>
    %c0_7 = arith.constant 0 : index
    %c0_8 = arith.constant 0 : index
    %22 = vector.load %arg3[%c0_7, %c0_8] : memref<1x64xf32, #tpu.memory_space<vmem>>, vector<1x64xf32>
    %23 = vector.broadcast %22 : vector<1x64xf32> to vector<3x64xf32>
    %24 = arith.addf %21, %23 : vector<3x64xf32>
    %25 = arith.truncf %24 : vector<3x64xf32> to vector<3x64xbf16>
    %c0_9 = arith.constant 0 : index
    %c0_10 = arith.constant 0 : index
    %26 = vector.load %arg4[%c0_9, %c0_10] : memref<64x64xbf16, #tpu.memory_space<vmem>>, vector<64x64xbf16>
    %cst_11 = arith.constant dense<0.000000e+00> : vector<3x64xf32>
    %27 = tpu.matmul %25, %26, %cst_11 {dimension_numbers = #tpu.dot_dimension_numbers<[1], [0], [0], [1], [0, 0, 1, 1], [], []>} : vector<3x64xbf16>, vector<64x64xbf16>, vector<3x64xf32> -> vector<3x64xf32>
    %28 = arith.mulf %27, %27 : vector<3x64xf32>
    %cst_12 = arith.constant dense<0.000000e+00> : vector<3xf32>
    %29 = vector.multi_reduction <add>, %28, %cst_12 [1] : vector<3x64xf32> to vector<3xf32>
    %30 = vector.shape_cast %29 : vector<3xf32> to vector<3x1xf32>
    %cst_13 = arith.constant 9.99999996E-13 : f32
    %31 = vector.broadcast %cst_13 : f32 to vector<3x1xf32>
    %32 = arith.addf %30, %31 : vector<3x1xf32>
    %33 = math.rsqrt %32 : vector<3x1xf32>
    %34 = vector.broadcast %33 : vector<3x1xf32> to vector<3x64xf32>
    %35 = arith.mulf %27, %34 : vector<3x64xf32>
    %c0_14 = arith.constant 0 : index
    %c0_15 = arith.constant 0 : index
    %36 = vector.load %arg5[%c0_14, %c0_15] : memref<3x64xf32, #tpu.memory_space<vmem>>, vector<3x64xf32>
    tpu.vector_store %arg5[%c0_14, %c0_15], %35 {strides = array<i32>} : memref<3x64xf32, #tpu.memory_space<vmem>>, vector<3x64xf32>,
    return
  }
  func.func @transform_0(%arg0: i32) -> (i32, i32) {
    %c0_i32 = arith.constant 0 : i32
    %c0_i32_0 = arith.constant 0 : i32
    %c0_i32_1 = arith.constant 0 : i32
    return %c0_i32, %c0_i32_0 : i32, i32
  }
  func.func @transform_1(%arg0: i32) -> (i32, i32) {
    %c0_i32 = arith.constant 0 : i32
    %c0_i32_0 = arith.constant 0 : i32
    %c0_i32_1 = arith.constant 0 : i32
    return %c0_i32, %c0_i32_0 : i32, i32
  }
  func.func @transform_2(%arg0: i32) -> (i32, i32) {
    %c0_i32 = arith.constant 0 : i32
    %c0_i32_0 = arith.constant 0 : i32
    %c0_i32_1 = arith.constant 0 : i32
    return %c0_i32, %c0_i32_0 : i32, i32
  }
  func.func @transform_3(%arg0: i32) -> (i32, i32) {
    %c0_i32 = arith.constant 0 : i32
    %c0_i32_0 = arith.constant 0 : i32
    %c0_i32_1 = arith.constant 0 : i32
    return %c0_i32, %c0_i32_0 : i32, i32
  }
  func.func @transform_4(%arg0: i32) -> (i32, i32) {
    %c0_i32 = arith.constant 0 : i32
    %c0_i32_0 = arith.constant 0 : i32
    %c0_i32_1 = arith.constant 0 : i32
    return %c0_i32, %c0_i32_0 : i32, i32
  }
}

module attributes {stable_mosaic.version = 11 : i64} {
  func.func @_logits_kernel(%arg0: i32, %arg1: memref<2x64xf32, #tpu.memory_space<vmem>>, %arg2: memref<3x64xf32, #tpu.memory_space<vmem>>, %arg3: memref<1x1xf32, #tpu.memory_space<smem>>, %arg4: memref<2x3xf32, #tpu.memory_space<vmem>>) attributes {dimension_semantics = [#tpu.dimension_semantics<arbitrary>], iteration_bounds = array<i64: 1>, scalar_prefetch = 0 : i64, scratch_operands = 0 : i64, tpu.core_type = #tpu.core_type<tc>, window_params = [{pipeline_mode = #tpu.pipeline_mode<synchronous>, transform_indices = @transform_0, window_bounds = array<i64: 2, 64>}, {pipeline_mode = #tpu.pipeline_mode<synchronous>, transform_indices = @transform_1, window_bounds = array<i64: 3, 64>}, {transform_indices = @transform_2, window_bounds = array<i64: 1, 1>}, {pipeline_mode = #tpu.pipeline_mode<synchronous>, transform_indices = @transform_3, window_bounds = array<i64: 2, 3>}]} {
    %c0 = arith.constant 0 : index
    %c0_0 = arith.constant 0 : index
    %0 = memref.load %arg3[%c0, %c0_0] : memref<1x1xf32, #tpu.memory_space<smem>>
    %c0_1 = arith.constant 0 : index
    %c0_2 = arith.constant 0 : index
    %1 = vector.load %arg1[%c0_1, %c0_2] : memref<2x64xf32, #tpu.memory_space<vmem>>, vector<2x64xf32>
    %c0_3 = arith.constant 0 : index
    %c0_4 = arith.constant 0 : index
    %2 = vector.load %arg2[%c0_3, %c0_4] : memref<3x64xf32, #tpu.memory_space<vmem>>, vector<3x64xf32>
    %cst = arith.constant dense<0.000000e+00> : vector<2x3xf32>
    %3 = tpu.matmul %1, %2, %cst {dimension_numbers = #tpu.dot_dimension_numbers<[1], [1], [0], [0], [0, 0, 1, 0], [], []>} : vector<2x64xf32>, vector<3x64xf32>, vector<2x3xf32> -> vector<2x3xf32>
    %4 = vector.broadcast %0 : f32 to vector<2x3xf32>
    %5 = arith.mulf %4, %3 : vector<2x3xf32>
    %c0_5 = arith.constant 0 : index
    %c0_6 = arith.constant 0 : index
    %6 = vector.load %arg4[%c0_5, %c0_6] : memref<2x3xf32, #tpu.memory_space<vmem>>, vector<2x3xf32>
    tpu.vector_store %arg4[%c0_5, %c0_6], %5 {strides = array<i32>} : memref<2x3xf32, #tpu.memory_space<vmem>>, vector<2x3xf32>,
    return
  }
  func.func @transform_0(%arg0: i32) -> (i32, i32) {
    %c0_i32 = arith.constant 0 : i32
    %c0_i32_0 = arith.constant 0 : i32
    %c0_i32_1 = arith.constant 0 : i32
    return %c0_i32, %c0_i32_0 : i32, i32
  }
  func.func @transform_1(%arg0: i32) -> (i32, i32) {
    %c0_i32 = arith.constant 0 : i32
    %c0_i32_0 = arith.constant 0 : i32
    %c0_i32_1 = arith.constant 0 : i32
    return %c0_i32, %c0_i32_0 : i32, i32
  }
  func.func @transform_2(%arg0: i32) -> (i32, i32) {
    %c0_i32 = arith.constant 0 : i32
    %c0_i32_0 = arith.constant 0 : i32
    %c0_i32_1 = arith.constant 0 : i32
    return %c0_i32, %c0_i32_0 : i32, i32
  }
  func.func @transform_3(%arg0: i32) -> (i32, i32) {
    %c0_i32 = arith.constant 0 : i32
    %c0_i32_0 = arith.constant 0 : i32
    %c0_i32_1 = arith.constant 0 : i32
    return %c0_i32, %c0_i32_0 : i32, i32
  }
}

</mosaic_0001>

<bundles_post_ra>
// kernel: custom_clip_forward.26
= control target key start
LH: loop header
LB: loop body
LE: loop exit
PB: predicated region body
PF: predicated region fallthrough
CT: control target
= control target key end

     0   :  { %vm16_vm0 = vcmask 523264   ;;  %vm20_vm1 = vcmask 517120   ;;  %s119_s0 = inlined_call_operand.vmem [shape: f32[10,64], index: 0, kind: input, shape index: {}]   ;;  %s120_s1 = inlined_call_operand.vmem [shape: f32[1,64], index: 1, kind: input, shape index: {}]   ;;  %s121_s2 = inlined_call_operand.vmem [shape: f32[1,64], index: 2, kind: input, shape index: {}]   ;;  %s122_s3 = inlined_call_operand.vmem [shape: f32[10,64], index: 3, kind: output, shape index: {}]  }
   0x1   :  { %v14_v0 = vld [vmem:[%s119_s0] sm:$0xff]  ;;  %v15_v1 = vld [vmem:[%s119_s0 + $0x8] sm:$0x3] }
   0x2   :  { %v17_v2 = vsel %vm16_vm0, %v14_v0, 0.0  ;;  %v21_v3 = vsel %vm20_vm1, %v15_v1, 0.0  ;;  %v69_v21 = vld [vmem:[%s120_s1] ss:$0 sm:$0xff] }
   0x3   :  { %18 = vadd.xlane.f32.xlu0 %v17_v2  ;;  %v70_v23 = vld [vmem:[%s121_s2] ss:$0 sm:$0xff] }
   0x7   :  { %22 = vadd.xlane.f32.xlu0 %v21_v3 }
  0x8c   :  { %v19_v4 = vpop.xlane.xlu0 %18 }
  0x8d   :  { %v25_v5 = vmul.f32 0.015625, %v19_v4 }
  0x8f   :  { %v27_v6 = vsub.f32 %v14_v0, %v25_v5 }
  0x90   :  { %v23_v7 = vpop.xlane.xlu0 %22 }
  0x91   :  { %v26_v8 = vmul.f32 0.015625, %v23_v7  ;;  %v29_v9 = vmul.f32 %v27_v6, %v27_v6 }
  0x93   :  { %v28_v10 = vsub.f32 %v15_v1, %v26_v8  ;;  %v31_v11 = vsel %vm16_vm0, %v29_v9, 0.0 }
  0x94   :  { %32 = vadd.xlane.f32.xlu1 %v31_v11 }
  0x95   :  { %v30_v12 = vmul.f32 %v28_v10, %v28_v10 }
  0x97   :  { %v34_v13 = vsel %vm20_vm1, %v30_v12, 0.0 }
  0x98   :  { %35 = vadd.xlane.f32.xlu1 %v34_v13 }
 0x11d   :  { %v33_v14 = vpop.xlane.xlu1 %32 }
 0x11e   :  { %v37_v15 = vmul.f32 0.015625, %v33_v14 }
 0x120   :  { %v39_v16 = vadd.f32 1e-05, %v37_v15 }
 0x121   :  { %v36_v17 = vpop.xlane.xlu1 %35 }
 0x122   :  { %71 = vrsqrt.f32 %v39_v16  ;;  %v38_v18 = vmul.f32 0.015625, %v36_v17 }
 0x124   :  { %v40_v19 = vadd.f32 1e-05, %v38_v18 }
 0x126   :  { %73 = vrsqrt.f32 %v40_v19 }
 0x12f   :  { %v72_v20 = vpop.eup %71 }
 0x130   :  { %v43_v22 = vmul.f32 %v72_v20, %v27_v6 }
 0x132   :  { %v52_v24 = vmul.f32 %v69_v21, %v43_v22 }
 0x133   :  { %v74_v25 = vpop.eup %73 }
 0x134   :  { %v61_v26 = vadd.f32 %v70_v23, %v52_v24  ;;  %v44_v27 = vmul.f32 %v74_v25, %v28_v10 }
 0x136   :  { %63 = vst.msk [vmem:[%s122_s3] sm:$0xff] %vm16_vm0, %v61_v26  ;;  %v53_v28 = vmul.f32 %v69_v21, %v44_v27 }
 0x138   :  { %v62_v29 = vadd.f32 %v70_v23, %v53_v28 }
 0x13a   :  { %64 = vst.msk [vmem:[%s122_s3 + $0x8] sm:$0x3] %vm20_vm1, %v62_v29 }

// kernel: custom_clip_forward.27
= control target key start
LH: loop header
LB: loop body
LE: loop exit
PB: predicated region body
PF: predicated region fallthrough
CT: control target
= control target key end

     0   :  { %vm23_vm0 = vcmask 523264   ;;  %vm27_vm1 = vcmask 517120   ;;  %v213_v15 = vmov 0   ;;  %v81_v40 = vlaneseq  ;;  %s302_s0 = inlined_call_operand.vmem [shape: f32[10,64], index: 0, kind: input, shape index: {}]   ;;  %s303_s3 = inlined_call_operand.vmem [shape: bf16[64,192], index: 3, kind: input, shape index: {}]   ;;  %s304_s1 = inlined_call_operand.vmem [shape: f32[1,64], index: 1, kind: input, shape index: {}]   ;;  %s305_s2 = inlined_call_operand.vmem [shape: f32[1,64], index: 2, kind: input, shape index: {}]   ;;  %s306_s4 = inlined_call_operand.vmem [shape: f32[1,192], index: 4, kind: input, shape index: {}]   ;;  %s307_s5 = inlined_call_operand.vmem [shape: f32[10,192], index: 5, kind: output, shape index: {}]  }
   0x1   :  { %v21_v0 = vld [vmem:[%s302_s0] sm:$0xff]  ;;  %v22_v1 = vld [vmem:[%s302_s0 + $0x8] sm:$0x3]  ;;  %v197_v14 = vld [vmem:[%s303_s3 + $0x34] ss:$8 sps:$4 sm:$0xff]   ;;  %166 = vmatprep.mubr.bf16.mxu0 %v213_v15 }
   0x2   :  { %v24_v2 = vsel %vm23_vm0, %v21_v0, 0.0  ;;  %v28_v3 = vsel %vm27_vm1, %v22_v1, 0.0  ;;  %v199_v16 = vld [vmem:[%s303_s3 + $0x30] ss:$8 sps:$4 sm:$0xff]   ;;  %142 = vmatprep.subr.bf16.mxu0 %v197_v14  ;;  %v200_v17 = vld [vmem:[%s303_s3 + $0x24] ss:$8 sps:$4 sm:$0xff]  }
   0x3   :  { %25 = vadd.xlane.f32.xlu0 %v24_v2  ;;  %143 = vmatpush1.bf16.msra.mxu0 %v199_v16  ;;  %v202_v18 = vld [vmem:[%s303_s3 + $0x20] ss:$8 sps:$4 sm:$0xff]   ;;  %v203_v19 = vld [vmem:[%s303_s3 + $0x14] ss:$8 sps:$4 sm:$0xff]   ;;  %v205_v20 = vld [vmem:[%s303_s3 + $0x10] ss:$8 sps:$4 sm:$0xff]  }
   0x4   :  { %144 = vmatprep.subr.bf16.mxu0 %v200_v17  ;;  %v206_v21 = vld [vmem:[%s303_s3 + $0x4] ss:$8 sps:$4 sm:$0xff]   ;;  %v208_v22 = vld [vmem:[%s303_s3] ss:$8 sps:$4 sm:$0xff]   ;;  %v82_v41 = vshrl.u32 %v81_v40, 7 }
   0x5   :  { %v185_v31 = vld [vmem:[%s304_s1] ss:$0 sm:$0xff] }
   0x6   :  { %v186_v35 = vld [vmem:[%s305_s2] ss:$0 sm:$0xff]  ;;  %v83_v42 = vsub.s32 0, %v82_v41  ;;  %v87_v44 = vsub.s32 1, %v82_v41 }
   0x7   :  { %29 = vadd.xlane.f32.xlu0 %v28_v3  ;;  %145 = vmatpush1.bf16.msra.mxu0 %v202_v18  ;;  %v79_v43 = vld [vmem:[%s306_s4] sm:$0x3] }
   0x8   :  { %146 = vmatprep.subr.bf16.mxu0 %v203_v19  ;;  %v84_v45 = vrot.slane %v79_v43, %v83_v42  ;;  %v88_v46 = vrot.slane %v79_v43, %v87_v44 }
   0xb   :  { %147 = vmatpush1.bf16.msra.mxu0 %v205_v20 }
   0xc   :  { %148 = vmatprep.subr.bf16.mxu0 %v206_v21 }
   0xf   :  { %149 = vmatpush1.bf16.msra.mxu0 %v208_v22 }
  0x8c   :  { %v26_v4 = vpop.xlane.xlu0 %25 }
  0x8d   :  { %v32_v5 = vmul.f32 0.015625, %v26_v4 }
  0x8f   :  { %v34_v6 = vsub.f32 %v21_v0, %v32_v5 }
  0x90   :  { %v30_v7 = vpop.xlane.xlu0 %29 }
  0x91   :  { %v33_v8 = vmul.f32 0.015625, %v30_v7  ;;  %v36_v9 = vmul.f32 %v34_v6, %v34_v6 }
  0x93   :  { %v35_v10 = vsub.f32 %v22_v1, %v33_v8  ;;  %v38_v11 = vsel %vm23_vm0, %v36_v9, 0.0 }
  0x94   :  { %39 = vadd.xlane.f32.xlu1 %v38_v11 }
  0x95   :  { %v37_v12 = vmul.f32 %v35_v10, %v35_v10 }
  0x97   :  { %v41_v13 = vsel %vm27_vm1, %v37_v12, 0.0 }
  0x98   :  { %42 = vadd.xlane.f32.xlu1 %v41_v13 }
 0x11d   :  { %v40_v23 = vpop.xlane.xlu1 %39 }
 0x11e   :  { %v44_v24 = vmul.f32 0.015625, %v40_v23 }
 0x120   :  { %v46_v25 = vadd.f32 1e-05, %v44_v24 }
 0x121   :  { %v43_v26 = vpop.xlane.xlu1 %42 }
 0x122   :  { %209 = vrsqrt.f32 %v46_v25  ;;  %v45_v27 = vmul.f32 0.015625, %v43_v26 }
 0x124   :  { %v47_v28 = vadd.f32 1e-05, %v45_v27 }
 0x126   :  { %211 = vrsqrt.f32 %v47_v28 }
 0x12f   :  { %v210_v29 = vpop.eup %209 }
 0x130   :  { %v50_v30 = vmul.f32 %v210_v29, %v34_v6 }
 0x132   :  { %v59_v34 = vmul.f32 %v185_v31, %v50_v30 }
 0x133   :  { %v212_v32 = vpop.eup %211 }
 0x134   :  { %v51_v33 = vmul.f32 %v212_v32, %v35_v10  ;;  %v68_v37 = vadd.f32 %v186_v35, %v59_v34 }
 0x136   :  { %v60_v36 = vmul.f32 %v185_v31, %v51_v33 }
 0x138   :  { %v69_v38 = vadd.f32 %v186_v35, %v60_v36 }
 0x13a   :  { %v70_v39 = vpack.c.bf16 %v69_v38, %v68_v37 }
 0x13c   :  { %195 = vmatmul.mubr.msk.bf16.vlgmr.msra.gmra.mxu0 %vm23_vm0, %v70_v39 }
 0x1fc   :  { %v168_v47 = vpop.f32.mrf.mxu0 }
 0x1fd   :  { %v169_v48 = vadd.f32 %v168_v47, %v84_v45 }
 0x1fe   :  { %v170_v49 = vpop.f32.mrf.mxu0 }
 0x1ff   :  { %177 = vst [vmem:[%s307_s5] sm:$0xff] %v169_v48  ;;  %v171_v50 = vadd.f32 %v170_v49, %v88_v46 }
 0x200   :  { %v172_v51 = vpop.f32.mrf.mxu0 }
 0x201   :  { %178 = vst.msk [vmem:[%s307_s5 + $0x8] sm:$0xff] %vm23_vm0, %v171_v50  ;;  %v173_v52 = vadd.f32 %v172_v51, %v84_v45 }
 0x202   :  { %v174_v53 = vpop.f32.mrf.mxu0 }
 0x203   :  { %179 = vst [vmem:[%s307_s5 + $0x10] sm:$0x3] %v173_v52  ;;  %v175_v54 = vadd.f32 %v174_v53, %v88_v46 }
 0x205   :  { %180 = vst.msk [vmem:[%s307_s5 + $0x18] sm:$0x3] %vm27_vm1, %v175_v54 }

// kernel: custom_clip_forward.25
= control target key start
LH: loop header
LB: loop body
LE: loop exit
PB: predicated region body
PF: predicated region fallthrough
CT: control target
= control target key end

     0   :  { %vm19_vm0 = vcmask 523264   ;;  %v213_v0 = vmov 0   ;;  %v214_v2 = vmov 0.0   ;;  %s287_s1 = inlined_call_operand.vmem [shape: bf16[192,64], index: 1, kind: input, shape index: {}]   ;;  %s288_s0 = inlined_call_operand.vmem [shape: f32[8,192], index: 0, kind: input, shape index: {}]   ;;  %s289_s2 = inlined_call_operand.vmem [shape: f32[1,64], index: 2, kind: input, shape index: {}]   ;;  %s290_s3 = inlined_call_operand.vmem [shape: f32[8,64], index: 3, kind: output, shape index: {}]  }
   0x1   :  { %126 = vmatprep.subr.bf16.mxu0 %v213_v0  ;;  %v201_v1 = vld [vmem:[%s287_s1 + $0x38] sm:$0xff]   ;;  %20 = vst.msk [vmem:[#allocation2] sm:$0xff] %vm19_vm0, %v214_v2  ;;  %v202_v3 = vld [vmem:[%s287_s1 + $0x30] sm:$0xff]   ;;  %v203_v4 = vld [vmem:[%s287_s1 + $0x28] sm:$0xff]  }
   0x2   :  { %127 = vmatpush1.bf16.msra.mxu0 %v201_v1  ;;  %v204_v5 = vld [vmem:[%s287_s1 + $0x20] sm:$0xff]   ;;  %v23_v6 = vld [vmem:[%s288_s0 + $0x8] sm:$0xff]  ;;  %v205_v8 = vld [vmem:[%s287_s1 + $0x18] sm:$0xff]  }
   0x3   :  { %128 = vmatprep.subr.bf16.mxu0 %v213_v0  ;;  %v25_v7 = vpack.c.bf16 %v23_v6, %v23_v6  ;;  %v206_v9 = vld [vmem:[%s287_s1 + $0x10] sm:$0xff]   ;;  %v207_v10 = vld [vmem:[%s287_s1 + $0x8] sm:$0xff]   ;;  %v208_v11 = vld [vmem:[%s287_s1] sm:$0xff]  }
   0x4   :  { %v209_v12 = vld [vmem:[%s287_s1 + $0x58] sm:$0xff]   ;;  %v210_v13 = vld [vmem:[%s287_s1 + $0x50] sm:$0xff]   ;;  %v211_v14 = vld [vmem:[%s287_s1 + $0x48] sm:$0xff]  }
   0x5   :  { %197 = vmatprep.mubr.msk.bf16.mxu0 %vm19_vm0, %v25_v7  ;;  %v212_v15 = vld [vmem:[%s287_s1 + $0x40] sm:$0xff]  }
   0x6   :  { %129 = vmatpush1.bf16.msra.mxu0 %v202_v3  ;;  %v22_v16 = vld [vmem:[%s288_s0] sm:$0xff] }
   0x7   :  { %130 = vmatprep.subr.bf16.mxu0 %v213_v0  ;;  %v24_v17 = vpack.c.bf16 %v22_v16, %v22_v16  ;;  %v198_v24 = vld [vmem:[%s289_s2] ss:$0 sm:$0xff] }
   0x8   :  { %v21_v18 = vld [vmem:[#allocation2] sm:$0xff] }
   0xa   :  { %131 = vmatpush1.bf16.msra.mxu0 %v203_v4 }
   0xb   :  { %132 = vmatprep.subr.bf16.mxu0 %v213_v0 }
   0xe   :  { %133 = vmatpush1.bf16.msra.mxu0 %v204_v5 }
   0xf   :  { %134 = vmatprep.subr.bf16.mxu0 %v213_v0 }
  0x12   :  { %135 = vmatpush1.bf16.msra.mxu0 %v205_v8 }
  0x13   :  { %136 = vmatprep.subr.bf16.mxu0 %v213_v0 }
  0x16   :  { %137 = vmatpush1.bf16.msra.mxu0 %v206_v9 }
  0x17   :  { %138 = vmatprep.subr.bf16.mxu0 %v213_v0 }
  0x1a   :  { %139 = vmatpush1.bf16.msra.mxu0 %v207_v10 }
  0x1b   :  { %140 = vmatprep.subr.bf16.mxu0 %v213_v0 }
  0x1e   :  { %141 = vmatpush1.bf16.msra.mxu0 %v208_v11 }
  0x1f   :  { %150 = vmatprep.subr.bf16.mxu0 %v213_v0 }
  0x22   :  { %151 = vmatpush2.bf16.msra.mxu0 %v209_v12 }
  0x23   :  { %152 = vmatprep.subr.bf16.mxu0 %v213_v0 }
  0x26   :  { %153 = vmatpush2.bf16.msra.mxu0 %v210_v13 }
  0x27   :  { %154 = vmatprep.subr.bf16.mxu0 %v213_v0 }
  0x2a   :  { %155 = vmatpush2.bf16.msra.mxu0 %v211_v14 }
  0x2b   :  { %156 = vmatprep.subr.bf16.mxu0 %v213_v0 }
  0x2e   :  { %157 = vmatpush2.bf16.msra.mxu0 %v212_v15 }
  0x31   :  { %159 = vmatmul.mubr.bf16.vlgmr.msra.gmra.mxu0 %v24_v17 }
  0xf1   :  { %v160_v19 = vpop.f32.mrf.mxu0 }
  0xf2   :  { %v166_v20 = vadd.f32 %v160_v19, %v21_v18 }
  0xf3   :  { %v162_v21 = vpop.f32.mrf.mxu0 }
  0xf4   :  { %167 = vst.msk [vmem:[#allocation2] sm:$0xff] %vm19_vm0, %v166_v20 }
  0xf5   :  { %v163_v22 = vpop.f32.mrf.mxu0 }
  0xf7   :  { %v164_v23 = vpop.f32.mrf.mxu0 }
  0xfb   :  { %v171_v25 = vld [vmem:[#allocation2] sm:$0xff] }
  0xfc   :  { %v179_v26 = vadd.f32 %v198_v24, %v171_v25 }
  0xfe   :  { %180 = vst.msk [vmem:[%s290_s3] sm:$0xff] %vm19_vm0, %v179_v26 }

// kernel: custom_clip_forward.28
= control target key start
LH: loop header
LB: loop body
LE: loop exit
PB: predicated region body
PF: predicated region fallthrough
CT: control target
= control target key end

     0   :  { %s786_s6 = smov 0   ;;  %s883_s0 = inlined_call_operand.vmem [shape: f32[2,5,192], index: 0, kind: input, shape index: {}]   ;;  %s884_s1 = inlined_call_operand.vmem [shape: f32[2,5,64], index: 1, kind: output, shape index: {}]  }
   0x1 LB: > { %s641_s7 = sadd.s32 4294967295, %s764_s6   ;;  %p645_p0 = scmp.ge.s32.totalorder %s764_s6, 1  ;;  %s764_s6 = sphi %s786_s6, %s11_s6  }
   0x2   : > { %p87_p1 = scmp.lt.s32.totalorder %s764_s6, 3 }
   0x4   : > { %p88_p2 = pnand %p645_p0, %p87_p1 }
   0x5   : > { %p106_p3 = scmp.lt.s32.totalorder (!%p88_p2), %s641_s7, 1  ;;  %s768_s12 = smov (!%p88_p2), 64  }
   0x6   : > { %91 = sbr.rel (%p88_p2) target bundleno = 1492 (0x5d4), region = 24  ;;  %s769_s13 = smov (!%p88_p2), 48  }
   0x7   : > { %s770_s14 = smov (!%p88_p2), 80   ;;  %s772_s15 = smov (!%p88_p2), 112  }
   0x8   : > { %s773_s16 = smov (!%p88_p2), 32   ;;  %s774_s17 = smov (!%p88_p2), 96  }
   0x9   : > { %s775_s18 = smov (!%p88_p2), 16  }
   0xb   : > { %v766_v0 = vmov 0.0   ;;  %vm767_vm0 = vmmov 0   ;;  %s886_s7 = smov (!%p106_p3, %s641_s7), 1  ;;  %vm122_vm1 = vcmask 130048   ;;  %vm170_vm2 = vcmask 36864  }
   0xc   : > { %676 = vmatprep.subr.bf16.mxu0 %v766_v0  ;;  %678 = vmatprep.mubr.msk.bf16.mxu0 %vm767_vm0, %v766_v0  ;;  %s659_s8 = sshll.u32 %s886_s7, 4  ;;  %vm188_vm3 = vcmask 1041408   ;;  %vm189_vm4 = vcmask 1042432   ;;  %v771_v18 = vmov 65535   ;;  %vm184_vm5 = vcmask 39936   ;;  %s648_s19 = sshll.u32 %s886_s7, 3 }
   0xd   : > { %682 = vmatprep.subr.bf16.mxu1 %v766_v0  ;;  %684 = vmatprep.mubr.msk.bf16.mxu1 %vm767_vm0, %v766_v0  ;;  %s806_s11 = scalar_lea.vmem %s883_s0, %s659_s8  ;;  %v190_v19 = vsel %vm188_vm3, 4294967295, %v771_v18  ;;  %vm582_vm6 = vcmask 261120   ;;  %vm584_vm7 = vcmask 392192   ;;  %s114_s22 = scalar_lea.vmem %s884_s1, %s648_s19  ;;  %vm586_vm8 = vcmask 520192  }
   0xe   : > { %v116_v1 = vld [vmem:[%s806_s11] sm:$0x1f]  ;;  %v117_v16 = vld [vmem:[%s806_s11 + $0x8] sm:$0x1f]  ;;  %v821_v20 = vsel %vm189_vm4, %v190_v19, 0 }
   0xf   : > { %v118_v2 = vpack.c.bf16 %v116_v1, %v116_v1  ;;  %v819_v17 = vpack.c.bf16 %v117_v16, %v117_v16 }
  0x11   : > { %120 = vrot.lane.b32.xlu0 %v118_v2, %s768_s12  ;;  %237 = vrot.lane.b32.xlu1 %v118_v2, %s769_s13  ;;  %v193_v21 = vand.u32 %v821_v20, %v819_v17 }
  0x13   : > { %683 = vmatpush3.bf16.msra.mxu1 %v193_v21 }
  0x14   : > { %688 = vmatprep.subr.bf16.mxu1 %v766_v0 }
  0x83   : > { %v121_v3 = vpop.permute.xlu0 %120  ;;  %v238_v22 = vpop.permute.xlu1 %237 }
  0x84   : > { %v127_v4 = vsel %vm122_vm1, %v121_v3, 0  ;;  %v243_v29 = vsel %vm122_vm1, %v238_v22, 0 }
  0x85   : > { %677 = vmatpush3.bf16.xpose.msra.mxu0 %v127_v4 }
  0x86   : > { %694 = vmatprep.subr.bf16.mxu0 %v766_v0 }
  0x8c   : > { %679 = vmatmul.mubr.msk.bf16.vlgmr.msra.gmra.mxu0 %vm122_vm1, %v118_v2 }
  0x8d   : > { %696 = vmatprep.mubr.msk.bf16.mxu0 %vm767_vm0, %v766_v0 }
 0x14c   : > { %v163_v5 = vpop.f32.mrf.mxu0 }
 0x14d   : > { %v169_v6 = vmul.f32 0.25, %v163_v5 }
 0x14e   : > { %v680_v7 = vpop.f32.mrf.mxu0 }
 0x14f   : > { %v171_v8 = vsel %vm170_vm2, %v169_v6, -inf }
 0x150   : > { %172 = vmax.xlane.f32.xlu0 %v171_v8  ;;  %v166_v9 = vpop.f32.mrf.mxu0 }
 0x152   : > { %v681_v10 = vpop.f32.mrf.mxu0 }
 0x166   : > { %458 = vrot.lane.b32.xlu0 %v118_v2, %s770_s14 }
 0x1d9   : > { %v173_v11 = vpop.xlane.xlu0 %172 }
 0x1da   : > { %v174_v12 = vsub.f32 %v169_v6, %v173_v11 }
 0x1dc   : > { %v175_v13 = vmul.f32 1.442695, %v174_v12 }
 0x1dd   : > { %v459_v34 = vpop.permute.xlu0 %458 }
 0x1de   : > { %742 = vpow2.f32 %v175_v13 }
 0x1eb   : > { %v743_v14 = vpop.eup %742 }
 0x1ec   : > { %v177_v15 = vsel %vm170_vm2, %v743_v14, 0.0 }
 0x1ed   : > { %178 = vadd.xlane.f32.xlu1 %v177_v15 }
 0x1fe   : > { %235 = vrot.lane.b32.xlu1 %v118_v2, %s772_s15 }
 0x202   : > { %349 = vrot.lane.b32.xlu1 %v118_v2, %s773_s16 }
 0x206   : > { %347 = vrot.lane.b32.xlu1 %v118_v2, %s774_s17 }
 0x20a   : > { %460 = vrot.lane.b32.xlu1 %v118_v2, %s775_s18 }
 0x276   : > { %v179_v23 = vpop.xlane.xlu1 %178 }
 0x277   : > { %744 = vrcp.f32 %v179_v23 }
 0x27a   : > { %v236_v24 = vpop.permute.xlu1 %235 }
 0x27e   : > { %v350_v28 = vpop.permute.xlu1 %349 }
 0x27f   : > { %v355_v31 = vsel %vm122_vm1, %v350_v28, 0 }
 0x282   : > { %v348_v30 = vpop.permute.xlu1 %347 }
 0x284   : > { %v745_v25 = vpop.eup %744 }
 0x285   : > { %v181_v26 = vmul.f32 %v745_v25, %v743_v14 }
 0x286   : > { %v461_v32 = vpop.permute.xlu1 %460 }
 0x287   : > { %v182_v27 = vpack.c.bf16 %v181_v26, %v181_v26  ;;  %v466_v33 = vsel %vm122_vm1, %v461_v32, 0 }
 0x289   : > { %685 = vmatmul.mubr.msk.bf16.vlgmr.msra.gmra.mxu1 %vm184_vm5, %v182_v27 }
 0x28a   : > { %689 = vmatpush3.bf16.xpose.msra.mxu1 %v243_v29  ;;  %690 = vmatprep.mubr.msk.bf16.mxu1 %vm767_vm0, %v766_v0 }
 0x28b   : > { %700 = vmatprep.subr.bf16.mxu1 %v766_v0 }
 0x291   : > { %691 = vmatmul.mubr.msk.bf16.vlgmr.msra.gmra.mxu1 %vm122_vm1, %v236_v24 }
 0x292   : > { %701 = vmatpush3.bf16.xpose.msra.mxu1 %v355_v31  ;;  %702 = vmatprep.mubr.msk.bf16.mxu1 %vm767_vm0, %v766_v0 }
 0x293   : > { %712 = vmatprep.subr.bf16.mxu1 %v766_v0 }
 0x299   : > { %703 = vmatmul.mubr.msk.bf16.vlgmr.msra.gmra.mxu1 %vm122_vm1, %v348_v30 }
 0x29a   : > { %713 = vmatpush3.bf16.xpose.msra.mxu1 %v466_v33  ;;  %714 = vmatprep.mubr.msk.bf16.mxu1 %vm767_vm0, %v766_v0 }
 0x2a1   : > { %715 = vmatmul.mubr.msk.bf16.vlgmr.msra.gmra.mxu1 %vm122_vm1, %v459_v34 }
 0x349   : > { %v845_v35 = vpop.f32.mrf.mxu1 }
 0x34b   : > { %v686_v36 = vpop.f32.mrf.mxu1 }
 0x34d   : > { %v232_v37 = vpop.f32.mrf.mxu1 }
 0x34f   : > { %v687_v38 = vpop.f32.mrf.mxu1 }
 0x351   : > { %v279_v39 = vpop.f32.mrf.mxu1 }
 0x352   : > { %v285_v40 = vmul.f32 0.25, %v279_v39 }
 0x353   : > { %v692_v41 = vpop.f32.mrf.mxu1 }
 0x354   : > { %v286_v42 = vsel %vm170_vm2, %v285_v40, -inf }
 0x355   : > { %287 = vmax.xlane.f32.xlu1 %v286_v42  ;;  %v282_v43 = vpop.f32.mrf.mxu1 }
 0x357   : > { %v693_v44 = vpop.f32.mrf.mxu1 }
 0x359   : > { %v391_v45 = vpop.f32.mrf.mxu1 }
 0x35a   : > { %v397_v46 = vmul.f32 0.25, %v391_v45 }
 0x35b   : > { %v704_v47 = vpop.f32.mrf.mxu1 }
 0x35c   : > { %v398_v48 = vsel %vm170_vm2, %v397_v46, -inf }
 0x35d   : > { %399 = vmax.xlane.f32.xlu0 %v398_v48  ;;  %v394_v49 = vpop.f32.mrf.mxu1 }
 0x35f   : > { %v705_v50 = vpop.f32.mrf.mxu1 }
 0x361   : > { %v502_v51 = vpop.f32.mrf.mxu1 }
 0x362   : > { %v508_v52 = vmul.f32 0.25, %v502_v51 }
 0x363   : > { %v716_v53 = vpop.f32.mrf.mxu1 }
 0x364   : > { %v509_v54 = vsel %vm170_vm2, %v508_v52, -inf }
 0x365   : > { %510 = vmax.xlane.f32.xlu1 %v509_v54  ;;  %v505_v55 = vpop.f32.mrf.mxu1 }
 0x367   : > { %v717_v56 = vpop.f32.mrf.mxu1 }
 0x373   : > { %299 = vrot.lane.b32.xlu0 %v819_v17, %s772_s15 }
 0x376   : > { %410 = vrot.lane.b32.xlu1 %v819_v17, %s774_s17 }
 0x3de   : > { %v288_v57 = vpop.xlane.xlu1 %287 }
 0x3df   : > { %v289_v58 = vsub.f32 %v285_v40, %v288_v57 }
 0x3e1   : > { %v290_v59 = vmul.f32 1.442695, %v289_v58 }
 0x3e3   : > { %746 = vpow2.f32 %v290_v59 }
 0x3e6   : > { %v400_v60 = vpop.xlane.xlu0 %399 }
 0x3e7   : > { %v401_v61 = vsub.f32 %v397_v46, %v400_v60 }
 0x3e9   : > { %v402_v62 = vmul.f32 1.442695, %v401_v61 }
 0x3ea   : > { %v300_v9 = vpop.permute.xlu0 %299 }
 0x3eb   : > { %748 = vpow2.f32 %v402_v62  ;;  %v305_v10 = vand.u32 %v300_v9, %v821_v20 }
 0x3ed   : > { %695 = vmatpush3.bf16.msra.mxu0 %v305_v10 }
 0x3ee   : > { %v511_v63 = vpop.xlane.xlu1 %510  ;;  %706 = vmatprep.subr.bf16.mxu0 %v766_v0 }
 0x3ef   : > { %v512_v1 = vsub.f32 %v508_v52, %v511_v63 }
 0x3f0   : > { %v747_v2 = vpop.eup %746 }
 0x3f1   : > { %v513_v3 = vmul.f32 1.442695, %v512_v1  ;;  %v292_v4 = vsel %vm170_vm2, %v747_v2, 0.0 }
 0x3f2   : > { %293 = vadd.xlane.f32.xlu1 %v292_v4  ;;  %v411_v11 = vpop.permute.xlu1 %410 }
 0x3f3   : > { %750 = vpow2.f32 %v513_v3  ;;  %v416_v19 = vand.u32 %v411_v11, %v821_v20 }
 0x3f8   : > { %v749_v5 = vpop.eup %748 }
 0x3f9   : > { %v404_v6 = vsel %vm170_vm2, %v749_v5, 0.0 }
 0x3fa   : > { %405 = vadd.xlane.f32.xlu1 %v404_v6 }
 0x400   : > { %v751_v7 = vpop.eup %750 }
 0x401   : > { %v515_v8 = vsel %vm170_vm2, %v751_v7, 0.0 }
 0x402   : > { %516 = vadd.xlane.f32.xlu1 %v515_v8 }
 0x413   : > { %521 = vrot.lane.b32.xlu1 %v819_v17, %s770_s14 }
 0x47b   : > { %v294_v12 = vpop.xlane.xlu1 %293 }
 0x47c   : > { %752 = vrcp.f32 %v294_v12 }
 0x483   : > { %v406_v13 = vpop.xlane.xlu1 %405 }
 0x484   : > { %754 = vrcp.f32 %v406_v13 }
 0x489   : > { %v753_v14 = vpop.eup %752 }
 0x48a   : > { %v296_v15 = vmul.f32 %v753_v14, %v747_v2 }
 0x48b   : > { %v517_v16 = vpop.xlane.xlu1 %516 }
 0x48c   : > { %756 = vrcp.f32 %v517_v16  ;;  %v297_v18 = vpack.c.bf16 %v296_v15, %v296_v15 }
 0x48e   : > { %697 = vmatmul.mubr.msk.bf16.vlgmr.msra.gmra.mxu0 %vm184_vm5, %v297_v18 }
 0x48f   : > { %707 = vmatpush3.bf16.msra.mxu0 %v416_v19  ;;  %708 = vmatprep.mubr.msk.bf16.mxu0 %vm767_vm0, %v766_v0  ;;  %v522_v21 = vpop.permute.xlu1 %521 }
 0x490   : > { %718 = vmatprep.subr.bf16.mxu0 %v766_v0  ;;  %v527_v23 = vand.u32 %v522_v21, %v821_v20 }
 0x491   : > { %v755_v17 = vpop.eup %754 }
 0x492   : > { %v408_v22 = vmul.f32 %v755_v17, %v749_v5 }
 0x494   : > { %v409_v24 = vpack.c.bf16 %v408_v22, %v408_v22 }
 0x496   : > { %709 = vmatmul.mubr.msk.bf16.vlgmr.msra.gmra.mxu0 %vm184_vm5, %v409_v24 }
 0x497   : > { %719 = vmatpush3.bf16.msra.mxu0 %v527_v23  ;;  %720 = vmatprep.mubr.msk.bf16.mxu0 %vm767_vm0, %v766_v0 }
 0x499   : > { %v757_v25 = vpop.eup %756 }
 0x49a   : > { %v519_v26 = vmul.f32 %v757_v25, %v751_v7 }
 0x49c   : > { %v520_v27 = vpack.c.bf16 %v519_v26, %v519_v26 }
 0x49e   : > { %721 = vmatmul.mubr.msk.bf16.vlgmr.msra.gmra.mxu0 %vm184_vm5, %v520_v27 }
 0x54e   : > { %v341_v28 = vpop.f32.mrf.mxu0 }
 0x54f   : > { %570 = vrot.lane.b32.xlu0 %v341_v28, %s775_s18 }
 0x550   : > { %v698_v29 = vpop.f32.mrf.mxu0 }
 0x552   : > { %v344_v30 = vpop.f32.mrf.mxu0 }
 0x554   : > { %v699_v31 = vpop.f32.mrf.mxu0 }
 0x556   : > { %v452_v20 = vpop.f32.mrf.mxu0 }
 0x557   : > { %574 = vrot.lane.b32.xlu1 %v452_v20, %s773_s16 }
 0x558   : > { %v710_v32 = vpop.f32.mrf.mxu0 }
 0x55a   : > { %v455_v33 = vpop.f32.mrf.mxu0 }
 0x55c   : > { %v711_v34 = vpop.f32.mrf.mxu0 }
 0x55e   : > { %v563_v36 = vpop.f32.mrf.mxu0 }
 0x55f   : > { %578 = vrot.lane.b32.xlu0 %v563_v36, %s769_s13 }
 0x560   : > { %v722_v0 = vpop.f32.mrf.mxu0 }
 0x562   : > { %v566_v37 = vpop.f32.mrf.mxu0 }
 0x564   : > { %v723_v38 = vpop.f32.mrf.mxu0 }
 0x5c1   : > { %v571_v39 = vpop.permute.xlu0 %570 }
 0x5c2   : > { %v581_v41 = vsel %vm122_vm1, %v845_v35, %v571_v39 }
 0x5c9   : > { %v575_v40 = vpop.permute.xlu1 %574 }
 0x5ca   : > { %v583_v42 = vsel %vm582_vm6, %v581_v41, %v575_v40 }
 0x5d1   : > { %v579_v43 = vpop.permute.xlu0 %578 }
 0x5d2   : > { %v585_v44 = vsel %vm584_vm7, %v583_v42, %v579_v43 }
 0x5d3   : > { %587 = vst.msk [vmem:[%s114_s22] sm:$0x1f] %vm586_vm8, %v585_v44 }
 0x5d4 PF: > { %s11_s6 = sadd.s32 1, %s764_s6  }
 0x5d5   : > { %p8_p4 = scmp.ge.s32.totalorder %s11_s6, 4  }
 0x5d7   :  { %10 = sbr.rel (!%p8_p4) target bundleno = 1 (0x1), region = 54 }

// kernel: custom_clip_forward.29
= control target key start
LH: loop header
LB: loop body
LE: loop exit
PB: predicated region body
PF: predicated region fallthrough
CT: control target
= control target key end

     0   :  { %vm22_vm0 = vcmask 523264   ;;  %v166_v0 = vmov 0.0   ;;  %vm167_vm1 = vmmov 0   ;;  %vm24_vm2 = vcmask 517120   ;;  %s233_s1 = inlined_call_operand.vmem [shape: bf16[64,64], index: 1, kind: input, shape index: {}]   ;;  %s234_s0 = inlined_call_operand.vmem [shape: f32[10,64], index: 0, kind: input, shape index: {}]   ;;  %s235_s2 = inlined_call_operand.vmem [shape: f32[1,64], index: 2, kind: input, shape index: {}]   ;;  %s236_s3 = inlined_call_operand.vmem [shape: f32[10,64], index: 3, kind: input, shape index: {}]   ;;  %s237_s4 = inlined_call_operand.vmem [shape: f32[10,64], index: 4, kind: output, shape index: {}]  }
   0x1   :  { %148 = vmatprep.subr.bf16.mxu0 %v166_v0  ;;  %v162_v1 = vld [vmem:[%s233_s1 + $0x18] sm:$0xff]   ;;  %156 = vmatprep.mubr.msk.bf16.mxu0 %vm167_vm1, %v166_v0  ;;  %23 = vst.msk [vmem:[#allocation2] sm:$0xff] %vm22_vm0, %v166_v0  ;;  %v163_v2 = vld [vmem:[%s233_s1 + $0x10] sm:$0xff]   ;;  %v164_v3 = vld [vmem:[%s233_s1 + $0x8] sm:$0xff]  }
   0x2   :  { %149 = vmatpush3.bf16.msra.mxu0 %v162_v1  ;;  %v165_v4 = vld [vmem:[%s233_s1] sm:$0xff]   ;;  %v29_v6 = vld [vmem:[%s234_s0 + $0x8] sm:$0x3]  ;;  %25 = vst.msk [vmem:[#allocation2 + $0x8] sm:$0x3] %vm24_vm2, %v166_v0 }
   0x3   :  { %150 = vmatprep.subr.bf16.mxu0 %v166_v0  ;;  %v28_v5 = vld [vmem:[%s234_s0] sm:$0xff]  ;;  %v128_v22 = vld [vmem:[%s236_s3 + $0x8] sm:$0x3] }
   0x4   :  { %v30_v7 = vpack.c.bf16 %v29_v6, %v28_v5  ;;  %v142_v16 = vld [vmem:[%s235_s2] ss:$0 sm:$0xff] }
   0x5   :  { %v127_v18 = vld [vmem:[%s236_s3] sm:$0xff] }
   0x6   :  { %151 = vmatpush3.bf16.msra.mxu0 %v163_v2 }
   0x7   :  { %152 = vmatprep.subr.bf16.mxu0 %v166_v0 }
   0x8   :  { %v26_v8 = vld [vmem:[#allocation2] sm:$0xff] }
   0x9   :  { %v27_v12 = vld [vmem:[#allocation2 + $0x8] sm:$0x3] }
   0xa   :  { %153 = vmatpush3.bf16.msra.mxu0 %v164_v3 }
   0xb   :  { %154 = vmatprep.subr.bf16.mxu0 %v166_v0 }
   0xe   :  { %155 = vmatpush3.bf16.msra.mxu0 %v165_v4 }
  0x11   :  { %157 = vmatmul.mubr.msk.bf16.vlgmr.msra.gmra.mxu0 %vm22_vm0, %v30_v7 }
  0xd1   :  { %v101_v9 = vpop.f32.mrf.mxu0 }
  0xd2   :  { %v108_v10 = vadd.f32 %v101_v9, %v26_v8 }
  0xd3   :  { %v158_v11 = vpop.f32.mrf.mxu0 }
  0xd4   :  { %110 = vst.msk [vmem:[#allocation2] sm:$0xff] %vm22_vm0, %v108_v10 }
  0xd5   :  { %v104_v13 = vpop.f32.mrf.mxu0 }
  0xd6   :  { %v109_v14 = vadd.f32 %v104_v13, %v27_v12 }
  0xd7   :  { %v159_v15 = vpop.f32.mrf.mxu0 }
  0xd8   :  { %112 = vst.msk [vmem:[#allocation2 + $0x8] sm:$0x3] %vm24_vm2, %v109_v14 }
  0xdb   :  { %v116_v17 = vld [vmem:[#allocation2] sm:$0xff] }
  0xdc   :  { %v125_v19 = vadd.f32 %v142_v16, %v116_v17 }
  0xde   :  { %v129_v20 = vadd.f32 %v127_v18, %v125_v19 }
  0xdf   :  { %v117_v21 = vld [vmem:[#allocation2 + $0x8] sm:$0x3] }
  0xe0   :  { %v126_v23 = vadd.f32 %v142_v16, %v117_v21  ;;  %131 = vst.msk [vmem:[%s237_s4] sm:$0xff] %vm22_vm0, %v129_v20 }
  0xe2   :  { %v130_v24 = vadd.f32 %v128_v22, %v126_v23 }
  0xe4   :  { %132 = vst.msk [vmem:[%s237_s4 + $0x8] sm:$0x3] %vm24_vm2, %v130_v24 }

// kernel: custom_clip_forward.30
= control target key start
LH: loop header
LB: loop body
LE: loop exit
PB: predicated region body
PF: predicated region fallthrough
CT: control target
= control target key end

     0   :  { %vm23_vm0 = vcmask 523264   ;;  %vm27_vm1 = vcmask 517120   ;;  %v265_v15 = vmov 0   ;;  %v81_v40 = vlaneseq  ;;  %s350_s0 = inlined_call_operand.vmem [shape: f32[10,64], index: 0, kind: input, shape index: {}]   ;;  %s351_s3 = inlined_call_operand.vmem [shape: bf16[64,256], index: 3, kind: input, shape index: {}]   ;;  %s352_s1 = inlined_call_operand.vmem [shape: f32[1,64], index: 1, kind: input, shape index: {}]   ;;  %s353_s2 = inlined_call_operand.vmem [shape: f32[1,64], index: 2, kind: input, shape index: {}]   ;;  %s354_s4 = inlined_call_operand.vmem [shape: f32[1,256], index: 4, kind: input, shape index: {}]   ;;  %s355_s5 = inlined_call_operand.vmem [shape: f32[10,256], index: 5, kind: output, shape index: {}]  }
   0x1   :  { %v21_v0 = vld [vmem:[%s350_s0] sm:$0xff]  ;;  %v22_v1 = vld [vmem:[%s350_s0 + $0x8] sm:$0x3]  ;;  %v233_v14 = vld [vmem:[%s351_s3 + $0x34] ss:$8 sps:$4 sm:$0xff]   ;;  %166 = vmatprep.mubr.bf16.mxu0 %v265_v15 }
   0x2   :  { %v24_v2 = vsel %vm23_vm0, %v21_v0, 0.0  ;;  %v28_v3 = vsel %vm27_vm1, %v22_v1, 0.0  ;;  %v235_v16 = vld [vmem:[%s351_s3 + $0x30] ss:$8 sps:$4 sm:$0xff]   ;;  %142 = vmatprep.subr.bf16.mxu0 %v233_v14  ;;  %v236_v17 = vld [vmem:[%s351_s3 + $0x24] ss:$8 sps:$4 sm:$0xff]  }
   0x3   :  { %25 = vadd.xlane.f32.xlu0 %v24_v2  ;;  %143 = vmatpush1.bf16.msra.mxu0 %v235_v16  ;;  %v238_v18 = vld [vmem:[%s351_s3 + $0x20] ss:$8 sps:$4 sm:$0xff]   ;;  %v239_v19 = vld [vmem:[%s351_s3 + $0x14] ss:$8 sps:$4 sm:$0xff]   ;;  %v241_v20 = vld [vmem:[%s351_s3 + $0x10] ss:$8 sps:$4 sm:$0xff]  }
   0x4   :  { %144 = vmatprep.subr.bf16.mxu0 %v236_v17  ;;  %v242_v21 = vld [vmem:[%s351_s3 + $0x4] ss:$8 sps:$4 sm:$0xff]   ;;  %v244_v22 = vld [vmem:[%s351_s3] ss:$8 sps:$4 sm:$0xff]   ;;  %v82_v41 = vshrl.u32 %v81_v40, 7 }
   0x5   :  { %v217_v31 = vld [vmem:[%s352_s1] ss:$0 sm:$0xff] }
   0x6   :  { %v218_v35 = vld [vmem:[%s353_s2] ss:$0 sm:$0xff]  ;;  %v83_v42 = vsub.s32 0, %v82_v41  ;;  %v87_v44 = vsub.s32 1, %v82_v41 }
   0x7   :  { %29 = vadd.xlane.f32.xlu0 %v28_v3  ;;  %145 = vmatpush1.bf16.msra.mxu0 %v238_v18  ;;  %v79_v43 = vld [vmem:[%s354_s4] sm:$0x3] }
   0x8   :  { %146 = vmatprep.subr.bf16.mxu0 %v239_v19  ;;  %v84_v45 = vrot.slane %v79_v43, %v83_v42  ;;  %v88_v46 = vrot.slane %v79_v43, %v87_v44 }
   0xb   :  { %147 = vmatpush1.bf16.msra.mxu0 %v241_v20 }
   0xc   :  { %148 = vmatprep.subr.bf16.mxu0 %v242_v21 }
   0xf   :  { %149 = vmatpush1.bf16.msra.mxu0 %v244_v22 }
  0x8c   :  { %v26_v4 = vpop.xlane.xlu0 %25 }
  0x8d   :  { %v32_v5 = vmul.f32 0.015625, %v26_v4 }
  0x8f   :  { %v34_v6 = vsub.f32 %v21_v0, %v32_v5 }
  0x90   :  { %v30_v7 = vpop.xlane.xlu0 %29 }
  0x91   :  { %v33_v8 = vmul.f32 0.015625, %v30_v7  ;;  %v36_v9 = vmul.f32 %v34_v6, %v34_v6 }
  0x93   :  { %v35_v10 = vsub.f32 %v22_v1, %v33_v8  ;;  %v38_v11 = vsel %vm23_vm0, %v36_v9, 0.0 }
  0x94   :  { %39 = vadd.xlane.f32.xlu1 %v38_v11 }
  0x95   :  { %v37_v12 = vmul.f32 %v35_v10, %v35_v10 }
  0x97   :  { %v41_v13 = vsel %vm27_vm1, %v37_v12, 0.0 }
  0x98   :  { %42 = vadd.xlane.f32.xlu1 %v41_v13 }
 0x11d   :  { %v40_v23 = vpop.xlane.xlu1 %39 }
 0x11e   :  { %v44_v24 = vmul.f32 0.015625, %v40_v23 }
 0x120   :  { %v46_v25 = vadd.f32 1e-05, %v44_v24 }
 0x121   :  { %v43_v26 = vpop.xlane.xlu1 %42 }
 0x122   :  { %245 = vrsqrt.f32 %v46_v25  ;;  %v45_v27 = vmul.f32 0.015625, %v43_v26 }
 0x124   :  { %v47_v28 = vadd.f32 1e-05, %v45_v27 }
 0x126   :  { %247 = vrsqrt.f32 %v47_v28 }
 0x12f   :  { %v246_v29 = vpop.eup %245 }
 0x130   :  { %v50_v30 = vmul.f32 %v246_v29, %v34_v6 }
 0x132   :  { %v59_v34 = vmul.f32 %v217_v31, %v50_v30 }
 0x133   :  { %v248_v32 = vpop.eup %247 }
 0x134   :  { %v51_v33 = vmul.f32 %v248_v32, %v35_v10  ;;  %v68_v37 = vadd.f32 %v218_v35, %v59_v34 }
 0x136   :  { %v60_v36 = vmul.f32 %v217_v31, %v51_v33 }
 0x138   :  { %v69_v38 = vadd.f32 %v218_v35, %v60_v36 }
 0x13a   :  { %v70_v39 = vpack.c.bf16 %v69_v38, %v68_v37 }
 0x13c   :  { %227 = vmatmul.mubr.msk.bf16.vlgmr.msra.gmra.mxu0 %vm23_vm0, %v70_v39 }
 0x1fc   :  { %v168_v47 = vpop.f32.mrf.mxu0 }
 0x1fd   :  { %v169_v48 = vadd.f32 %v168_v47, %v84_v45 }
 0x1fe   :  { %v170_v49 = vpop.f32.mrf.mxu0 }
 0x1ff   :  { %v228_v50 = vmul.f32 -1.702, %v169_v48  ;;  %v171_v51 = vadd.f32 %v170_v49, %v88_v46 }
 0x200   :  { %v172_v52 = vpop.f32.mrf.mxu0 }
 0x201   :  { %v185_v53 = vmul.f32 1.442695, %v228_v50  ;;  %v229_v54 = vmul.f32 -1.702, %v171_v51  ;;  %v173_v55 = vadd.f32 %v172_v52, %v84_v45 }
 0x202   :  { %v174_v56 = vpop.f32.mrf.mxu0 }
 0x203   :  { %249 = vpow2.f32 %v185_v53  ;;  %v187_v57 = vmul.f32 1.442695, %v229_v54  ;;  %v230_v58 = vmul.f32 -1.702, %v173_v55  ;;  %v175_v59 = vadd.f32 %v174_v56, %v88_v46 }
 0x205   :  { %251 = vpow2.f32 %v187_v57  ;;  %v189_v60 = vmul.f32 1.442695, %v230_v58  ;;  %v231_v61 = vmul.f32 -1.702, %v175_v59 }
 0x207   :  { %253 = vpow2.f32 %v189_v60  ;;  %v191_v62 = vmul.f32 1.442695, %v231_v61 }
 0x209   :  { %255 = vpow2.f32 %v191_v62 }
 0x210   :  { %v250_v63 = vpop.eup %249 }
 0x211   :  { %v193_v0 = vadd.f32 1.0, %v250_v63 }
 0x212   :  { %v252_v1 = vpop.eup %251 }
 0x213   :  { %257 = vrcp.f32 %v193_v0  ;;  %v194_v2 = vadd.f32 1.0, %v252_v1 }
 0x214   :  { %v254_v3 = vpop.eup %253 }
 0x215   :  { %259 = vrcp.f32 %v194_v2  ;;  %v195_v4 = vadd.f32 1.0, %v254_v3 }
 0x216   :  { %v256_v5 = vpop.eup %255 }
 0x217   :  { %261 = vrcp.f32 %v195_v4  ;;  %v196_v6 = vadd.f32 1.0, %v256_v5 }
 0x219   :  { %263 = vrcp.f32 %v196_v6 }
 0x220   :  { %v258_v7 = vpop.eup %257 }
 0x221   :  { %v205_v8 = vmul.f32 %v258_v7, %v169_v48 }
 0x222   :  { %v260_v9 = vpop.eup %259 }
 0x223   :  { %209 = vst [vmem:[%s355_s5] sm:$0xff] %v205_v8  ;;  %v206_v10 = vmul.f32 %v260_v9, %v171_v51 }
 0x224   :  { %v262_v11 = vpop.eup %261 }
 0x225   :  { %210 = vst [vmem:[%s355_s5 + $0x8] sm:$0xff] %v206_v10  ;;  %v207_v12 = vmul.f32 %v262_v11, %v173_v55 }
 0x226   :  { %v264_v13 = vpop.eup %263 }
 0x227   :  { %211 = vst [vmem:[%s355_s5 + $0x10] sm:$0x3] %v207_v12  ;;  %v208_v14 = vmul.f32 %v264_v13, %v175_v59 }
 0x229   :  { %212 = vst [vmem:[%s355_s5 + $0x18] sm:$0x3] %v208_v14 }

// kernel: custom_clip_forward.31
= control target key start
LH: loop header
LB: loop body
LE: loop exit
PB: predicated region body
PF: predicated region fallthrough
CT: control target
= control target key end

     0   :  { %vm22_vm0 = vcmask 523264   ;;  %v289_v22 = vmov 0.0   ;;  %vm24_vm1 = vcmask 517120   ;;  %s396_s1 = inlined_call_operand.vmem [shape: bf16[256,64], index: 1, kind: input, shape index: {}]   ;;  %s397_s0 = inlined_call_operand.vmem [shape: f32[10,256], index: 0, kind: input, shape index: {}]   ;;  %s398_s2 = inlined_call_operand.vmem [shape: f32[1,64], index: 2, kind: input, shape index: {}]   ;;  %s399_s3 = inlined_call_operand.vmem [shape: f32[10,64], index: 3, kind: input, shape index: {}]   ;;  %s400_s4 = inlined_call_operand.vmem [shape: f32[10,64], index: 4, kind: output, shape index: {}]  }
   0x1   :  { %v273_v0 = vld [vmem:[%s396_s1 + $0x78] sm:$0xff]   ;;  %v275_v2 = vld [vmem:[%s396_s1 + $0x70] sm:$0xff]   ;;  %v277_v4 = vld [vmem:[%s396_s1 + $0x68] sm:$0xff]   ;;  %23 = vst.msk [vmem:[#allocation2] sm:$0xff] %vm22_vm0, %v289_v22 }
   0x2   :  { %v274_v1 = vld [vmem:[%s396_s1 + $0x38] sm:$0xff]   ;;  %250 = vmatprep.subr.bf16.mxu0 %v273_v0  ;;  %v276_v3 = vld [vmem:[%s396_s1 + $0x30] sm:$0xff]   ;;  %v278_v5 = vld [vmem:[%s396_s1 + $0x28] sm:$0xff]   ;;  %25 = vst.msk [vmem:[#allocation2 + $0x8] sm:$0x3] %vm24_vm1, %v289_v22 }
   0x3   :  { %251 = vmatpush3.bf16.msra.mxu0 %v274_v1  ;;  %v279_v6 = vld [vmem:[%s396_s1 + $0x60] sm:$0xff]   ;;  %v281_v8 = vld [vmem:[%s396_s1 + $0x58] sm:$0xff]   ;;  %v283_v10 = vld [vmem:[%s396_s1 + $0x50] sm:$0xff]  }
   0x4   :  { %252 = vmatprep.subr.bf16.mxu0 %v275_v2  ;;  %v280_v7 = vld [vmem:[%s396_s1 + $0x20] sm:$0xff]   ;;  %v282_v9 = vld [vmem:[%s396_s1 + $0x18] sm:$0xff]   ;;  %v29_v11 = vld [vmem:[%s397_s0 + $0x8] sm:$0xff] }
   0x5   :  { %v31_v12 = vld [vmem:[%s397_s0 + $0x18] sm:$0x3]  ;;  %v284_v14 = vld [vmem:[%s396_s1 + $0x10] sm:$0xff]   ;;  %v285_v15 = vld [vmem:[%s396_s1 + $0x48] sm:$0xff]  }
   0x6   :  { %v33_v13 = vpack.c.bf16 %v31_v12, %v29_v11  ;;  %v286_v16 = vld [vmem:[%s396_s1 + $0x8] sm:$0xff]   ;;  %v287_v17 = vld [vmem:[%s396_s1 + $0x40] sm:$0xff]   ;;  %v30_v20 = vld [vmem:[%s397_s0 + $0x10] sm:$0x3] }
   0x7   :  { %253 = vmatpush3.bf16.msra.mxu0 %v276_v3  ;;  %v288_v18 = vld [vmem:[%s396_s1] sm:$0xff]   ;;  %v224_v39 = vld [vmem:[%s399_s3 + $0x8] sm:$0x3] }
   0x8   :  { %254 = vmatprep.subr.bf16.mxu0 %v277_v4  ;;  %194 = vmatprep.mubr.bf16.mxu0 %v33_v13  ;;  %v28_v19 = vld [vmem:[%s397_s0] sm:$0xff] }
   0x9   :  { %v32_v21 = vpack.c.bf16 %v30_v20, %v28_v19  ;;  %v26_v24 = vld [vmem:[#allocation2] sm:$0xff]  ;;  %v27_v29 = vld [vmem:[#allocation2 + $0x8] sm:$0x3] }
   0xa   :  { %v249_v33 = vld [vmem:[%s398_s2] ss:$0 sm:$0xff] }
   0xb   :  { %255 = vmatpush3.bf16.msra.mxu0 %v278_v5  ;;  %v223_v35 = vld [vmem:[%s399_s3] sm:$0xff] }
   0xc   :  { %256 = vmatprep.subr.bf16.mxu0 %v279_v6 }
   0xf   :  { %257 = vmatpush3.bf16.msra.mxu0 %v280_v7 }
  0x10   :  { %258 = vmatprep.subr.bf16.mxu0 %v281_v8 }
  0x13   :  { %259 = vmatpush3.bf16.msra.mxu0 %v282_v9 }
  0x14   :  { %260 = vmatprep.subr.bf16.mxu0 %v283_v10 }
  0x17   :  { %261 = vmatpush3.bf16.msra.mxu0 %v284_v14 }
  0x18   :  { %262 = vmatprep.subr.bf16.mxu0 %v285_v15 }
  0x1b   :  { %263 = vmatpush3.bf16.msra.mxu0 %v286_v16 }
  0x1c   :  { %264 = vmatprep.subr.bf16.mxu0 %v287_v17 }
  0x1f   :  { %265 = vmatpush3.bf16.msra.mxu0 %v288_v18 }
  0x22   :  { %195 = vmatmul.mubr.bf16.vlgmr.msra.gmra.mxu0 %v32_v21 }
  0xe2   :  { %v266_v23 = vpop.f32.mrf.mxu0 }
  0xe4   :  { %v267_v25 = vpop.f32.mrf.mxu0 }
  0xe5   :  { %v268_v26 = vadd.f32 %v267_v25, %v266_v23 }
  0xe6   :  { %v269_v27 = vpop.f32.mrf.mxu0 }
  0xe7   :  { %v203_v28 = vadd.f32 %v268_v26, %v26_v24 }
  0xe8   :  { %v270_v30 = vpop.f32.mrf.mxu0 }
  0xe9   :  { %206 = vst.msk [vmem:[#allocation2] sm:$0xff] %vm22_vm0, %v203_v28  ;;  %v271_v31 = vadd.f32 %v270_v30, %v269_v27 }
  0xeb   :  { %v204_v32 = vadd.f32 %v271_v31, %v27_v29 }
  0xed   :  { %208 = vst.msk [vmem:[#allocation2 + $0x8] sm:$0x3] %vm24_vm1, %v204_v32 }
  0xf0   :  { %v212_v34 = vld [vmem:[#allocation2] sm:$0xff] }
  0xf1   :  { %v221_v36 = vadd.f32 %v249_v33, %v212_v34 }
  0xf3   :  { %v225_v37 = vadd.f32 %v223_v35, %v221_v36 }
  0xf4   :  { %v213_v38 = vld [vmem:[#allocation2 + $0x8] sm:$0x3] }
  0xf5   :  { %227 = vst.msk [vmem:[%s400_s4] sm:$0xff] %vm22_vm0, %v225_v37  ;;  %v222_v40 = vadd.f32 %v249_v33, %v213_v38 }
  0xf7   :  { %v226_v41 = vadd.f32 %v224_v39, %v222_v40 }
  0xf9   :  { %228 = vst.msk [vmem:[%s400_s4 + $0x8] sm:$0x3] %vm24_vm1, %v226_v41 }

// kernel: custom_clip_forward.37
= control target key start
LH: loop header
LB: loop body
LE: loop exit
PB: predicated region body
PF: predicated region fallthrough
CT: control target
= control target key end

     0   :  { %vm19_vm0 = vcmask 517120   ;;  %v173_v7 = vmov 0.0   ;;  %vm174_vm1 = vmmov 0   ;;  %vm83_vm2 = vcmask 523264   ;;  %s228_s0 = inlined_call_operand.vmem [shape: f32[2,64], index: 0, kind: input, shape index: {}]   ;;  %s229_s3 = inlined_call_operand.vmem [shape: bf16[64,64], index: 3, kind: input, shape index: {}]   ;;  %s230_s1 = inlined_call_operand.vmem [shape: f32[1,64], index: 1, kind: input, shape index: {}]   ;;  %s231_s2 = inlined_call_operand.vmem [shape: f32[1,64], index: 2, kind: input, shape index: {}]   ;;  %s232_s4 = inlined_call_operand.vmem [shape: f32[2,64], index: 4, kind: output, shape index: {}]  }
   0x1   :  { %v18_v0 = vld [vmem:[%s228_s0] sm:$0x3]  ;;  %151 = vmatprep.subr.bf16.mxu0 %v173_v7  ;;  %v165_v8 = vld [vmem:[%s229_s3 + $0x18] sm:$0xff]   ;;  %159 = vmatprep.mubr.msk.bf16.mxu0 %vm174_vm1, %v173_v7  ;;  %v166_v9 = vld [vmem:[%s229_s3 + $0x10] sm:$0xff]  }
   0x2   :  { %v20_v1 = vsel %vm19_vm0, %v18_v0, 0.0  ;;  %152 = vmatpush3.bf16.msra.mxu0 %v165_v8  ;;  %v167_v10 = vld [vmem:[%s229_s3 + $0x8] sm:$0xff]   ;;  %v168_v11 = vld [vmem:[%s229_s3] sm:$0xff]  }
   0x3   :  { %21 = vadd.xlane.f32.xlu0 %v20_v1  ;;  %153 = vmatprep.subr.bf16.mxu0 %v173_v7  ;;  %v139_v16 = vld [vmem:[%s230_s1] ss:$0 sm:$0xff] }
   0x4   :  { %v140_v18 = vld [vmem:[%s231_s2] ss:$0 sm:$0xff] }
   0x6   :  { %154 = vmatpush3.bf16.msra.mxu0 %v166_v9 }
   0x7   :  { %155 = vmatprep.subr.bf16.mxu0 %v173_v7 }
   0xa   :  { %156 = vmatpush3.bf16.msra.mxu0 %v167_v10 }
   0xb   :  { %157 = vmatprep.subr.bf16.mxu0 %v173_v7 }
   0xe   :  { %158 = vmatpush3.bf16.msra.mxu0 %v168_v11 }
  0x8c   :  { %v22_v2 = vpop.xlane.xlu0 %21 }
  0x8d   :  { %v24_v3 = vmul.f32 0.015625, %v22_v2 }
  0x8f   :  { %v25_v4 = vsub.f32 %v18_v0, %v24_v3 }
  0x91   :  { %v26_v5 = vmul.f32 %v25_v4, %v25_v4 }
  0x93   :  { %v27_v6 = vsel %vm19_vm0, %v26_v5, 0.0 }
  0x94   :  { %28 = vadd.xlane.f32.xlu0 %v27_v6 }
 0x11d   :  { %v29_v12 = vpop.xlane.xlu0 %28 }
 0x11e   :  { %v30_v13 = vmul.f32 0.015625, %v29_v12 }
 0x120   :  { %v31_v14 = vadd.f32 1e-05, %v30_v13 }
 0x122   :  { %169 = vrsqrt.f32 %v31_v14 }
 0x12f   :  { %v170_v15 = vpop.eup %169 }
 0x130   :  { %v33_v17 = vmul.f32 %v170_v15, %v25_v4 }
 0x132   :  { %v41_v19 = vmul.f32 %v139_v16, %v33_v17 }
 0x134   :  { %v49_v20 = vadd.f32 %v140_v18, %v41_v19 }
 0x136   :  { %v50_v21 = vpack.c.bf16 %v49_v20, %v49_v20 }
 0x138   :  { %160 = vmatmul.mubr.msk.bf16.vlgmr.msra.gmra.mxu0 %vm83_vm2, %v50_v21 }
 0x1f8   :  { %v121_v22 = vpop.f32.mrf.mxu0 }
 0x1f9   :  { %v127_v23 = vmul.f32 %v121_v22, %v121_v22 }
 0x1fa   :  { %v161_v24 = vpop.f32.mrf.mxu0 }
 0x1fb   :  { %v128_v25 = vsel %vm19_vm0, %v127_v23, 0.0 }
 0x1fc   :  { %129 = vadd.xlane.f32.xlu1 %v128_v25  ;;  %v124_v26 = vpop.f32.mrf.mxu0 }
 0x1fe   :  { %v162_v27 = vpop.f32.mrf.mxu0 }
 0x285   :  { %v130_v28 = vpop.xlane.xlu1 %129 }
 0x286   :  { %v131_v29 = vadd.f32 1e-12, %v130_v28 }
 0x288   :  { %171 = vrsqrt.f32 %v131_v29 }
 0x295   :  { %v172_v30 = vpop.eup %171 }
 0x296   :  { %v133_v31 = vmul.f32 %v172_v30, %v121_v22 }
 0x298   :  { %134 = vst.msk [vmem:[%s232_s4] sm:$0x3] %vm19_vm0, %v133_v31 }

// kernel: custom_clip_forward.40
= control target key start
LH: loop header
LB: loop body
LE: loop exit
PB: predicated region body
PF: predicated region fallthrough
CT: control target
= control target key end

     0   :  { %vm22_vm0 = vcmask 523264   ;;  %v248_v0 = vmov 0.0   ;;  %vm249_vm1 = vmmov 0   ;;  %s368_s1 = inlined_call_operand.vmem [shape: bf16[64,64], index: 1, kind: input, shape index: {}]   ;;  %s369_s0 = inlined_call_operand.vmem [shape: f32[48,64], index: 0, kind: input, shape index: {}]   ;;  %s370_s2 = inlined_call_operand.vmem [shape: f32[1,64], index: 2, kind: input, shape index: {}]   ;;  %s371_s3 = inlined_call_operand.vmem [shape: f32[48,64], index: 3, kind: input, shape index: {}]   ;;  %s372_s4 = inlined_call_operand.vmem [shape: f32[48,64], index: 4, kind: output, shape index: {}]  }
   0x1   :  { %234 = vmatprep.subr.bf16.mxu1 %v248_v0  ;;  %v244_v1 = vld [vmem:[%s368_s1 + $0x18] sm:$0xff]   ;;  %214 = vmatprep.subr.bf16.mxu0 %v248_v0  ;;  %23 = vst.msk [vmem:[#allocation2] sm:$0xff] %vm22_vm0, %v248_v0  ;;  %24 = vst.msk [vmem:[#allocation2 + $0x8] sm:$0xff] %vm22_vm0, %v248_v0  ;;  %v245_v2 = vld [vmem:[%s368_s1 + $0x10] sm:$0xff]  }
   0x2   :  { %25 = vst.msk [vmem:[#allocation2 + $0x10] sm:$0xff] %vm22_vm0, %v248_v0  ;;  %26 = vst.msk [vmem:[#allocation2 + $0x18] sm:$0xff] %vm22_vm0, %v248_v0  ;;  %226 = vmatprep.mubr.msk.bf16.mxu1 %vm249_vm1, %v248_v0  ;;  %222 = vmatprep.mubr.msk.bf16.mxu0 %vm249_vm1, %v248_v0  ;;  %v246_v3 = vld [vmem:[%s368_s1 + $0x8] sm:$0xff]   ;;  %v247_v4 = vld [vmem:[%s368_s1] sm:$0xff]  }
   0x3   :  { %27 = vst.msk [vmem:[#allocation2 + $0x20] sm:$0xff] %vm22_vm0, %v248_v0  ;;  %28 = vst.msk [vmem:[#allocation2 + $0x28] sm:$0xff] %vm22_vm0, %v248_v0  ;;  %238 = vmatpush3.bf16.msra.mxu1 %v244_v1  ;;  %215 = vmatpush3.bf16.msra.mxu0 %v244_v1  ;;  %v37_v5 = vld [vmem:[%s369_s0 + $0x10] sm:$0xff]  ;;  %v38_v6 = vld [vmem:[%s369_s0 + $0x18] sm:$0xff] }
   0x4   :  { %235 = vmatprep.subr.bf16.mxu1 %v248_v0  ;;  %216 = vmatprep.subr.bf16.mxu0 %v248_v0  ;;  %v35_v7 = vld [vmem:[%s369_s0] sm:$0xff]  ;;  %v36_v8 = vld [vmem:[%s369_s0 + $0x8] sm:$0xff]  ;;  %v42_v9 = vpack.c.bf16 %v38_v6, %v37_v5  ;;  %v179_v33 = vld [vmem:[%s371_s3 + $0x10] sm:$0xff] }
   0x5   :  { %v41_v10 = vpack.c.bf16 %v36_v8, %v35_v7  ;;  %v39_v11 = vld [vmem:[%s369_s0 + $0x20] sm:$0xff]  ;;  %v40_v12 = vld [vmem:[%s369_s0 + $0x28] sm:$0xff]  ;;  %v180_v45 = vld [vmem:[%s371_s3 + $0x18] sm:$0xff] }
   0x6   :  { %v43_v13 = vpack.c.bf16 %v40_v12, %v39_v11  ;;  %v206_v31 = vld [vmem:[%s370_s2] ss:$0 sm:$0xff]  ;;  %v178_v49 = vld [vmem:[%s371_s3 + $0x8] sm:$0xff] }
   0x7   :  { %239 = vmatpush3.bf16.msra.mxu1 %v245_v2  ;;  %217 = vmatpush3.bf16.msra.mxu0 %v245_v2  ;;  %v177_v38 = vld [vmem:[%s371_s3] sm:$0xff]  ;;  %v182_v60 = vld [vmem:[%s371_s3 + $0x28] sm:$0xff] }
   0x8   :  { %236 = vmatprep.subr.bf16.mxu1 %v248_v0  ;;  %218 = vmatprep.subr.bf16.mxu0 %v248_v0  ;;  %v29_v15 = vld [vmem:[#allocation2] sm:$0xff]  ;;  %v30_v23 = vld [vmem:[#allocation2 + $0x8] sm:$0xff] }
   0x9   :  { %v31_v14 = vld [vmem:[#allocation2 + $0x10] sm:$0xff]  ;;  %v32_v22 = vld [vmem:[#allocation2 + $0x18] sm:$0xff]  ;;  %v181_v56 = vld [vmem:[%s371_s3 + $0x20] sm:$0xff] }
   0xa   :  { %v33_v30 = vld [vmem:[#allocation2 + $0x20] sm:$0xff]  ;;  %v34_v35 = vld [vmem:[#allocation2 + $0x28] sm:$0xff] }
   0xb   :  { %240 = vmatpush3.bf16.msra.mxu1 %v246_v3  ;;  %219 = vmatpush3.bf16.msra.mxu0 %v246_v3 }
   0xc   :  { %237 = vmatprep.subr.bf16.mxu1 %v248_v0  ;;  %220 = vmatprep.subr.bf16.mxu0 %v248_v0 }
   0xf   :  { %241 = vmatpush3.bf16.msra.mxu1 %v247_v4  ;;  %221 = vmatpush3.bf16.msra.mxu0 %v247_v4 }
  0x12   :  { %227 = vmatmul.mubr.msk.bf16.vlgmr.msra.gmra.mxu1 %vm22_vm0, %v42_v9  ;;  %223 = vmatmul.mubr.msk.bf16.vlgmr.msra.gmra.mxu0 %vm22_vm0, %v41_v10 }
  0x13   :  { %230 = vmatprep.mubr.msk.bf16.mxu1 %vm249_vm1, %v248_v0 }
  0x1a   :  { %231 = vmatmul.mubr.msk.bf16.gmra.mxu1 %vm22_vm0, %v43_v13 }
  0xd2   :  { %v128_v16 = vpop.f32.mrf.mxu1  ;;  %v120_v17 = vpop.f32.mrf.mxu0 }
  0xd3   :  { %v145_v18 = vadd.f32 %v128_v16, %v31_v14  ;;  %v143_v19 = vadd.f32 %v120_v17, %v29_v15 }
  0xd4   :  { %v228_v20 = vpop.f32.mrf.mxu1  ;;  %v224_v21 = vpop.f32.mrf.mxu0 }
  0xd5   :  { %151 = vst.msk [vmem:[#allocation2 + $0x10] sm:$0xff] %vm22_vm0, %v145_v18  ;;  %149 = vst.msk [vmem:[#allocation2] sm:$0xff] %vm22_vm0, %v143_v19 }
  0xd6   :  { %v131_v24 = vpop.f32.mrf.mxu1  ;;  %v123_v25 = vpop.f32.mrf.mxu0 }
  0xd7   :  { %v146_v26 = vadd.f32 %v131_v24, %v32_v22  ;;  %v144_v27 = vadd.f32 %v123_v25, %v30_v23 }
  0xd8   :  { %v229_v28 = vpop.f32.mrf.mxu1  ;;  %v225_v29 = vpop.f32.mrf.mxu0 }
  0xd9   :  { %152 = vst.msk [vmem:[#allocation2 + $0x18] sm:$0xff] %vm22_vm0, %v146_v26  ;;  %150 = vst.msk [vmem:[#allocation2 + $0x8] sm:$0xff] %vm22_vm0, %v144_v27 }
  0xda   :  { %v136_v32 = vpop.f32.mrf.mxu1 }
  0xdb   :  { %v147_v34 = vadd.f32 %v136_v32, %v33_v30 }
  0xdc   :  { %v160_v36 = vld [vmem:[#allocation2 + $0x10] sm:$0xff]  ;;  %v158_v37 = vld [vmem:[#allocation2] sm:$0xff]  ;;  %v232_v39 = vpop.f32.mrf.mxu1 }
  0xdd   :  { %v173_v40 = vadd.f32 %v206_v31, %v160_v36  ;;  %v171_v41 = vadd.f32 %v206_v31, %v158_v37  ;;  %153 = vst.msk [vmem:[#allocation2 + $0x20] sm:$0xff] %vm22_vm0, %v147_v34 }
  0xde   :  { %v139_v42 = vpop.f32.mrf.mxu1 }
  0xdf   :  { %v185_v43 = vadd.f32 %v179_v33, %v173_v40  ;;  %v183_v44 = vadd.f32 %v177_v38, %v171_v41  ;;  %v148_v46 = vadd.f32 %v139_v42, %v34_v35 }
  0xe0   :  { %v161_v47 = vld [vmem:[#allocation2 + $0x18] sm:$0xff]  ;;  %v159_v48 = vld [vmem:[#allocation2 + $0x8] sm:$0xff]  ;;  %v233_v50 = vpop.f32.mrf.mxu1 }
  0xe1   :  { %191 = vst.msk [vmem:[%s372_s4 + $0x10] sm:$0xff] %vm22_vm0, %v185_v43  ;;  %189 = vst.msk [vmem:[%s372_s4] sm:$0xff] %vm22_vm0, %v183_v44  ;;  %v174_v51 = vadd.f32 %v206_v31, %v161_v47  ;;  %v172_v52 = vadd.f32 %v206_v31, %v159_v48 }
  0xe2   :  { %154 = vst.msk [vmem:[#allocation2 + $0x28] sm:$0xff] %vm22_vm0, %v148_v46 }
  0xe3   :  { %v186_v53 = vadd.f32 %v180_v45, %v174_v51  ;;  %v184_v54 = vadd.f32 %v178_v49, %v172_v52 }
  0xe4   :  { %v162_v55 = vld [vmem:[#allocation2 + $0x20] sm:$0xff] }
  0xe5   :  { %192 = vst.msk [vmem:[%s372_s4 + $0x18] sm:$0xff] %vm22_vm0, %v186_v53  ;;  %190 = vst.msk [vmem:[%s372_s4 + $0x8] sm:$0xff] %vm22_vm0, %v184_v54  ;;  %v175_v57 = vadd.f32 %v206_v31, %v162_v55 }
  0xe7   :  { %v187_v58 = vadd.f32 %v181_v56, %v175_v57 }
  0xe9   :  { %v163_v59 = vld [vmem:[#allocation2 + $0x28] sm:$0xff]  ;;  %193 = vst.msk [vmem:[%s372_s4 + $0x20] sm:$0xff] %vm22_vm0, %v187_v58 }
  0xea   :  { %v176_v61 = vadd.f32 %v206_v31, %v163_v59 }
  0xec   :  { %v188_v62 = vadd.f32 %v182_v60, %v176_v61 }
  0xee   :  { %194 = vst.msk [vmem:[%s372_s4 + $0x28] sm:$0xff] %vm22_vm0, %v188_v62 }

// kernel: custom_clip_forward.38
= control target key start
LH: loop header
LB: loop body
LE: loop exit
PB: predicated region body
PF: predicated region fallthrough
CT: control target
= control target key end

     0   :  { %vm27_vm0 = vcmask 523264   ;;  %v330_v47 = vmov 0   ;;  %s502_s0 = inlined_call_operand.vmem [shape: f32[48,64], index: 0, kind: input, shape index: {}]   ;;  %s503_s3 = inlined_call_operand.vmem [shape: bf16[64,192], index: 3, kind: input, shape index: {}]   ;;  %s504_s1 = inlined_call_operand.vmem [shape: f32[1,64], index: 1, kind: input, shape index: {}]   ;;  %s505_s2 = inlined_call_operand.vmem [shape: f32[1,64], index: 2, kind: input, shape index: {}]   ;;  %s506_s4 = inlined_call_operand.vmem [shape: f32[1,192], index: 4, kind: input, shape index: {}]   ;;  %s507_s5 = inlined_call_operand.vmem [shape: f32[48,192], index: 5, kind: output, shape index: {}]  }
   0x1   :  { %v23_v0 = vld [vmem:[%s502_s0 + $0x10] sm:$0xff]  ;;  %v24_v1 = vld [vmem:[%s502_s0 + $0x18] sm:$0xff]  ;;  %v21_v2 = vld [vmem:[%s502_s0] sm:$0xff]  ;;  %247 = vmatprep.mubr.bf16.mxu1 %v330_v47  ;;  %237 = vmatprep.mubr.bf16.mxu0 %v330_v47 }
   0x2   :  { %v34_v3 = vsel %vm27_vm0, %v23_v0, 0.0  ;;  %v28_v4 = vsel %vm27_vm0, %v21_v2, 0.0  ;;  %v22_v5 = vld [vmem:[%s502_s0 + $0x8] sm:$0xff]  ;;  %v37_v6 = vsel %vm27_vm0, %v24_v1, 0.0  ;;  %v25_v8 = vld [vmem:[%s502_s0 + $0x20] sm:$0xff] }
   0x3   :  { %35 = vadd.xlane.f32.xlu0 %v34_v3  ;;  %29 = vadd.xlane.f32.xlu1 %v28_v4  ;;  %v31_v7 = vsel %vm27_vm0, %v22_v5, 0.0  ;;  %v26_v9 = vld [vmem:[%s502_s0 + $0x28] sm:$0xff]  ;;  %v40_v10 = vsel %vm27_vm0, %v25_v8, 0.0  ;;  %v306_v42 = vld [vmem:[%s503_s3 + $0x34] ss:$8 sps:$4 sm:$0xff]  }
   0x4   :  { %v43_v11 = vsel %vm27_vm0, %v26_v9, 0.0  ;;  %v308_v43 = vld [vmem:[%s503_s3 + $0x30] ss:$8 sps:$4 sm:$0xff]   ;;  %297 = vmatprep.subr.bf16.mxu1 %v306_v42  ;;  %213 = vmatprep.subr.bf16.mxu0 %v306_v42  ;;  %v309_v44 = vld [vmem:[%s503_s3 + $0x24] ss:$8 sps:$4 sm:$0xff]  }
   0x5   :  { %301 = vmatpush1.bf16.msra.mxu1 %v308_v43  ;;  %214 = vmatpush1.bf16.msra.mxu0 %v308_v43  ;;  %v311_v45 = vld [vmem:[%s503_s3 + $0x20] ss:$8 sps:$4 sm:$0xff]   ;;  %v312_v46 = vld [vmem:[%s503_s3 + $0x14] ss:$8 sps:$4 sm:$0xff]   ;;  %v314_v48 = vld [vmem:[%s503_s3 + $0x10] ss:$8 sps:$4 sm:$0xff]  }
   0x6   :  { %298 = vmatprep.subr.bf16.mxu1 %v309_v44  ;;  %215 = vmatprep.subr.bf16.mxu0 %v309_v44  ;;  %v315_v49 = vld [vmem:[%s503_s3 + $0x4] ss:$8 sps:$4 sm:$0xff]   ;;  %v317_v50 = vld [vmem:[%s503_s3] ss:$8 sps:$4 sm:$0xff]  }
   0x7   :  { %38 = vadd.xlane.f32.xlu0 %v37_v6  ;;  %32 = vadd.xlane.f32.xlu1 %v31_v7  ;;  %v284_v7 = vld [vmem:[%s504_s1] ss:$0 sm:$0xff] }
   0x9   :  { %302 = vmatpush1.bf16.msra.mxu1 %v311_v45  ;;  %216 = vmatpush1.bf16.msra.mxu0 %v311_v45 }
   0xa   :  { %299 = vmatprep.subr.bf16.mxu1 %v312_v46  ;;  %217 = vmatprep.subr.bf16.mxu0 %v312_v46 }
   0xb   :  { %41 = vadd.xlane.f32.xlu0 %v40_v10  ;;  %44 = vadd.xlane.f32.xlu1 %v43_v11 }
   0xd   :  { %303 = vmatpush1.bf16.msra.mxu1 %v314_v48  ;;  %218 = vmatpush1.bf16.msra.mxu0 %v314_v48 }
   0xe   :  { %300 = vmatprep.subr.bf16.mxu1 %v315_v49  ;;  %219 = vmatprep.subr.bf16.mxu0 %v315_v49 }
  0x11   :  { %304 = vmatpush1.bf16.msra.mxu1 %v317_v50  ;;  %220 = vmatpush1.bf16.msra.mxu0 %v317_v50 }
  0x8c   :  { %v36_v12 = vpop.xlane.xlu0 %35  ;;  %v30_v13 = vpop.xlane.xlu1 %29 }
  0x8d   :  { %v49_v14 = vmul.f32 0.015625, %v36_v12  ;;  %v47_v15 = vmul.f32 0.015625, %v30_v13  ;;  %v285_v13 = vld [vmem:[%s505_s2] ss:$0 sm:$0xff] }
  0x8f   :  { %v385_v16 = vsub.f32 %v23_v0, %v49_v14  ;;  %v387_v17 = vsub.f32 %v21_v2, %v47_v15 }
  0x90   :  { %v39_v18 = vpop.xlane.xlu0 %38  ;;  %v33_v19 = vpop.xlane.xlu1 %32 }
  0x91   :  { %v50_v20 = vmul.f32 0.015625, %v39_v18  ;;  %v61_v21 = vmul.f32 %v385_v16, %v385_v16  ;;  %v48_v22 = vmul.f32 0.015625, %v33_v19  ;;  %v59_v23 = vmul.f32 %v387_v17, %v387_v17 }
  0x93   :  { %v393_v24 = vsub.f32 %v24_v1, %v50_v20  ;;  %v71_v25 = vsel %vm27_vm0, %v61_v21, 0.0  ;;  %v396_v26 = vsub.f32 %v22_v5, %v48_v22  ;;  %v65_v28 = vsel %vm27_vm0, %v59_v23, 0.0 }
  0x94   :  { %72 = vadd.xlane.f32.xlu0 %v71_v25  ;;  %v42_v27 = vpop.xlane.xlu0 %41  ;;  %v45_v29 = vpop.xlane.xlu1 %44 }
  0x95   :  { %v51_v30 = vmul.f32 0.015625, %v42_v27  ;;  %v62_v31 = vmul.f32 %v393_v24, %v393_v24  ;;  %v52_v32 = vmul.f32 0.015625, %v45_v29  ;;  %v60_v33 = vmul.f32 %v396_v26, %v396_v26 }
  0x97   :  { %v403_v34 = vsub.f32 %v25_v8, %v51_v30  ;;  %v74_v35 = vsel %vm27_vm0, %v62_v31, 0.0  ;;  %v406_v36 = vsub.f32 %v26_v9, %v52_v32  ;;  %v68_v38 = vsel %vm27_vm0, %v60_v33, 0.0 }
  0x98   :  { %75 = vadd.xlane.f32.xlu1 %v74_v35  ;;  %66 = vadd.xlane.f32.xlu0 %v65_v28 }
  0x99   :  { %v63_v37 = vmul.f32 %v403_v34, %v403_v34  ;;  %v64_v39 = vmul.f32 %v406_v36, %v406_v36 }
  0x9b   :  { %v77_v40 = vsel %vm27_vm0, %v63_v37, 0.0  ;;  %v80_v41 = vsel %vm27_vm0, %v64_v39, 0.0 }
  0x9c   :  { %78 = vadd.xlane.f32.xlu0 %v77_v40  ;;  %69 = vadd.xlane.f32.xlu1 %v68_v38 }
  0xa0   :  { %81 = vadd.xlane.f32.xlu1 %v80_v41 }
 0x11d   :  { %v73_v51 = vpop.xlane.xlu0 %72 }
 0x11e   :  { %v85_v52 = vmul.f32 0.015625, %v73_v51 }
 0x120   :  { %v91_v53 = vadd.f32 1e-05, %v85_v52 }
 0x121   :  { %v67_v54 = vpop.xlane.xlu0 %66  ;;  %v76_v55 = vpop.xlane.xlu1 %75 }
 0x122   :  { %318 = vrsqrt.f32 %v91_v53  ;;  %v83_v56 = vmul.f32 0.015625, %v67_v54  ;;  %v86_v57 = vmul.f32 0.015625, %v76_v55 }
 0x124   :  { %v89_v58 = vadd.f32 1e-05, %v83_v56  ;;  %v92_v59 = vadd.f32 1e-05, %v86_v57 }
 0x125   :  { %v79_v60 = vpop.xlane.xlu0 %78  ;;  %v70_v61 = vpop.xlane.xlu1 %69 }
 0x126   :  { %320 = vrsqrt.f32 %v89_v58  ;;  %v87_v62 = vmul.f32 0.015625, %v79_v60  ;;  %v84_v63 = vmul.f32 0.015625, %v70_v61 }
 0x127   :  { %322 = vrsqrt.f32 %v92_v59 }
 0x128   :  { %v93_v0 = vadd.f32 1e-05, %v87_v62  ;;  %v90_v1 = vadd.f32 1e-05, %v84_v63 }
 0x129   :  { %v82_v2 = vpop.xlane.xlu1 %81 }
 0x12a   :  { %324 = vrsqrt.f32 %v93_v0  ;;  %v88_v3 = vmul.f32 0.015625, %v82_v2 }
 0x12b   :  { %326 = vrsqrt.f32 %v90_v1 }
 0x12c   :  { %v94_v4 = vadd.f32 1e-05, %v88_v3 }
 0x12e   :  { %328 = vrsqrt.f32 %v94_v4 }
 0x12f   :  { %v319_v5 = vpop.eup %318 }
 0x130   :  { %v103_v6 = vmul.f32 %v319_v5, %v385_v16 }
 0x132   :  { %v116_v11 = vmul.f32 %v284_v7, %v103_v6 }
 0x133   :  { %v321_v8 = vpop.eup %320 }
 0x134   :  { %v323_v9 = vpop.eup %322  ;;  %v101_v12 = vmul.f32 %v321_v8, %v387_v17  ;;  %v129_v19 = vadd.f32 %v285_v13, %v116_v11 }
 0x135   :  { %v104_v10 = vmul.f32 %v323_v9, %v393_v24 }
 0x136   :  { %v114_v22 = vmul.f32 %v284_v7, %v101_v12 }
 0x137   :  { %v325_v14 = vpop.eup %324  ;;  %v117_v15 = vmul.f32 %v284_v7, %v104_v10 }
 0x138   :  { %v327_v18 = vpop.eup %326  ;;  %v105_v16 = vmul.f32 %v325_v14, %v403_v34  ;;  %v127_v28 = vadd.f32 %v285_v13, %v114_v22  ;;  %v146_v34 = vlaneseq }
 0x139   :  { %v130_v20 = vadd.f32 %v285_v13, %v117_v15  ;;  %v102_v21 = vmul.f32 %v327_v18, %v396_v26 }
 0x13a   :  { %v118_v17 = vmul.f32 %v284_v7, %v105_v16  ;;  %v147_v35 = vshrl.u32 %v146_v34, 7 }
 0x13b   :  { %v329_v23 = vpop.eup %328  ;;  %v134_v25 = vpack.c.bf16 %v130_v20, %v129_v19  ;;  %v115_v24 = vmul.f32 %v284_v7, %v102_v21 }
 0x13c   :  { %v106_v27 = vmul.f32 %v329_v23, %v406_v36  ;;  %v131_v32 = vadd.f32 %v285_v13, %v118_v17  ;;  %v148_v37 = vsub.s32 0, %v147_v35  ;;  %v144_v36 = vld [vmem:[%s506_s4] sm:$0x3]  ;;  %v152_v38 = vsub.s32 1, %v147_v35 }
 0x13d   :  { %295 = vmatmul.mubr.msk.bf16.vlgmr.msra.gmra.mxu1 %vm27_vm0, %v134_v25  ;;  %v128_v29 = vadd.f32 %v285_v13, %v115_v24 }
 0x13e   :  { %257 = vmatprep.mubr.bf16.mxu1 %v330_v47  ;;  %v119_v30 = vmul.f32 %v284_v7, %v106_v27  ;;  %v149_v39 = vrot.slane %v144_v36, %v148_v37  ;;  %v153_v40 = vrot.slane %v144_v36, %v152_v38 }
 0x13f   :  { %v133_v31 = vpack.c.bf16 %v128_v29, %v127_v28 }
 0x140   :  { %v132_v33 = vadd.f32 %v285_v13, %v119_v30 }
 0x141   :  { %294 = vmatmul.mubr.msk.bf16.vlgmr.msra.gmra.mxu0 %vm27_vm0, %v133_v31 }
 0x142   :  { %v135_v26 = vpack.c.bf16 %v132_v33, %v131_v32 }
 0x145   :  { %296 = vmatmul.mubr.msk.bf16.gmra.mxu1 %vm27_vm0, %v135_v26 }
 0x1fd   :  { %v249_v41 = vpop.f32.mrf.mxu1 }
 0x1fe   :  { %v250_v42 = vadd.f32 %v249_v41, %v149_v39 }
 0x1ff   :  { %v251_v43 = vpop.f32.mrf.mxu1 }
 0x200   :  { %272 = vst [vmem:[%s507_s5 + $0x20] sm:$0xff] %v250_v42  ;;  %v252_v44 = vadd.f32 %v251_v43, %v153_v40 }
 0x201   :  { %v239_v45 = vpop.f32.mrf.mxu0  ;;  %v253_v46 = vpop.f32.mrf.mxu1 }
 0x202   :  { %273 = vst.msk [vmem:[%s507_s5 + $0x28] sm:$0xff] %vm27_vm0, %v252_v44  ;;  %v240_v47 = vadd.f32 %v239_v45, %v149_v39  ;;  %v254_v48 = vadd.f32 %v253_v46, %v149_v39 }
 0x203   :  { %v241_v49 = vpop.f32.mrf.mxu0  ;;  %v255_v50 = vpop.f32.mrf.mxu1 }
 0x204   :  { %268 = vst [vmem:[%s507_s5] sm:$0xff] %v240_v47  ;;  %274 = vst [vmem:[%s507_s5 + $0x30] sm:$0xff] %v254_v48  ;;  %v242_v51 = vadd.f32 %v241_v49, %v153_v40  ;;  %v256_v52 = vadd.f32 %v255_v50, %v153_v40 }
 0x205   :  { %v243_v53 = vpop.f32.mrf.mxu0  ;;  %v259_v54 = vpop.f32.mrf.mxu1 }
 0x206   :  { %269 = vst.msk [vmem:[%s507_s5 + $0x8] sm:$0xff] %vm27_vm0, %v242_v51  ;;  %275 = vst.msk [vmem:[%s507_s5 + $0x38] sm:$0xff] %vm27_vm0, %v256_v52  ;;  %v244_v55 = vadd.f32 %v243_v53, %v149_v39  ;;  %v260_v56 = vadd.f32 %v259_v54, %v149_v39 }
 0x207   :  { %v245_v57 = vpop.f32.mrf.mxu0  ;;  %v261_v58 = vpop.f32.mrf.mxu1 }
 0x208   :  { %270 = vst [vmem:[%s507_s5 + $0x10] sm:$0xff] %v244_v55  ;;  %276 = vst [vmem:[%s507_s5 + $0x40] sm:$0xff] %v260_v56  ;;  %v246_v59 = vadd.f32 %v245_v57, %v153_v40  ;;  %v262_v60 = vadd.f32 %v261_v58, %v153_v40 }
 0x209   :  { %v263_v61 = vpop.f32.mrf.mxu1 }
 0x20a   :  { %271 = vst.msk [vmem:[%s507_s5 + $0x18] sm:$0xff] %vm27_vm0, %v246_v59  ;;  %277 = vst.msk [vmem:[%s507_s5 + $0x48] sm:$0xff] %vm27_vm0, %v262_v60  ;;  %v264_v62 = vadd.f32 %v263_v61, %v149_v39 }
 0x20b   :  { %v265_v63 = vpop.f32.mrf.mxu1 }
 0x20c   :  { %278 = vst [vmem:[%s507_s5 + $0x50] sm:$0xff] %v264_v62  ;;  %v266_v0 = vadd.f32 %v265_v63, %v153_v40 }
 0x20e   :  { %279 = vst.msk [vmem:[%s507_s5 + $0x58] sm:$0xff] %vm27_vm0, %v266_v0 }

// kernel: custom_clip_forward.39
= control target key start
LH: loop header
LB: loop body
LE: loop exit
PB: predicated region body
PF: predicated region fallthrough
CT: control target
= control target key end

     0   :  { %s884_s6 = smov 0   ;;  %s1004_s0 = inlined_call_operand.vmem [shape: f32[3,16,192], index: 0, kind: input, shape index: {}]   ;;  %s1005_s1 = inlined_call_operand.vmem [shape: f32[3,16,64], index: 1, kind: output, shape index: {}]  }
   0x1 LB: > { %s721_s7 = sadd.s32 4294967295, %s862_s6   ;;  %p725_p0 = scmp.ge.s32.totalorder %s862_s6, 1  ;;  %s862_s6 = sphi %s884_s6, %s11_s6  }
   0x2   : > { %p87_p1 = scmp.lt.s32.totalorder %s862_s6, 4 }
   0x4   : > { %p88_p2 = pnand %p725_p0, %p87_p1 }
   0x5   : > { %p107_p3 = scmp.lt.s32.totalorder (!%p88_p2), %s721_s7, 2  ;;  %s866_s12 = smov (!%p88_p2), 64  }
   0x6   : > { %91 = sbr.rel (%p88_p2) target bundleno = 1553 (0x611), region = 24  ;;  %s868_s13 = smov (!%p88_p2), 48  }
   0x7   : > { %s869_s14 = smov (!%p88_p2), 96   ;;  %s870_s15 = smov (!%p88_p2), 112  }
   0x8   : > { %s871_s16 = smov (!%p88_p2), 32   ;;  %s872_s17 = smov (!%p88_p2), 16  }
   0x9   : > { %s873_s18 = smov (!%p88_p2), 80  }
   0xb   : > { %v864_v0 = vmov 0.0   ;;  %vm865_vm0 = vmmov 0   ;;  %s1007_s7 = smov (!%p107_p3, %s721_s7), 2  ;;  %vm135_vm1 = vcmask 130048   ;;  %v122_v6 = vlaneseq }
   0xc   : > { %758 = vmatprep.subr.bf16.mxu0 %v864_v0  ;;  %760 = vmatprep.mubr.msk.bf16.mxu0 %vm865_vm0, %v864_v0  ;;  %s740_s8 = sshll.u32 %s1007_s7, 5  ;;  %v867_v11 = vmov -1e+09   ;;  %s741_s19 = sshll.u32 %s1007_s7, 4  ;;  %vm657_vm4 = vcmask 261120   ;;  %vm660_vm5 = vcmask 392192  }
   0xd   : > { %764 = vmatprep.subr.bf16.mxu1 %v864_v0  ;;  %766 = vmatprep.mubr.msk.bf16.mxu1 %vm865_vm0, %v864_v0  ;;  %s904_s11 = scalar_lea.vmem %s1004_s0, %s740_s8  ;;  %v123_v7 = vshrl.u32 %v122_v6, 7  ;;  %v126_v8 = vand.u32 127, %v122_v6  ;;  %s116_s22 = scalar_lea.vmem %s1005_s1, %s741_s19  ;;  %vm663_vm6 = vcmask 523264  }
   0xe   : > { %v118_v1 = vld [vmem:[%s904_s11] sm:$0xff]  ;;  %v120_v2 = vld [vmem:[%s904_s11 + $0x10] sm:$0xff]  ;;  %v119_v33 = vld [vmem:[%s904_s11 + $0x8] sm:$0xff] }
   0xf   : > { %v131_v3 = vpack.c.bf16 %v120_v2, %v118_v1  ;;  %vm127_vm2 = vcmp.le.s32.totalorder %v126_v8, %v123_v7  ;;  %v124_v9 = vadd.s32 8, %v123_v7  ;;  %v121_v34 = vld [vmem:[%s904_s11 + $0x18] sm:$0xff] }
  0x10   : > { %v913_v12 = vsel %vm127_vm2, 0.0, %v867_v11  ;;  %v927_v35 = vpack.c.bf16 %v121_v34, %v119_v33 }
  0x11   : > { %133 = vrot.lane.b32.xlu0 %v131_v3, %s866_s12  ;;  %vm128_vm3 = vcmp.le.s32.totalorder %v126_v8, %v124_v9 }
  0x12   : > { %v916_v17 = vsel %vm128_vm3, 0.0, %v867_v11  ;;  %765 = vmatpush3.bf16.msra.mxu1 %v927_v35 }
  0x13   : > { %770 = vmatprep.subr.bf16.mxu1 %v864_v0 }
  0x83   : > { %v134_v4 = vpop.permute.xlu0 %133 }
  0x84   : > { %v140_v5 = vsel %vm135_vm1, %v134_v4, 0 }
  0x85   : > { %759 = vmatpush3.bf16.xpose.msra.mxu0 %v140_v5 }
  0x86   : > { %776 = vmatprep.subr.bf16.mxu0 %v864_v0 }
  0x8c   : > { %761 = vmatmul.mubr.msk.bf16.vlgmr.msra.gmra.mxu0 %vm135_vm1, %v131_v3 }
  0x8d   : > { %778 = vmatprep.mubr.msk.bf16.mxu0 %vm865_vm0, %v864_v0 }
 0x14c   : > { %v176_v10 = vpop.f32.mrf.mxu0 }
 0x14d   : > { %v183_v13 = vmul.f32 0.25, %v176_v10 }
 0x14e   : > { %v762_v14 = vpop.f32.mrf.mxu0 }
 0x14f   : > { %v185_v15 = vadd.f32 %v183_v13, %v913_v12 }
 0x150   : > { %v179_v16 = vpop.f32.mrf.mxu0 }
 0x151   : > { %v184_v18 = vmul.f32 0.25, %v179_v16  ;;  %v187_v19 = vsel %vm135_vm1, %v185_v15, -inf }
 0x152   : > { %188 = vmax.xlane.f32.xlu0 %v187_v19  ;;  %v763_v20 = vpop.f32.mrf.mxu0 }
 0x153   : > { %v186_v21 = vadd.f32 %v184_v18, %v916_v17 }
 0x155   : > { %v190_v22 = vsel %vm135_vm1, %v186_v21, -inf }
 0x156   : > { %191 = vmax.xlane.f32.xlu1 %v190_v22 }
 0x167   : > { %257 = vrot.lane.b32.xlu1 %v131_v3, %s868_s13 }
 0x168   : > { %381 = vrot.lane.b32.xlu0 %v131_v3, %s869_s14 }
 0x1db   : > { %v189_v23 = vpop.xlane.xlu0 %188 }
 0x1dc   : > { %v193_v24 = vsub.f32 %v185_v15, %v189_v23 }
 0x1de   : > { %v195_v25 = vmul.f32 1.442695, %v193_v24 }
 0x1df   : > { %v192_v26 = vpop.xlane.xlu1 %191  ;;  %v382_v49 = vpop.permute.xlu0 %381 }
 0x1e0   : > { %824 = vpow2.f32 %v195_v25  ;;  %v194_v27 = vsub.f32 %v186_v21, %v192_v26 }
 0x1e2   : > { %v197_v28 = vmul.f32 1.442695, %v194_v27 }
 0x1e3   : > { %v258_v36 = vpop.permute.xlu1 %257 }
 0x1e4   : > { %826 = vpow2.f32 %v197_v28  ;;  %v263_v45 = vsel %vm135_vm1, %v258_v36, 0 }
 0x1ed   : > { %v825_v29 = vpop.eup %824 }
 0x1ee   : > { %v199_v30 = vsel %vm135_vm1, %v825_v29, 0.0 }
 0x1ef   : > { %200 = vadd.xlane.f32.xlu1 %v199_v30 }
 0x1f1   : > { %v827_v31 = vpop.eup %826 }
 0x1f2   : > { %v202_v32 = vsel %vm135_vm1, %v827_v31, 0.0 }
 0x1f3   : > { %203 = vadd.xlane.f32.xlu1 %v202_v32 }
 0x204   : > { %255 = vrot.lane.b32.xlu1 %v131_v3, %s870_s15 }
 0x208   : > { %383 = vrot.lane.b32.xlu1 %v131_v3, %s871_s16 }
 0x20c   : > { %508 = vrot.lane.b32.xlu1 %v131_v3, %s872_s17 }
 0x210   : > { %506 = vrot.lane.b32.xlu1 %v131_v3, %s873_s18 }
 0x278   : > { %v201_v37 = vpop.xlane.xlu1 %200 }
 0x279   : > { %828 = vrcp.f32 %v201_v37 }
 0x27c   : > { %v204_v38 = vpop.xlane.xlu1 %203 }
 0x27d   : > { %830 = vrcp.f32 %v204_v38 }
 0x280   : > { %v256_v43 = vpop.permute.xlu1 %255 }
 0x284   : > { %v384_v46 = vpop.permute.xlu1 %383 }
 0x285   : > { %v389_v47 = vsel %vm135_vm1, %v384_v46, 0 }
 0x286   : > { %v829_v39 = vpop.eup %828 }
 0x287   : > { %v207_v41 = vmul.f32 %v829_v39, %v825_v29 }
 0x288   : > { %v509_v48 = vpop.permute.xlu1 %508 }
 0x289   : > { %v514_v50 = vsel %vm135_vm1, %v509_v48, 0 }
 0x28a   : > { %v831_v40 = vpop.eup %830 }
 0x28b   : > { %v208_v42 = vmul.f32 %v831_v40, %v827_v31 }
 0x28c   : > { %v507_v51 = vpop.permute.xlu1 %506 }
 0x28d   : > { %v209_v44 = vpack.c.bf16 %v208_v42, %v207_v41 }
 0x28f   : > { %767 = vmatmul.mubr.msk.bf16.vlgmr.msra.gmra.mxu1 %vm135_vm1, %v209_v44 }
 0x290   : > { %771 = vmatpush3.bf16.xpose.msra.mxu1 %v263_v45  ;;  %772 = vmatprep.mubr.msk.bf16.mxu1 %vm865_vm0, %v864_v0 }
 0x291   : > { %782 = vmatprep.subr.bf16.mxu1 %v864_v0 }
 0x297   : > { %773 = vmatmul.mubr.msk.bf16.vlgmr.msra.gmra.mxu1 %vm135_vm1, %v256_v43 }
 0x298   : > { %783 = vmatpush3.bf16.xpose.msra.mxu1 %v389_v47  ;;  %784 = vmatprep.mubr.msk.bf16.mxu1 %vm865_vm0, %v864_v0 }
 0x299   : > { %794 = vmatprep.subr.bf16.mxu1 %v864_v0 }
 0x29f   : > { %785 = vmatmul.mubr.msk.bf16.vlgmr.msra.gmra.mxu1 %vm135_vm1, %v382_v49 }
 0x2a0   : > { %795 = vmatpush3.bf16.xpose.msra.mxu1 %v514_v50  ;;  %796 = vmatprep.mubr.msk.bf16.mxu1 %vm865_vm0, %v864_v0 }
 0x2a7   : > { %797 = vmatmul.mubr.msk.bf16.vlgmr.msra.gmra.mxu1 %vm135_vm1, %v507_v51 }
 0x34f   : > { %v950_v52 = vpop.f32.mrf.mxu1 }
 0x351   : > { %v768_v53 = vpop.f32.mrf.mxu1 }
 0x353   : > { %v952_v54 = vpop.f32.mrf.mxu1 }
 0x355   : > { %v769_v55 = vpop.f32.mrf.mxu1 }
 0x357   : > { %v299_v56 = vpop.f32.mrf.mxu1 }
 0x358   : > { %v306_v57 = vmul.f32 0.25, %v299_v56 }
 0x359   : > { %v774_v58 = vpop.f32.mrf.mxu1 }
 0x35a   : > { %v308_v59 = vadd.f32 %v306_v57, %v913_v12 }
 0x35b   : > { %v302_v60 = vpop.f32.mrf.mxu1 }
 0x35c   : > { %v307_v61 = vmul.f32 0.25, %v302_v60  ;;  %v310_v62 = vsel %vm135_vm1, %v308_v59, -inf }
 0x35d   : > { %311 = vmax.xlane.f32.xlu1 %v310_v62  ;;  %v775_v63 = vpop.f32.mrf.mxu1 }
 0x35e   : > { %v309_v1 = vadd.f32 %v307_v61, %v916_v17 }
 0x35f   : > { %v425_v2 = vpop.f32.mrf.mxu1 }
 0x360   : > { %v432_v3 = vmul.f32 0.25, %v425_v2  ;;  %v313_v4 = vsel %vm135_vm1, %v309_v1, -inf }
 0x361   : > { %314 = vmax.xlane.f32.xlu0 %v313_v4  ;;  %v786_v5 = vpop.f32.mrf.mxu1 }
 0x362   : > { %v434_v6 = vadd.f32 %v432_v3, %v913_v12 }
 0x363   : > { %v428_v7 = vpop.f32.mrf.mxu1 }
 0x364   : > { %v433_v8 = vmul.f32 0.25, %v428_v7  ;;  %v436_v9 = vsel %vm135_vm1, %v434_v6, -inf }
 0x365   : > { %437 = vmax.xlane.f32.xlu1 %v436_v9  ;;  %v787_v10 = vpop.f32.mrf.mxu1 }
 0x366   : > { %v435_v11 = vadd.f32 %v433_v8, %v916_v17 }
 0x367   : > { %v550_v13 = vpop.f32.mrf.mxu1 }
 0x368   : > { %v557_v14 = vmul.f32 0.25, %v550_v13  ;;  %v439_v15 = vsel %vm135_vm1, %v435_v11, -inf }
 0x369   : > { %440 = vmax.xlane.f32.xlu1 %v439_v15  ;;  %v798_v16 = vpop.f32.mrf.mxu1 }
 0x36a   : > { %v559_v18 = vadd.f32 %v557_v14, %v913_v12 }
 0x36b   : > { %v553_v19 = vpop.f32.mrf.mxu1 }
 0x36c   : > { %v558_v20 = vmul.f32 0.25, %v553_v19  ;;  %v561_v21 = vsel %vm135_vm1, %v559_v18, -inf }
 0x36d   : > { %562 = vmax.xlane.f32.xlu0 %v561_v21  ;;  %v799_v22 = vpop.f32.mrf.mxu1 }
 0x36e   : > { %v560_v23 = vadd.f32 %v558_v20, %v916_v17 }
 0x370   : > { %v564_v24 = vsel %vm135_vm1, %v560_v23, -inf }
 0x371   : > { %565 = vmax.xlane.f32.xlu1 %v564_v24 }
 0x3e6   : > { %v312_v25 = vpop.xlane.xlu1 %311 }
 0x3e7   : > { %v316_v26 = vsub.f32 %v308_v59, %v312_v25 }
 0x3e9   : > { %v318_v27 = vmul.f32 1.442695, %v316_v26 }
 0x3ea   : > { %v315_v28 = vpop.xlane.xlu0 %314 }
 0x3eb   : > { %832 = vpow2.f32 %v318_v27  ;;  %v317_v29 = vsub.f32 %v309_v1, %v315_v28 }
 0x3ed   : > { %v320_v30 = vmul.f32 1.442695, %v317_v29 }
 0x3ee   : > { %v438_v31 = vpop.xlane.xlu1 %437 }
 0x3ef   : > { %834 = vpow2.f32 %v320_v30  ;;  %v442_v12 = vsub.f32 %v434_v6, %v438_v31 }
 0x3f1   : > { %v444_v32 = vmul.f32 1.442695, %v442_v12 }
 0x3f2   : > { %v441_v33 = vpop.xlane.xlu1 %440 }
 0x3f3   : > { %836 = vpow2.f32 %v444_v32  ;;  %v443_v34 = vsub.f32 %v435_v11, %v441_v33 }
 0x3f5   : > { %v446_v36 = vmul.f32 1.442695, %v443_v34 }
 0x3f6   : > { %v563_v37 = vpop.xlane.xlu0 %562 }
 0x3f7   : > { %838 = vpow2.f32 %v446_v36  ;;  %v567_v17 = vsub.f32 %v559_v18, %v563_v37 }
 0x3f8   : > { %v833_v38 = vpop.eup %832 }
 0x3f9   : > { %v569_v39 = vmul.f32 1.442695, %v567_v17  ;;  %v322_v40 = vsel %vm135_vm1, %v833_v38, 0.0 }
 0x3fa   : > { %323 = vadd.xlane.f32.xlu0 %v322_v40  ;;  %v566_v49 = vpop.xlane.xlu1 %565 }
 0x3fb   : > { %840 = vpow2.f32 %v569_v39  ;;  %v568_v50 = vsub.f32 %v560_v23, %v566_v49 }
 0x3fc   : > { %v835_v41 = vpop.eup %834 }
 0x3fd   : > { %v325_v42 = vsel %vm135_vm1, %v835_v41, 0.0  ;;  %v571_v51 = vmul.f32 1.442695, %v568_v50 }
 0x3fe   : > { %326 = vadd.xlane.f32.xlu1 %v325_v42 }
 0x3ff   : > { %842 = vpow2.f32 %v571_v51 }
 0x400   : > { %v837_v43 = vpop.eup %836 }
 0x401   : > { %v448_v44 = vsel %vm135_vm1, %v837_v43, 0.0 }
 0x402   : > { %449 = vadd.xlane.f32.xlu0 %v448_v44 }
 0x404   : > { %v839_v45 = vpop.eup %838 }
 0x405   : > { %v451_v46 = vsel %vm135_vm1, %v839_v45, 0.0 }
 0x406   : > { %452 = vadd.xlane.f32.xlu1 %v451_v46 }
 0x408   : > { %v841_v47 = vpop.eup %840 }
 0x409   : > { %v573_v48 = vsel %vm135_vm1, %v841_v47, 0.0 }
 0x40a   : > { %574 = vadd.xlane.f32.xlu0 %v573_v48 }
 0x40c   : > { %v843_v53 = vpop.eup %842 }
 0x40d   : > { %v576_v55 = vsel %vm135_vm1, %v843_v53, 0.0 }
 0x417   : > { %459 = vrot.lane.b32.xlu1 %v927_v35, %s869_s14 }
 0x420   : > { %334 = vrot.lane.b32.xlu0 %v927_v35, %s870_s15 }
 0x43b   : > { %577 = vadd.xlane.f32.xlu1 %v576_v55 }
 0x44c   : > { %584 = vrot.lane.b32.xlu1 %v927_v35, %s873_s18 }
 0x483   : > { %v324_v56 = vpop.xlane.xlu0 %323 }
 0x484   : > { %844 = vrcp.f32 %v324_v56 }
 0x487   : > { %v327_v57 = vpop.xlane.xlu1 %326 }
 0x488   : > { %846 = vrcp.f32 %v327_v57 }
 0x48b   : > { %v450_v58 = vpop.xlane.xlu0 %449 }
 0x48c   : > { %848 = vrcp.f32 %v450_v58 }
 0x48f   : > { %v453_v59 = vpop.xlane.xlu1 %452 }
 0x490   : > { %850 = vrcp.f32 %v453_v59 }
 0x491   : > { %v845_v60 = vpop.eup %844 }
 0x492   : > { %v330_v63 = vmul.f32 %v845_v60, %v833_v38 }
 0x493   : > { %v575_v61 = vpop.xlane.xlu0 %574  ;;  %v460_v35 = vpop.permute.xlu1 %459 }
 0x494   : > { %852 = vrcp.f32 %v575_v61 }
 0x495   : > { %v847_v62 = vpop.eup %846 }
 0x496   : > { %v331_v1 = vmul.f32 %v847_v62, %v835_v41 }
 0x497   : > { %v335_v2 = vpop.permute.xlu0 %334 }
 0x498   : > { %777 = vmatpush3.bf16.msra.mxu0 %v335_v2  ;;  %v332_v3 = vpack.c.bf16 %v331_v1, %v330_v63 }
 0x499   : > { %788 = vmatprep.subr.bf16.mxu0 %v864_v0  ;;  %v849_v4 = vpop.eup %848 }
 0x49a   : > { %v456_v6 = vmul.f32 %v849_v4, %v837_v43 }
 0x49b   : > { %779 = vmatmul.mubr.msk.bf16.vlgmr.msra.gmra.mxu0 %vm135_vm1, %v332_v3 }
 0x49c   : > { %789 = vmatpush3.bf16.msra.mxu0 %v460_v35  ;;  %790 = vmatprep.mubr.msk.bf16.mxu0 %vm865_vm0, %v864_v0 }
 0x49d   : > { %v851_v5 = vpop.eup %850  ;;  %800 = vmatprep.subr.bf16.mxu0 %v864_v0 }
 0x49e   : > { %v457_v7 = vmul.f32 %v851_v5, %v839_v45 }
 0x4a0   : > { %v458_v8 = vpack.c.bf16 %v457_v7, %v456_v6 }
 0x4a1   : > { %v853_v11 = vpop.eup %852 }
 0x4a2   : > { %v581_v14 = vmul.f32 %v853_v11, %v841_v47 }
 0x4a3   : > { %791 = vmatmul.mubr.msk.bf16.vlgmr.msra.gmra.mxu0 %vm135_vm1, %v458_v8 }
 0x4a4   : > { %802 = vmatprep.mubr.msk.bf16.mxu0 %vm865_vm0, %v864_v0 }
 0x4c4   : > { %v578_v9 = vpop.xlane.xlu1 %577 }
 0x4c5   : > { %854 = vrcp.f32 %v578_v9 }
 0x4c8   : > { %v585_v10 = vpop.permute.xlu1 %584 }
 0x4c9   : > { %801 = vmatpush3.bf16.msra.mxu0 %v585_v10 }
 0x4d2   : > { %v855_v13 = vpop.eup %854 }
 0x4d3   : > { %v582_v15 = vmul.f32 %v855_v13, %v843_v53 }
 0x4d5   : > { %v583_v16 = vpack.c.bf16 %v582_v15, %v581_v14 }
 0x4d7   : > { %803 = vmatmul.mubr.msk.bf16.vlgmr.msra.gmra.mxu0 %vm135_vm1, %v583_v16 }
 0x55b   : > { %v374_v18 = vpop.f32.mrf.mxu0 }
 0x55c   : > { %633 = vrot.lane.b32.xlu0 %v374_v18, %s872_s17 }
 0x55d   : > { %v780_v19 = vpop.f32.mrf.mxu0 }
 0x55f   : > { %v377_v20 = vpop.f32.mrf.mxu0 }
 0x560   : > { %635 = vrot.lane.b32.xlu1 %v377_v20, %s872_s17 }
 0x561   : > { %v781_v0 = vpop.f32.mrf.mxu0 }
 0x563   : > { %v499_v21 = vpop.f32.mrf.mxu0 }
 0x564   : > { %641 = vrot.lane.b32.xlu0 %v499_v21, %s871_s16 }
 0x565   : > { %v792_v22 = vpop.f32.mrf.mxu0 }
 0x567   : > { %v502_v23 = vpop.f32.mrf.mxu0 }
 0x568   : > { %643 = vrot.lane.b32.xlu1 %v502_v23, %s871_s16 }
 0x569   : > { %v793_v24 = vpop.f32.mrf.mxu0 }
 0x597   : > { %v624_v25 = vpop.f32.mrf.mxu0 }
 0x598   : > { %649 = vrot.lane.b32.xlu0 %v624_v25, %s868_s13 }
 0x599   : > { %v804_v26 = vpop.f32.mrf.mxu0 }
 0x59b   : > { %v627_v27 = vpop.f32.mrf.mxu0 }
 0x59c   : > { %651 = vrot.lane.b32.xlu1 %v627_v27, %s868_s13 }
 0x59d   : > { %v805_v28 = vpop.f32.mrf.mxu0 }
 0x5ce   : > { %v634_v29 = vpop.permute.xlu0 %633 }
 0x5cf   : > { %v655_v12 = vsel %vm135_vm1, %v950_v52, %v634_v29 }
 0x5d2   : > { %v636_v30 = vpop.permute.xlu1 %635 }
 0x5d3   : > { %v656_v37 = vsel %vm135_vm1, %v952_v54, %v636_v30 }
 0x5d6   : > { %v642_v31 = vpop.permute.xlu0 %641 }
 0x5d7   : > { %v658_v32 = vsel %vm657_vm4, %v655_v12, %v642_v31 }
 0x5da   : > { %v644_v33 = vpop.permute.xlu1 %643 }
 0x5db   : > { %v659_v17 = vsel %vm657_vm4, %v656_v37, %v644_v33 }
 0x60a   : > { %v650_v34 = vpop.permute.xlu0 %649 }
 0x60b   : > { %v661_v36 = vsel %vm660_vm5, %v658_v32, %v650_v34 }
 0x60c   : > { %664 = vst.msk [vmem:[%s116_s22] sm:$0xff] %vm663_vm6, %v661_v36 }
 0x60e   : > { %v652_v38 = vpop.permute.xlu1 %651 }
 0x60f   : > { %v662_v39 = vsel %vm660_vm5, %v659_v17, %v652_v38 }
 0x610   : > { %665 = vst.msk [vmem:[%s116_s22 + $0x8] sm:$0xff] %vm663_vm6, %v662_v39 }
 0x611 PF: > { %s11_s6 = sadd.s32 1, %s862_s6  }
 0x612   : > { %p8_p4 = scmp.ge.s32.totalorder %s11_s6, 5  }
 0x614   :  { %10 = sbr.rel (!%p8_p4) target bundleno = 1 (0x1), region = 54 }

// kernel: custom_clip_forward.41
= control target key start
LH: loop header
LB: loop body
LE: loop exit
PB: predicated region body
PF: predicated region fallthrough
CT: control target
= control target key end

     0   :  { %vm27_vm0 = vcmask 523264   ;;  %v486_v47 = vmov 0   ;;  %s700_s0 = inlined_call_operand.vmem [shape: f32[48,64], index: 0, kind: input, shape index: {}]   ;;  %s701_s3 = inlined_call_operand.vmem [shape: bf16[64,256], index: 3, kind: input, shape index: {}]   ;;  %s702_s1 = inlined_call_operand.vmem [shape: f32[1,64], index: 1, kind: input, shape index: {}]   ;;  %s703_s2 = inlined_call_operand.vmem [shape: f32[1,64], index: 2, kind: input, shape index: {}]   ;;  %s704_s4 = inlined_call_operand.vmem [shape: f32[1,256], index: 4, kind: input, shape index: {}]   ;;  %s705_s5 = inlined_call_operand.vmem [shape: f32[48,256], index: 5, kind: output, shape index: {}]  }
   0x1   :  { %v23_v0 = vld [vmem:[%s700_s0 + $0x10] sm:$0xff]  ;;  %v24_v1 = vld [vmem:[%s700_s0 + $0x18] sm:$0xff]  ;;  %v21_v2 = vld [vmem:[%s700_s0] sm:$0xff]  ;;  %247 = vmatprep.mubr.bf16.mxu1 %v486_v47  ;;  %237 = vmatprep.mubr.bf16.mxu0 %v486_v47 }
   0x2   :  { %v34_v3 = vsel %vm27_vm0, %v23_v0, 0.0  ;;  %v28_v4 = vsel %vm27_vm0, %v21_v2, 0.0  ;;  %v22_v5 = vld [vmem:[%s700_s0 + $0x8] sm:$0xff]  ;;  %v37_v6 = vsel %vm27_vm0, %v24_v1, 0.0  ;;  %v25_v8 = vld [vmem:[%s700_s0 + $0x20] sm:$0xff] }
   0x3   :  { %35 = vadd.xlane.f32.xlu0 %v34_v3  ;;  %29 = vadd.xlane.f32.xlu1 %v28_v4  ;;  %v31_v7 = vsel %vm27_vm0, %v22_v5, 0.0  ;;  %v26_v9 = vld [vmem:[%s700_s0 + $0x28] sm:$0xff]  ;;  %v40_v10 = vsel %vm27_vm0, %v25_v8, 0.0  ;;  %v414_v42 = vld [vmem:[%s701_s3 + $0x34] ss:$8 sps:$4 sm:$0xff]  }
   0x4   :  { %v43_v11 = vsel %vm27_vm0, %v26_v9, 0.0  ;;  %v416_v43 = vld [vmem:[%s701_s3 + $0x30] ss:$8 sps:$4 sm:$0xff]   ;;  %405 = vmatprep.subr.bf16.mxu1 %v414_v42  ;;  %213 = vmatprep.subr.bf16.mxu0 %v414_v42  ;;  %v417_v44 = vld [vmem:[%s701_s3 + $0x24] ss:$8 sps:$4 sm:$0xff]  }
   0x5   :  { %409 = vmatpush1.bf16.msra.mxu1 %v416_v43  ;;  %214 = vmatpush1.bf16.msra.mxu0 %v416_v43  ;;  %v419_v45 = vld [vmem:[%s701_s3 + $0x20] ss:$8 sps:$4 sm:$0xff]   ;;  %v420_v46 = vld [vmem:[%s701_s3 + $0x14] ss:$8 sps:$4 sm:$0xff]   ;;  %v422_v48 = vld [vmem:[%s701_s3 + $0x10] ss:$8 sps:$4 sm:$0xff]  }
   0x6   :  { %406 = vmatprep.subr.bf16.mxu1 %v417_v44  ;;  %215 = vmatprep.subr.bf16.mxu0 %v417_v44  ;;  %v423_v49 = vld [vmem:[%s701_s3 + $0x4] ss:$8 sps:$4 sm:$0xff]   ;;  %v425_v50 = vld [vmem:[%s701_s3] ss:$8 sps:$4 sm:$0xff]  }
   0x7   :  { %38 = vadd.xlane.f32.xlu0 %v37_v6  ;;  %32 = vadd.xlane.f32.xlu1 %v31_v7  ;;  %v380_v7 = vld [vmem:[%s702_s1] ss:$0 sm:$0xff] }
   0x9   :  { %410 = vmatpush1.bf16.msra.mxu1 %v419_v45  ;;  %216 = vmatpush1.bf16.msra.mxu0 %v419_v45 }
   0xa   :  { %407 = vmatprep.subr.bf16.mxu1 %v420_v46  ;;  %217 = vmatprep.subr.bf16.mxu0 %v420_v46 }
   0xb   :  { %41 = vadd.xlane.f32.xlu0 %v40_v10  ;;  %44 = vadd.xlane.f32.xlu1 %v43_v11 }
   0xd   :  { %411 = vmatpush1.bf16.msra.mxu1 %v422_v48  ;;  %218 = vmatpush1.bf16.msra.mxu0 %v422_v48 }
   0xe   :  { %408 = vmatprep.subr.bf16.mxu1 %v423_v49  ;;  %219 = vmatprep.subr.bf16.mxu0 %v423_v49 }
  0x11   :  { %412 = vmatpush1.bf16.msra.mxu1 %v425_v50  ;;  %220 = vmatpush1.bf16.msra.mxu0 %v425_v50 }
  0x8c   :  { %v36_v12 = vpop.xlane.xlu0 %35  ;;  %v30_v13 = vpop.xlane.xlu1 %29 }
  0x8d   :  { %v49_v14 = vmul.f32 0.015625, %v36_v12  ;;  %v47_v15 = vmul.f32 0.015625, %v30_v13  ;;  %v381_v13 = vld [vmem:[%s703_s2] ss:$0 sm:$0xff] }
  0x8f   :  { %v541_v16 = vsub.f32 %v23_v0, %v49_v14  ;;  %v543_v17 = vsub.f32 %v21_v2, %v47_v15 }
  0x90   :  { %v39_v18 = vpop.xlane.xlu0 %38  ;;  %v33_v19 = vpop.xlane.xlu1 %32 }
  0x91   :  { %v50_v20 = vmul.f32 0.015625, %v39_v18  ;;  %v61_v21 = vmul.f32 %v541_v16, %v541_v16  ;;  %v48_v22 = vmul.f32 0.015625, %v33_v19  ;;  %v59_v23 = vmul.f32 %v543_v17, %v543_v17 }
  0x93   :  { %v549_v24 = vsub.f32 %v24_v1, %v50_v20  ;;  %v71_v25 = vsel %vm27_vm0, %v61_v21, 0.0  ;;  %v552_v26 = vsub.f32 %v22_v5, %v48_v22  ;;  %v65_v28 = vsel %vm27_vm0, %v59_v23, 0.0 }
  0x94   :  { %72 = vadd.xlane.f32.xlu0 %v71_v25  ;;  %v42_v27 = vpop.xlane.xlu0 %41  ;;  %v45_v29 = vpop.xlane.xlu1 %44 }
  0x95   :  { %v51_v30 = vmul.f32 0.015625, %v42_v27  ;;  %v62_v31 = vmul.f32 %v549_v24, %v549_v24  ;;  %v52_v32 = vmul.f32 0.015625, %v45_v29  ;;  %v60_v33 = vmul.f32 %v552_v26, %v552_v26 }
  0x97   :  { %v559_v34 = vsub.f32 %v25_v8, %v51_v30  ;;  %v74_v35 = vsel %vm27_vm0, %v62_v31, 0.0  ;;  %v562_v36 = vsub.f32 %v26_v9, %v52_v32  ;;  %v68_v38 = vsel %vm27_vm0, %v60_v33, 0.0 }
  0x98   :  { %75 = vadd.xlane.f32.xlu1 %v74_v35  ;;  %66 = vadd.xlane.f32.xlu0 %v65_v28 }
  0x99   :  { %v63_v37 = vmul.f32 %v559_v34, %v559_v34  ;;  %v64_v39 = vmul.f32 %v562_v36, %v562_v36 }
  0x9b   :  { %v77_v40 = vsel %vm27_vm0, %v63_v37, 0.0  ;;  %v80_v41 = vsel %vm27_vm0, %v64_v39, 0.0 }
  0x9c   :  { %78 = vadd.xlane.f32.xlu0 %v77_v40  ;;  %69 = vadd.xlane.f32.xlu1 %v68_v38 }
  0xa0   :  { %81 = vadd.xlane.f32.xlu1 %v80_v41 }
 0x11d   :  { %v73_v51 = vpop.xlane.xlu0 %72 }
 0x11e   :  { %v85_v52 = vmul.f32 0.015625, %v73_v51 }
 0x120   :  { %v91_v53 = vadd.f32 1e-05, %v85_v52 }
 0x121   :  { %v67_v54 = vpop.xlane.xlu0 %66  ;;  %v76_v55 = vpop.xlane.xlu1 %75 }
 0x122   :  { %426 = vrsqrt.f32 %v91_v53  ;;  %v83_v56 = vmul.f32 0.015625, %v67_v54  ;;  %v86_v57 = vmul.f32 0.015625, %v76_v55 }
 0x124   :  { %v89_v58 = vadd.f32 1e-05, %v83_v56  ;;  %v92_v59 = vadd.f32 1e-05, %v86_v57 }
 0x125   :  { %v79_v60 = vpop.xlane.xlu0 %78  ;;  %v70_v61 = vpop.xlane.xlu1 %69 }
 0x126   :  { %428 = vrsqrt.f32 %v89_v58  ;;  %v87_v62 = vmul.f32 0.015625, %v79_v60  ;;  %v84_v63 = vmul.f32 0.015625, %v70_v61 }
 0x127   :  { %430 = vrsqrt.f32 %v92_v59 }
 0x128   :  { %v93_v0 = vadd.f32 1e-05, %v87_v62  ;;  %v90_v1 = vadd.f32 1e-05, %v84_v63 }
 0x129   :  { %v82_v2 = vpop.xlane.xlu1 %81 }
 0x12a   :  { %432 = vrsqrt.f32 %v93_v0  ;;  %v88_v3 = vmul.f32 0.015625, %v82_v2 }
 0x12b   :  { %434 = vrsqrt.f32 %v90_v1 }
 0x12c   :  { %v94_v4 = vadd.f32 1e-05, %v88_v3 }
 0x12e   :  { %436 = vrsqrt.f32 %v94_v4 }
 0x12f   :  { %v427_v5 = vpop.eup %426 }
 0x130   :  { %v103_v6 = vmul.f32 %v427_v5, %v541_v16 }
 0x132   :  { %v116_v11 = vmul.f32 %v380_v7, %v103_v6 }
 0x133   :  { %v429_v8 = vpop.eup %428 }
 0x134   :  { %v431_v9 = vpop.eup %430  ;;  %v101_v12 = vmul.f32 %v429_v8, %v543_v17  ;;  %v129_v19 = vadd.f32 %v381_v13, %v116_v11 }
 0x135   :  { %v104_v10 = vmul.f32 %v431_v9, %v549_v24 }
 0x136   :  { %v114_v22 = vmul.f32 %v380_v7, %v101_v12 }
 0x137   :  { %v433_v14 = vpop.eup %432  ;;  %v117_v15 = vmul.f32 %v380_v7, %v104_v10 }
 0x138   :  { %v435_v18 = vpop.eup %434  ;;  %v105_v16 = vmul.f32 %v433_v14, %v559_v34  ;;  %v127_v28 = vadd.f32 %v381_v13, %v114_v22  ;;  %v146_v34 = vlaneseq }
 0x139   :  { %v130_v20 = vadd.f32 %v381_v13, %v117_v15  ;;  %v102_v21 = vmul.f32 %v435_v18, %v552_v26 }
 0x13a   :  { %v118_v17 = vmul.f32 %v380_v7, %v105_v16  ;;  %v147_v35 = vshrl.u32 %v146_v34, 7 }
 0x13b   :  { %v437_v23 = vpop.eup %436  ;;  %v134_v25 = vpack.c.bf16 %v130_v20, %v129_v19  ;;  %v115_v24 = vmul.f32 %v380_v7, %v102_v21 }
 0x13c   :  { %v106_v27 = vmul.f32 %v437_v23, %v562_v36  ;;  %v131_v32 = vadd.f32 %v381_v13, %v118_v17  ;;  %v148_v37 = vsub.s32 0, %v147_v35  ;;  %v144_v36 = vld [vmem:[%s704_s4] sm:$0x3]  ;;  %v152_v38 = vsub.s32 1, %v147_v35 }
 0x13d   :  { %391 = vmatmul.mubr.msk.bf16.vlgmr.msra.gmra.mxu1 %vm27_vm0, %v134_v25  ;;  %v128_v29 = vadd.f32 %v381_v13, %v115_v24 }
 0x13e   :  { %257 = vmatprep.mubr.bf16.mxu1 %v486_v47  ;;  %v119_v30 = vmul.f32 %v380_v7, %v106_v27  ;;  %v149_v39 = vrot.slane %v144_v36, %v148_v37  ;;  %v153_v40 = vrot.slane %v144_v36, %v152_v38 }
 0x13f   :  { %v133_v31 = vpack.c.bf16 %v128_v29, %v127_v28 }
 0x140   :  { %v132_v33 = vadd.f32 %v381_v13, %v119_v30 }
 0x141   :  { %390 = vmatmul.mubr.msk.bf16.vlgmr.msra.gmra.mxu0 %vm27_vm0, %v133_v31 }
 0x142   :  { %v135_v26 = vpack.c.bf16 %v132_v33, %v131_v32 }
 0x145   :  { %392 = vmatmul.mubr.msk.bf16.gmra.mxu1 %vm27_vm0, %v135_v26 }
 0x1fd   :  { %v249_v41 = vpop.f32.mrf.mxu1 }
 0x1fe   :  { %v616_v42 = vadd.f32 %v249_v41, %v149_v39 }
 0x1ff   :  { %v251_v43 = vpop.f32.mrf.mxu1 }
 0x200   :  { %v397_v44 = vmul.f32 -1.702, %v616_v42  ;;  %v619_v45 = vadd.f32 %v251_v43, %v153_v40 }
 0x201   :  { %v239_v46 = vpop.f32.mrf.mxu0  ;;  %v253_v47 = vpop.f32.mrf.mxu1 }
 0x202   :  { %v300_v48 = vmul.f32 1.442695, %v397_v44  ;;  %v398_v49 = vmul.f32 -1.702, %v619_v45  ;;  %v622_v50 = vadd.f32 %v239_v46, %v149_v39  ;;  %v624_v51 = vadd.f32 %v253_v47, %v149_v39 }
 0x203   :  { %v241_v52 = vpop.f32.mrf.mxu0  ;;  %v255_v53 = vpop.f32.mrf.mxu1 }
 0x204   :  { %438 = vpow2.f32 %v300_v48  ;;  %v302_v54 = vmul.f32 1.442695, %v398_v49  ;;  %v393_v55 = vmul.f32 -1.702, %v622_v50  ;;  %v399_v56 = vmul.f32 -1.702, %v624_v51 }
 0x205   :  { %v628_v57 = vadd.f32 %v241_v52, %v153_v40  ;;  %v630_v58 = vadd.f32 %v255_v53, %v153_v40  ;;  %v243_v59 = vpop.f32.mrf.mxu0  ;;  %v259_v60 = vpop.f32.mrf.mxu1 }
 0x206   :  { %440 = vpow2.f32 %v302_v54  ;;  %v292_v61 = vmul.f32 1.442695, %v393_v55  ;;  %v304_v62 = vmul.f32 1.442695, %v399_v56  ;;  %v632_v63 = vadd.f32 %v243_v59, %v149_v39 }
 0x207   :  { %v394_v0 = vmul.f32 -1.702, %v628_v57  ;;  %v400_v1 = vmul.f32 -1.702, %v630_v58  ;;  %v636_v2 = vadd.f32 %v259_v60, %v149_v39  ;;  %v245_v3 = vpop.f32.mrf.mxu0  ;;  %v261_v4 = vpop.f32.mrf.mxu1 }
 0x208   :  { %442 = vpow2.f32 %v292_v61  ;;  %v395_v5 = vmul.f32 -1.702, %v632_v63  ;;  %v639_v6 = vadd.f32 %v245_v3, %v153_v40  ;;  %v641_v7 = vadd.f32 %v261_v4, %v153_v40 }
 0x209   :  { %444 = vpow2.f32 %v304_v62  ;;  %v294_v8 = vmul.f32 1.442695, %v394_v0  ;;  %v306_v9 = vmul.f32 1.442695, %v400_v1  ;;  %v401_v10 = vmul.f32 -1.702, %v636_v2  ;;  %v263_v11 = vpop.f32.mrf.mxu1 }
 0x20a   :  { %v296_v12 = vmul.f32 1.442695, %v395_v5  ;;  %v396_v13 = vmul.f32 -1.702, %v639_v6  ;;  %v402_v14 = vmul.f32 -1.702, %v641_v7  ;;  %v646_v15 = vadd.f32 %v263_v11, %v149_v39 }
 0x20b   :  { %446 = vpow2.f32 %v294_v8  ;;  %v308_v18 = vmul.f32 1.442695, %v401_v10  ;;  %v265_v16 = vpop.f32.mrf.mxu1 }
 0x20c   :  { %448 = vpow2.f32 %v306_v9  ;;  %v298_v19 = vmul.f32 1.442695, %v396_v13  ;;  %v310_v20 = vmul.f32 1.442695, %v402_v14  ;;  %v403_v21 = vmul.f32 -1.702, %v646_v15 }
 0x20d   :  { %450 = vpow2.f32 %v296_v12  ;;  %v649_v22 = vadd.f32 %v265_v16, %v153_v40 }
 0x20e   :  { %452 = vpow2.f32 %v308_v18  ;;  %v312_v23 = vmul.f32 1.442695, %v403_v21 }
 0x20f   :  { %454 = vpow2.f32 %v298_v19  ;;  %v404_v25 = vmul.f32 -1.702, %v649_v22 }
 0x210   :  { %456 = vpow2.f32 %v310_v20 }
 0x211   :  { %v439_v24 = vpop.eup %438  ;;  %458 = vpow2.f32 %v312_v23  ;;  %v314_v27 = vmul.f32 1.442695, %v404_v25 }
 0x212   :  { %v320_v17 = vadd.f32 1.0, %v439_v24 }
 0x213   :  { %v441_v28 = vpop.eup %440  ;;  %460 = vpow2.f32 %v314_v27 }
 0x214   :  { %462 = vrcp.f32 %v320_v17  ;;  %v321_v29 = vadd.f32 1.0, %v441_v28 }
 0x215   :  { %v443_v30 = vpop.eup %442 }
 0x216   :  { %v445_v31 = vpop.eup %444  ;;  %464 = vrcp.f32 %v321_v29  ;;  %v316_v32 = vadd.f32 1.0, %v443_v30 }
 0x217   :  { %v322_v33 = vadd.f32 1.0, %v445_v31 }
 0x218   :  { %v447_v26 = vpop.eup %446  ;;  %466 = vrcp.f32 %v316_v32 }
 0x219   :  { %v449_v34 = vpop.eup %448  ;;  %468 = vrcp.f32 %v322_v33  ;;  %v317_v35 = vadd.f32 1.0, %v447_v26 }
 0x21a   :  { %v451_v37 = vpop.eup %450  ;;  %v323_v36 = vadd.f32 1.0, %v449_v34 }
 0x21b   :  { %v453_v38 = vpop.eup %452  ;;  %470 = vrcp.f32 %v317_v35  ;;  %v318_v39 = vadd.f32 1.0, %v451_v37 }
 0x21c   :  { %v455_v40 = vpop.eup %454  ;;  %472 = vrcp.f32 %v323_v36  ;;  %v324_v41 = vadd.f32 1.0, %v453_v38 }
 0x21d   :  { %v457_v43 = vpop.eup %456  ;;  %474 = vrcp.f32 %v318_v39  ;;  %v319_v44 = vadd.f32 1.0, %v455_v40 }
 0x21e   :  { %v459_v46 = vpop.eup %458  ;;  %476 = vrcp.f32 %v324_v41  ;;  %v325_v47 = vadd.f32 1.0, %v457_v43 }
 0x21f   :  { %478 = vrcp.f32 %v319_v44  ;;  %v326_v48 = vadd.f32 1.0, %v459_v46 }
 0x220   :  { %v461_v49 = vpop.eup %460  ;;  %480 = vrcp.f32 %v325_v47 }
 0x221   :  { %v463_v52 = vpop.eup %462  ;;  %482 = vrcp.f32 %v326_v48  ;;  %v327_v53 = vadd.f32 1.0, %v461_v49 }
 0x222   :  { %v356_v54 = vmul.f32 %v463_v52, %v616_v42 }
 0x223   :  { %v465_v55 = vpop.eup %464  ;;  %484 = vrcp.f32 %v327_v53 }
 0x224   :  { %368 = vst [vmem:[%s705_s5 + $0x20] sm:$0xff] %v356_v54  ;;  %v357_v56 = vmul.f32 %v465_v55, %v619_v45 }
 0x225   :  { %v467_v59 = vpop.eup %466 }
 0x226   :  { %v469_v60 = vpop.eup %468  ;;  %369 = vst [vmem:[%s705_s5 + $0x28] sm:$0xff] %v357_v56  ;;  %v352_v61 = vmul.f32 %v467_v59, %v622_v50 }
 0x227   :  { %v358_v62 = vmul.f32 %v469_v60, %v624_v51 }
 0x228   :  { %v471_v0 = vpop.eup %470  ;;  %364 = vst [vmem:[%s705_s5] sm:$0xff] %v352_v61 }
 0x229   :  { %v473_v42 = vpop.eup %472  ;;  %370 = vst [vmem:[%s705_s5 + $0x30] sm:$0xff] %v358_v62  ;;  %v353_v45 = vmul.f32 %v471_v0, %v628_v57 }
 0x22a   :  { %v475_v1 = vpop.eup %474  ;;  %v359_v3 = vmul.f32 %v473_v42, %v630_v58 }
 0x22b   :  { %v477_v4 = vpop.eup %476  ;;  %365 = vst [vmem:[%s705_s5 + $0x8] sm:$0xff] %v353_v45  ;;  %v354_v50 = vmul.f32 %v475_v1, %v632_v63 }
 0x22c   :  { %v479_v51 = vpop.eup %478  ;;  %371 = vst [vmem:[%s705_s5 + $0x38] sm:$0xff] %v359_v3  ;;  %v360_v5 = vmul.f32 %v477_v4, %v636_v2 }
 0x22d   :  { %v481_v8 = vpop.eup %480  ;;  %366 = vst [vmem:[%s705_s5 + $0x10] sm:$0xff] %v354_v50  ;;  %v355_v57 = vmul.f32 %v479_v51, %v639_v6 }
 0x22e   :  { %v483_v58 = vpop.eup %482  ;;  %372 = vst [vmem:[%s705_s5 + $0x40] sm:$0xff] %v360_v5  ;;  %v361_v63 = vmul.f32 %v481_v8, %v641_v7 }
 0x22f   :  { %367 = vst [vmem:[%s705_s5 + $0x18] sm:$0xff] %v355_v57  ;;  %v362_v2 = vmul.f32 %v483_v58, %v646_v15 }
 0x230   :  { %v485_v9 = vpop.eup %484  ;;  %373 = vst [vmem:[%s705_s5 + $0x48] sm:$0xff] %v361_v63 }
 0x231   :  { %374 = vst [vmem:[%s705_s5 + $0x50] sm:$0xff] %v362_v2  ;;  %v363_v6 = vmul.f32 %v485_v9, %v649_v22 }
 0x233   :  { %375 = vst [vmem:[%s705_s5 + $0x58] sm:$0xff] %v363_v6 }

// kernel: custom_clip_forward.42
= control target key start
LH: loop header
LB: loop body
LE: loop exit
PB: predicated region body
PF: predicated region fallthrough
CT: control target
= control target key end

     0   :  { %vm22_vm0 = vcmask 523264   ;;  %v379_v34 = vmov 0.0   ;;  %s546_s1 = inlined_call_operand.vmem [shape: bf16[256,64], index: 1, kind: input, shape index: {}]   ;;  %s547_s0 = inlined_call_operand.vmem [shape: f32[48,256], index: 0, kind: input, shape index: {}]   ;;  %s548_s2 = inlined_call_operand.vmem [shape: f32[1,64], index: 2, kind: input, shape index: {}]   ;;  %s549_s3 = inlined_call_operand.vmem [shape: f32[48,64], index: 3, kind: input, shape index: {}]   ;;  %s550_s4 = inlined_call_operand.vmem [shape: f32[48,64], index: 4, kind: output, shape index: {}]  }
   0x1   :  { %v363_v0 = vld [vmem:[%s546_s1 + $0x78] sm:$0xff]   ;;  %v365_v2 = vld [vmem:[%s546_s1 + $0x70] sm:$0xff]   ;;  %v367_v4 = vld [vmem:[%s546_s1 + $0x68] sm:$0xff]   ;;  %25 = vst.msk [vmem:[#allocation2 + $0x10] sm:$0xff] %vm22_vm0, %v379_v34 }
   0x2   :  { %v364_v1 = vld [vmem:[%s546_s1 + $0x38] sm:$0xff]   ;;  %346 = vmatprep.subr.bf16.mxu1 %v363_v0  ;;  %312 = vmatprep.subr.bf16.mxu0 %v363_v0  ;;  %v366_v3 = vld [vmem:[%s546_s1 + $0x30] sm:$0xff]   ;;  %v368_v5 = vld [vmem:[%s546_s1 + $0x28] sm:$0xff]   ;;  %23 = vst.msk [vmem:[#allocation2] sm:$0xff] %vm22_vm0, %v379_v34 }
   0x3   :  { %354 = vmatpush3.bf16.msra.mxu1 %v364_v1  ;;  %313 = vmatpush3.bf16.msra.mxu0 %v364_v1  ;;  %v369_v6 = vld [vmem:[%s546_s1 + $0x60] sm:$0xff]   ;;  %v371_v8 = vld [vmem:[%s546_s1 + $0x58] sm:$0xff]   ;;  %v373_v10 = vld [vmem:[%s546_s1 + $0x50] sm:$0xff]   ;;  %24 = vst.msk [vmem:[#allocation2 + $0x8] sm:$0xff] %vm22_vm0, %v379_v34 }
   0x4   :  { %347 = vmatprep.subr.bf16.mxu1 %v365_v2  ;;  %314 = vmatprep.subr.bf16.mxu0 %v365_v2  ;;  %v370_v7 = vld [vmem:[%s546_s1 + $0x20] sm:$0xff]   ;;  %v372_v9 = vld [vmem:[%s546_s1 + $0x18] sm:$0xff]   ;;  %v40_v11 = vld [vmem:[%s547_s0 + $0x28] sm:$0xff]  ;;  %26 = vst.msk [vmem:[#allocation2 + $0x18] sm:$0xff] %vm22_vm0, %v379_v34 }
   0x5   :  { %v42_v12 = vld [vmem:[%s547_s0 + $0x38] sm:$0xff]  ;;  %v36_v14 = vld [vmem:[%s547_s0 + $0x8] sm:$0xff]  ;;  %v374_v17 = vld [vmem:[%s546_s1 + $0x10] sm:$0xff]   ;;  %27 = vst.msk [vmem:[#allocation2 + $0x20] sm:$0xff] %vm22_vm0, %v379_v34 }
   0x6   :  { %v50_v13 = vpack.c.bf16 %v42_v12, %v40_v11  ;;  %v38_v15 = vld [vmem:[%s547_s0 + $0x18] sm:$0xff]  ;;  %v375_v18 = vld [vmem:[%s546_s1 + $0x48] sm:$0xff]   ;;  %v377_v20 = vld [vmem:[%s546_s1 + $0x40] sm:$0xff]   ;;  %28 = vst.msk [vmem:[#allocation2 + $0x28] sm:$0xff] %vm22_vm0, %v379_v34 }
   0x7   :  { %355 = vmatpush3.bf16.msra.mxu1 %v366_v3  ;;  %315 = vmatpush3.bf16.msra.mxu0 %v366_v3  ;;  %v48_v16 = vpack.c.bf16 %v38_v15, %v36_v14  ;;  %v376_v19 = vld [vmem:[%s546_s1 + $0x8] sm:$0xff]   ;;  %v378_v21 = vld [vmem:[%s546_s1] sm:$0xff]   ;;  %v41_v23 = vld [vmem:[%s547_s0 + $0x30] sm:$0xff] }
   0x8   :  { %348 = vmatprep.subr.bf16.mxu1 %v367_v4  ;;  %316 = vmatprep.subr.bf16.mxu0 %v367_v4  ;;  %v39_v22 = vld [vmem:[%s547_s0 + $0x20] sm:$0xff]  ;;  %v37_v25 = vld [vmem:[%s547_s0 + $0x10] sm:$0xff]  ;;  %v44_v26 = vld [vmem:[%s547_s0 + $0x48] sm:$0xff] }
   0x9   :  { %221 = vmatprep.mubr.bf16.mxu1 %v50_v13  ;;  %213 = vmatprep.mubr.bf16.mxu0 %v48_v16  ;;  %v35_v24 = vld [vmem:[%s547_s0] sm:$0xff]  ;;  %v46_v27 = vld [vmem:[%s547_s0 + $0x58] sm:$0xff]  ;;  %v49_v28 = vpack.c.bf16 %v41_v23, %v39_v22  ;;  %v45_v32 = vld [vmem:[%s547_s0 + $0x50] sm:$0xff] }
   0xa   :  { %v47_v29 = vpack.c.bf16 %v37_v25, %v35_v24  ;;  %v52_v30 = vpack.c.bf16 %v46_v27, %v44_v26  ;;  %v43_v31 = vld [vmem:[%s547_s0 + $0x40] sm:$0xff]  ;;  %v31_v37 = vld [vmem:[#allocation2 + $0x10] sm:$0xff]  ;;  %v30_v49 = vld [vmem:[#allocation2 + $0x8] sm:$0xff] }
   0xb   :  { %356 = vmatpush3.bf16.msra.mxu1 %v368_v5  ;;  %317 = vmatpush3.bf16.msra.mxu0 %v368_v5  ;;  %v51_v33 = vpack.c.bf16 %v45_v32, %v43_v31  ;;  %v29_v39 = vld [vmem:[#allocation2] sm:$0xff]  ;;  %v32_v47 = vld [vmem:[#allocation2 + $0x18] sm:$0xff]  ;;  %v275_v61 = vld [vmem:[%s549_s3 + $0x10] sm:$0xff] }
   0xc   :  { %349 = vmatprep.subr.bf16.mxu1 %v369_v6  ;;  %318 = vmatprep.subr.bf16.mxu0 %v369_v6  ;;  %v33_v56 = vld [vmem:[#allocation2 + $0x20] sm:$0xff]  ;;  %v274_v13 = vld [vmem:[%s549_s3 + $0x8] sm:$0xff] }
   0xd   :  { %v311_v59 = vld [vmem:[%s548_s2] ss:$0 sm:$0xff]  ;;  %v34_v63 = vld [vmem:[#allocation2 + $0x28] sm:$0xff] }
   0xe   :  { %v273_v2 = vld [vmem:[%s549_s3] sm:$0xff]  ;;  %v278_v23 = vld [vmem:[%s549_s3 + $0x28] sm:$0xff] }
   0xf   :  { %357 = vmatpush3.bf16.msra.mxu1 %v370_v7  ;;  %319 = vmatpush3.bf16.msra.mxu0 %v370_v7 }
  0x10   :  { %350 = vmatprep.subr.bf16.mxu1 %v371_v8  ;;  %320 = vmatprep.subr.bf16.mxu0 %v371_v8 }
  0x13   :  { %358 = vmatpush3.bf16.msra.mxu1 %v372_v9  ;;  %321 = vmatpush3.bf16.msra.mxu0 %v372_v9  ;;  %v276_v9 = vld [vmem:[%s549_s3 + $0x18] sm:$0xff] }
  0x14   :  { %351 = vmatprep.subr.bf16.mxu1 %v373_v10  ;;  %322 = vmatprep.subr.bf16.mxu0 %v373_v10 }
  0x17   :  { %359 = vmatpush3.bf16.msra.mxu1 %v374_v17  ;;  %323 = vmatpush3.bf16.msra.mxu0 %v374_v17 }
  0x18   :  { %352 = vmatprep.subr.bf16.mxu1 %v375_v18  ;;  %324 = vmatprep.subr.bf16.mxu0 %v375_v18 }
  0x1b   :  { %360 = vmatpush3.bf16.msra.mxu1 %v376_v19  ;;  %325 = vmatpush3.bf16.msra.mxu0 %v376_v19  ;;  %v277_v19 = vld [vmem:[%s549_s3 + $0x20] sm:$0xff] }
  0x1c   :  { %353 = vmatprep.subr.bf16.mxu1 %v377_v20  ;;  %326 = vmatprep.subr.bf16.mxu0 %v377_v20 }
  0x1f   :  { %361 = vmatpush3.bf16.msra.mxu1 %v378_v21  ;;  %327 = vmatpush3.bf16.msra.mxu0 %v378_v21 }
  0x22   :  { %222 = vmatmul.mubr.bf16.vlgmr.msra.gmra.mxu1 %v49_v28  ;;  %214 = vmatmul.mubr.bf16.vlgmr.msra.gmra.mxu0 %v47_v29 }
  0x23   :  { %229 = vmatprep.mubr.bf16.mxu1 %v52_v30 }
  0x2a   :  { %230 = vmatmul.mubr.bf16.gmra.mxu1 %v51_v33 }
  0xe2   :  { %v334_v35 = vpop.f32.mrf.mxu1  ;;  %v328_v36 = vpop.f32.mrf.mxu0 }
  0xe4   :  { %v335_v38 = vpop.f32.mrf.mxu1  ;;  %v329_v40 = vpop.f32.mrf.mxu0 }
  0xe5   :  { %v336_v41 = vadd.f32 %v335_v38, %v334_v35  ;;  %v330_v42 = vadd.f32 %v329_v40, %v328_v36 }
  0xe6   :  { %v337_v43 = vpop.f32.mrf.mxu1  ;;  %v331_v44 = vpop.f32.mrf.mxu0 }
  0xe7   :  { %v240_v45 = vadd.f32 %v336_v41, %v31_v37  ;;  %v238_v46 = vadd.f32 %v330_v42, %v29_v39 }
  0xe8   :  { %v338_v48 = vpop.f32.mrf.mxu1  ;;  %v332_v50 = vpop.f32.mrf.mxu0 }
  0xe9   :  { %247 = vst.msk [vmem:[#allocation2 + $0x10] sm:$0xff] %vm22_vm0, %v240_v45  ;;  %245 = vst.msk [vmem:[#allocation2] sm:$0xff] %vm22_vm0, %v238_v46  ;;  %v339_v51 = vadd.f32 %v338_v48, %v337_v43  ;;  %v333_v52 = vadd.f32 %v332_v50, %v331_v44 }
  0xea   :  { %v340_v53 = vpop.f32.mrf.mxu1 }
  0xeb   :  { %v241_v54 = vadd.f32 %v339_v51, %v32_v47  ;;  %v239_v55 = vadd.f32 %v333_v52, %v30_v49 }
  0xec   :  { %v341_v57 = vpop.f32.mrf.mxu1 }
  0xed   :  { %248 = vst.msk [vmem:[#allocation2 + $0x18] sm:$0xff] %vm22_vm0, %v241_v54  ;;  %246 = vst.msk [vmem:[#allocation2 + $0x8] sm:$0xff] %vm22_vm0, %v239_v55  ;;  %v342_v58 = vadd.f32 %v341_v57, %v340_v53 }
  0xee   :  { %v343_v60 = vpop.f32.mrf.mxu1 }
  0xef   :  { %v242_v62 = vadd.f32 %v342_v58, %v33_v56 }
  0xf0   :  { %v256_v0 = vld [vmem:[#allocation2 + $0x10] sm:$0xff]  ;;  %v254_v1 = vld [vmem:[#allocation2] sm:$0xff]  ;;  %v344_v3 = vpop.f32.mrf.mxu1 }
  0xf1   :  { %v269_v4 = vadd.f32 %v311_v59, %v256_v0  ;;  %v267_v5 = vadd.f32 %v311_v59, %v254_v1  ;;  %249 = vst.msk [vmem:[#allocation2 + $0x20] sm:$0xff] %vm22_vm0, %v242_v62  ;;  %v345_v6 = vadd.f32 %v344_v3, %v343_v60 }
  0xf3   :  { %v281_v7 = vadd.f32 %v275_v61, %v269_v4  ;;  %v279_v8 = vadd.f32 %v273_v2, %v267_v5  ;;  %v243_v10 = vadd.f32 %v345_v6, %v34_v63 }
  0xf4   :  { %v257_v11 = vld [vmem:[#allocation2 + $0x18] sm:$0xff]  ;;  %v255_v12 = vld [vmem:[#allocation2 + $0x8] sm:$0xff] }
  0xf5   :  { %287 = vst.msk [vmem:[%s550_s4 + $0x10] sm:$0xff] %vm22_vm0, %v281_v7  ;;  %285 = vst.msk [vmem:[%s550_s4] sm:$0xff] %vm22_vm0, %v279_v8  ;;  %v270_v14 = vadd.f32 %v311_v59, %v257_v11  ;;  %v268_v15 = vadd.f32 %v311_v59, %v255_v12 }
  0xf6   :  { %250 = vst.msk [vmem:[#allocation2 + $0x28] sm:$0xff] %vm22_vm0, %v243_v10 }
  0xf7   :  { %v282_v16 = vadd.f32 %v276_v9, %v270_v14  ;;  %v280_v17 = vadd.f32 %v274_v13, %v268_v15 }
  0xf8   :  { %v258_v18 = vld [vmem:[#allocation2 + $0x20] sm:$0xff] }
  0xf9   :  { %288 = vst.msk [vmem:[%s550_s4 + $0x18] sm:$0xff] %vm22_vm0, %v282_v16  ;;  %286 = vst.msk [vmem:[%s550_s4 + $0x8] sm:$0xff] %vm22_vm0, %v280_v17  ;;  %v271_v20 = vadd.f32 %v311_v59, %v258_v18 }
  0xfb   :  { %v283_v21 = vadd.f32 %v277_v19, %v271_v20 }
  0xfd   :  { %v259_v22 = vld [vmem:[#allocation2 + $0x28] sm:$0xff]  ;;  %289 = vst.msk [vmem:[%s550_s4 + $0x20] sm:$0xff] %vm22_vm0, %v283_v21 }
  0xfe   :  { %v272_v24 = vadd.f32 %v311_v59, %v259_v22 }
 0x100   :  { %v284_v25 = vadd.f32 %v278_v23, %v272_v24 }
 0x102   :  { %290 = vst.msk [vmem:[%s550_s4 + $0x28] sm:$0xff] %vm22_vm0, %v284_v25 }

// kernel: custom_clip_forward.49
= control target key start
LH: loop header
LB: loop body
LE: loop exit
PB: predicated region body
PF: predicated region fallthrough
CT: control target
= control target key end

     0   :  { %vm19_vm0 = vcmask 523264   ;;  %v148_v1 = vmov 0.0   ;;  %vm149_vm1 = vmmov 0   ;;  %s183_s0 = inlined_call_operand.vmem [shape: f32[2,64], index: 0, kind: input, shape index: {}]   ;;  %s184_s1 = inlined_call_operand.vmem [shape: f32[3,64], index: 1, kind: input, shape index: {}]   ;;  %s185_s2 = inlined_call_operand.<no memory space> [shape: f32[1,1], index: 2, kind: input, shape index: {}]   ;;  %s186_s3 = inlined_call_operand.hbm [shape: f32[2,3], index: 3, kind: output, shape index: {}]  }
   0x1   :  { %v18_v0 = vld [vmem:[%s184_s1] sm:$0x7]  ;;  %118 = vmatprep.subr.mxu0 %v148_v1  ;;  %120 = vmatprep.mubr.msk.f32.mxu0 %vm149_vm1, %v148_v1 }
   0x2   :  { %9 = vsyncpa [#allocation4], 0  ;;  %119 = vmatpush3.xpose.msk.msra.mxu0 %vm19_vm0, %v18_v0  ;;  %v17_v2 = vld [vmem:[%s183_s0] sm:$0x3]  ;;  %v96_v3 = vstv %s185_s2  ;;  %s150_s18 = smov [#allocation3]   ;;  %vm98_vm2 = vcmask 17408  }
   0x3   :  { %s106_s19 = sshll.u32 %s150_s18, 4  ;;  %s107_s19 = int_to_ptr.vmem [resolvable:$true] %s106_s19 }
   0x4   :  { %s126_s1 = scalar_lea.vmem %s107_s19, 32  ;;  %p131_p1 = scmp.lt.s32.totalorder %s107_s19, %s107_s19 }
   0x5   :  { %121 = vmatmul.mubr.msk.f32.vlgmr.msra.gmra.mxu0 %vm19_vm0, %v17_v2  ;;  %p127_p0 = scmp.ne.s32.totalorder %s107_s19, %s126_s1  ;;  %p132_p2 = scmp.lt.s32.totalorder %s126_s1, %s126_s1 }
   0x7   :  { %p133_p3 = por %p132_p2, %p131_p1 }
   0x9   :  { %p134_p4 = pnand %p133_p3, %p127_p0 }
  0xc5   :  { %v92_v4 = vpop.f32.mrf.mxu0 }
  0xc6   :  { %v97_v5 = vmul.f32 %v96_v3, %v92_v4 }
  0xc7   :  { %v122_v6 = vpop.f32.mrf.mxu0 }
  0xc8   :  { %99 = vst.msk [vmem:[#allocation3] sm:$0x3] %vm98_vm2, %v97_v5 }
  0xc9   :  { %137 = shalt.err (!%p134_p4)
}
  0xca   :  { %109 = dma.vmem_to_hbm [thread:$0]  %s107_s19, 32, %s186_s3, [#allocation4]  }
  0xcb   :  { %146 = dma.done.wait [#allocation4], 32  }
  0xcc   :  { %147 = vsyncadd [#allocation4], 4294967264 }
  0xcd   :  { %113 = vsyncpa [#allocation4], 1 }

// kernel: custom_clip_forward.48
= control target key start
LH: loop header
LB: loop body
LE: loop exit
PB: predicated region body
PF: predicated region fallthrough
CT: control target
= control target key end

     0   :  { %vm19_vm0 = vcmask 518144   ;;  %v173_v7 = vmov 0.0   ;;  %vm174_vm1 = vmmov 0   ;;  %vm83_vm2 = vcmask 523264   ;;  %s228_s0 = inlined_call_operand.vmem [shape: f32[3,64], index: 0, kind: input, shape index: {}]   ;;  %s229_s3 = inlined_call_operand.vmem [shape: bf16[64,64], index: 3, kind: input, shape index: {}]   ;;  %s230_s1 = inlined_call_operand.vmem [shape: f32[1,64], index: 1, kind: input, shape index: {}]   ;;  %s231_s2 = inlined_call_operand.vmem [shape: f32[1,64], index: 2, kind: input, shape index: {}]   ;;  %s232_s4 = inlined_call_operand.vmem [shape: f32[3,64], index: 4, kind: output, shape index: {}]  }
   0x1   :  { %v18_v0 = vld [vmem:[%s228_s0] sm:$0x7]  ;;  %151 = vmatprep.subr.bf16.mxu0 %v173_v7  ;;  %v165_v8 = vld [vmem:[%s229_s3 + $0x18] sm:$0xff]   ;;  %159 = vmatprep.mubr.msk.bf16.mxu0 %vm174_vm1, %v173_v7  ;;  %v166_v9 = vld [vmem:[%s229_s3 + $0x10] sm:$0xff]  }
   0x2   :  { %v20_v1 = vsel %vm19_vm0, %v18_v0, 0.0  ;;  %152 = vmatpush3.bf16.msra.mxu0 %v165_v8  ;;  %v167_v10 = vld [vmem:[%s229_s3 + $0x8] sm:$0xff]   ;;  %v168_v11 = vld [vmem:[%s229_s3] sm:$0xff]  }
   0x3   :  { %21 = vadd.xlane.f32.xlu0 %v20_v1  ;;  %153 = vmatprep.subr.bf16.mxu0 %v173_v7  ;;  %v139_v16 = vld [vmem:[%s230_s1] ss:$0 sm:$0xff] }
   0x4   :  { %v140_v18 = vld [vmem:[%s231_s2] ss:$0 sm:$0xff] }
   0x6   :  { %154 = vmatpush3.bf16.msra.mxu0 %v166_v9 }
   0x7   :  { %155 = vmatprep.subr.bf16.mxu0 %v173_v7 }
   0xa   :  { %156 = vmatpush3.bf16.msra.mxu0 %v167_v10 }
   0xb   :  { %157 = vmatprep.subr.bf16.mxu0 %v173_v7 }
   0xe   :  { %158 = vmatpush3.bf16.msra.mxu0 %v168_v11 }
  0x8c   :  { %v22_v2 = vpop.xlane.xlu0 %21 }
  0x8d   :  { %v24_v3 = vmul.f32 0.015625, %v22_v2 }
  0x8f   :  { %v25_v4 = vsub.f32 %v18_v0, %v24_v3 }
  0x91   :  { %v26_v5 = vmul.f32 %v25_v4, %v25_v4 }
  0x93   :  { %v27_v6 = vsel %vm19_vm0, %v26_v5, 0.0 }
  0x94   :  { %28 = vadd.xlane.f32.xlu0 %v27_v6 }
 0x11d   :  { %v29_v12 = vpop.xlane.xlu0 %28 }
 0x11e   :  { %v30_v13 = vmul.f32 0.015625, %v29_v12 }
 0x120   :  { %v31_v14 = vadd.f32 1e-05, %v30_v13 }
 0x122   :  { %169 = vrsqrt.f32 %v31_v14 }
 0x12f   :  { %v170_v15 = vpop.eup %169 }
 0x130   :  { %v33_v17 = vmul.f32 %v170_v15, %v25_v4 }
 0x132   :  { %v41_v19 = vmul.f32 %v139_v16, %v33_v17 }
 0x134   :  { %v49_v20 = vadd.f32 %v140_v18, %v41_v19 }
 0x136   :  { %v50_v21 = vpack.c.bf16 %v49_v20, %v49_v20 }
 0x138   :  { %160 = vmatmul.mubr.msk.bf16.vlgmr.msra.gmra.mxu0 %vm83_vm2, %v50_v21 }
 0x1f8   :  { %v121_v22 = vpop.f32.mrf.mxu0 }
 0x1f9   :  { %v127_v23 = vmul.f32 %v121_v22, %v121_v22 }
 0x1fa   :  { %v161_v24 = vpop.f32.mrf.mxu0 }
 0x1fb   :  { %v128_v25 = vsel %vm19_vm0, %v127_v23, 0.0 }
 0x1fc   :  { %129 = vadd.xlane.f32.xlu1 %v128_v25  ;;  %v124_v26 = vpop.f32.mrf.mxu0 }
 0x1fe   :  { %v162_v27 = vpop.f32.mrf.mxu0 }
 0x285   :  { %v130_v28 = vpop.xlane.xlu1 %129 }
 0x286   :  { %v131_v29 = vadd.f32 1e-12, %v130_v28 }
 0x288   :  { %171 = vrsqrt.f32 %v131_v29 }
 0x295   :  { %v172_v30 = vpop.eup %171 }
 0x296   :  { %v133_v31 = vmul.f32 %v172_v30, %v121_v22 }
 0x298   :  { %134 = vst.msk [vmem:[%s232_s4] sm:$0x7] %vm19_vm0, %v133_v31 }

</bundles_post_ra>
